<compile_context>
chip_gen: v7x
topology: tpu7x:2x2x1
jax: 0.10.0
libtpu: 0.0.40
codegen_flags: <defaults>
</compile_context>

<pallas_src>
import functools
import math

import jax
import jax.numpy as jnp
from jax.experimental import pallas as pl
from jax.experimental.pallas import tpu as pltpu


def _bilinear_matrix(n_in, n_out):
    """(n_out, n_in) 1-D bilinear interpolation matrix, align_corners=True."""
    rows = []
    for i_out in range(n_out):
        row = [0.0] * n_in
        if n_in == 1 or n_out == 1:
            src = 0.0
        else:
            src = i_out * (n_in - 1) / (n_out - 1)
        i0 = min(int(math.floor(src)), max(n_in - 2, 0))
        t = src - i0
        row[i0] += 1.0 - t
        if i0 + 1 < n_in:
            row[i0 + 1] += t
        rows.append(row)
    return jnp.array(rows, dtype=jnp.float32)


def _gateup_kernel(x1_ref, z_ref, up_ref, mask_ref, wqk_ref, bqk_ref,
                   wv_ref, bv_ref, w1_ref, b1_ref, w2_ref, b2_ref,
                   o_ref, pad_ref, col_ref, *, W, margin):
    C1 = x1_ref.shape[0]
    k_dim = wv_ref.shape[0]
    Cmid = w1_ref.shape[0]
    NL = z_ref.shape[-1]          # N * (H+2) * (W+2), pixels (incl. pad ring) in lanes
    Wp = W + 2
    M = margin
    # 3x3 tap offsets as flat lane shifts in the padded layout (dy, dx in {-1,0,1}).
    shifts = tuple((dy - 1) * Wp + (dx - 1) for dy in range(3) for dx in range(3))

    interior = mask_ref[...] > 0.5                                   # (1, NL) bool

    def conv3x3(row0, C, w_ref, b_ref):
        # im2col with channels-in-sublanes: each tap is a static lane-offset window of
        # the padded scratch; 9 full-lane row stores, then a single transposed matmul
        # (Cout, 9C) @ (9C, NL) with all pixels on the MXU lane side.
        for o, s in enumerate(shifts):
            col_ref[o * C:(o + 1) * C, :] = pad_ref[row0:row0 + C, M + s:M + s + NL]
        return (jnp.dot(w_ref[...], col_ref[:9 * C, :],
                        preferred_element_type=jnp.float32) + b_ref[...])

    # Zero only the scratch margins; the [M, M+NL) window is fully written before every
    # read, so a full zero-fill would be wasted store traffic.
    rows = pad_ref.shape[0]
    rm = pad_ref.shape[1] - M - NL
    pad_ref[:, :M] = jnp.zeros((rows, M), jnp.float32)
    pad_ref[:, M + NL:M + NL + rm] = jnp.zeros((rows, rm), jnp.float32)

    # ---- 1. bilinear upsample (align_corners=True) fused with the scatter into the
    #         zero-padded layout: one (C1, N*h*w) @ (N*h*w, NL) matmul.  Halo columns of
    #         the upsample matrix are zero, so x1u already carries a correct pad ring.
    x1u = jnp.dot(x1_ref[...], up_ref[...], preferred_element_type=jnp.float32)
    pad_ref[C1:2 * C1, M:M + NL] = x1u       # rows [C1, 2C1): 2nd half of DoubleConv input

    # ---- 2. Gatev_4 Q (depthwise 3x3, dense-expanded) and K (3x3) convs share one
    #         im2col matmul; CR => conv + bias + ReLU.
    qk = jnp.maximum(conv3x3(C1, C1, wqk_ref, bqk_ref), 0.0)          # (C1 + k_dim, NL)
    q = qk[:C1, :]
    z = z_ref[...]                                                    # padded x2_, (C1, NL)

    # ---- 3. per-pixel scaled-dot-product attention over k_dim (E = 1 -> scale 1);
    #         V = CR(1, k_dim, 1) applied channel-wise to x2_ (SMEM scalars).
    if k_dim == 2:
        # softmax over 2 keys == sigmoid of the score difference (exact).
        s_diff = q * (qk[C1:C1 + 1, :] - qk[C1 + 1:C1 + 2, :])
        p0 = 1.0 / (1.0 + jnp.exp(-s_diff))
        v0 = jnp.maximum(wv_ref[0] * z + bv_ref[0], 0.0)
        v1 = jnp.maximum(wv_ref[1] * z + bv_ref[1], 0.0)
        gate = p0 * (v0 - v1) + v1
    else:
        scores = [q * qk[C1 + k:C1 + k + 1, :] for k in range(k_dim)]
        m = scores[0]
        for k in range(1, k_dim):
            m = jnp.maximum(m, scores[k])
        exps = [jnp.exp(s - m) for s in scores]
        denom = exps[0]
        for k in range(1, k_dim):
            denom = denom + exps[k]
        inv = pl.reciprocal(denom, approx=True)
        gate = jnp.zeros_like(q)
        for k in range(k_dim):
            vk = jnp.maximum(wv_ref[k] * z + bv_ref[k], 0.0)
            gate = gate + (exps[k] * inv) * vk

    # ---- 4. DoubleConv on cat([gate, x1u], channel): (conv3x3 + folded BN + ReLU) x 2.
    #         jnp.where (not multiply) keeps the pad ring exactly zero.
    pad_ref[0:C1, M:M + NL] = jnp.where(interior, gate, 0.0)
    h1 = jnp.maximum(conv3x3(0, 2 * C1, w1_ref, b1_ref), 0.0)         # (Cmid, NL)
    pad_ref[0:Cmid, M:M + NL] = jnp.where(interior, h1, 0.0)
    h2 = jnp.maximum(conv3x3(0, Cmid, w2_ref, b2_ref), 0.0)           # (Cout, NL)

    # ---- 5. lane-dense store; the wrapper drops the pad ring.
    o_ref[...] = h2


def init_params(key, in_channels, out_channels, k_factor=4):
    """Synthetic, deterministic parameters in kernel-ready (transposed, BN-folded) form."""
    C1 = in_channels // 2
    k_dim = max(C1 // k_factor, 1)
    Cmid = out_channels          # DoubleConv: mid_channels = out_channels * groups, groups=1
    Cout = out_channels
    ks = iter(jax.random.split(key, 8))

    def rnd(shape, scale=0.1):
        return scale * jax.random.normal(next(ks), shape, jnp.float32)

    # Gatev_4:  Q = CR(C1, C1, 3, groups=C1),  K = CR(C1, k_dim, 3),  V = CR(1, k_dim, 1)
    wq_dw = rnd((3, 3, C1))                  # depthwise 3x3 (one filter per channel)
    bq = rnd((C1,), 0.05)
    wk = rnd((3, 3, C1, k_dim))
    bk = rnd((k_dim,), 0.05)
    wv = rnd((k_dim,))
    bv = rnd((k_dim,), 0.05)

    # Depthwise Q expanded to its dense equivalent and concatenated with K so both share
    # one im2col matmul.  Weights are stored transposed: (Cout, 9*Cin).
    wq_dense = wq_dw[..., None] * jnp.eye(C1, dtype=jnp.float32)      # (3,3,C1,C1)
    wqk = jnp.concatenate([wq_dense, wk], axis=-1).reshape(9 * C1, C1 + k_dim).T
    bqk = jnp.concatenate([bq, bk]).reshape(C1 + k_dim, 1)

    # DoubleConv convs (bias=False); eval-mode BatchNorm folded into the weights.
    bn_scale = 1.0 / math.sqrt(1.0 + 1e-5)   # gamma=1, var=1, mean=0, beta=0
    w1 = (rnd((3, 3, 2 * C1, Cmid)) * bn_scale).reshape(9 * 2 * C1, Cmid).T   # (Cmid, 9*2C1)
    w2 = (rnd((3, 3, Cmid, Cout)) * bn_scale).reshape(9 * Cmid, Cout).T       # (Cout, 9*Cmid)
    b1 = jnp.zeros((Cmid, 1), jnp.float32)
    b2 = jnp.zeros((Cout, 1), jnp.float32)

    return dict(wqk=wqk, bqk=bqk, wv=wv, bv=bv, w1=w1, b1=b1, w2=w2, b2=b2)


def gateupv4_forward(x1, x1_, x2_, params):
    """x1: (N, C1, h, w) decoder feature; x2_: (N, C1, 2h, 2w) encoder skip (both NCHW).

    Returns the two channel chunks of DoubleConv(cat([gate, up(x1)])), each NCHW.
    x1_ is accepted but unused, matching the reference forward.
    """
    del x1_
    N, C1, h, w = x1.shape
    Nb, C1b, H, W = x2_.shape
    # TODO(synk): the x2-provided path, the bilinear=False (ConvTranspose2d) path and
    # nonzero F.pad alignment (x2_ spatial != 2 * x1 spatial) are not implemented.
    assert Nb == N and C1b == C1 and (H, W) == (2 * h, 2 * w)

    k_dim = params["wv"].shape[0]
    Cmid = params["w1"].shape[0]
    Cout = params["w2"].shape[0]
    Hp, Wp = H + 2, W + 2
    L = Hp * Wp                      # per-batch padded pixel count
    NL = N * L
    margin = max(128, W + 3)         # left margin of the pad scratch (aligned stores)
    rmargin = max(32, W + 3)
    crow = max(2 * C1, Cmid)

    # Channels-in-sublanes, (batch, pixels)-in-lanes layouts (tiny host-side transposes).
    x1k = jnp.transpose(x1, (1, 0, 2, 3)).reshape(C1, N * h * w).astype(jnp.float32)
    z_pad = jnp.pad(x2_.astype(jnp.float32), ((0, 0), (0, 0), (1, 1), (1, 1)))
    z_pad = jnp.transpose(z_pad, (1, 0, 2, 3)).reshape(C1, NL)

    # Fused bilinear-upsample + zero-pad-placement matrix, block-diagonal over the batch.
    AH = _bilinear_matrix(h, H)                                       # (H, h)
    AW = _bilinear_matrix(w, W)                                       # (W, w)
    core = jnp.einsum('Hi,Wj->ijHW', AH, AW).reshape(h * w, H, W)
    up = jnp.pad(core, ((0, 0), (1, 1), (1, 1))).reshape(h * w, L)    # zero halo columns
    up_big = jnp.kron(jnp.eye(N, dtype=jnp.float32), up)              # (N*h*w, NL)

    # Interior (non-pad-ring) mask in the padded flat layout.
    m2 = jnp.pad(jnp.ones((H, W), jnp.float32), ((1, 1), (1, 1))).reshape(1, L)
    mask = jnp.tile(m2, (1, N))                                       # (1, NL)

    kernel = functools.partial(_gateup_kernel, W=W, margin=margin)
    out_pad = pl.pallas_call(
        kernel,
        out_shape=jax.ShapeDtypeStruct((Cout, NL), jnp.float32),
        grid=(1,),
        in_specs=[
            pl.BlockSpec((C1, N * h * w), lambda i: (0, 0)),          # x1 (channels-major)
            pl.BlockSpec((C1, NL), lambda i: (0, 0)),                 # padded x2_
            pl.BlockSpec((N * h * w, NL), lambda i: (0, 0)),          # upsample matrix
            pl.BlockSpec((1, NL), lambda i: (0, 0)),                  # interior mask
            pl.BlockSpec((C1 + k_dim, 9 * C1), lambda i: (0, 0)),     # Q|K weights (T)
            pl.BlockSpec((C1 + k_dim, 1), lambda i: (0, 0)),          # Q|K bias
            pl.BlockSpec(memory_space=pltpu.MemorySpace.SMEM),        # wv scalars
            pl.BlockSpec(memory_space=pltpu.MemorySpace.SMEM),        # bv scalars
            pl.BlockSpec((Cmid, 9 * 2 * C1), lambda i: (0, 0)),       # conv1 weights (T)
            pl.BlockSpec((Cmid, 1), lambda i: (0, 0)),
            pl.BlockSpec((Cout, 9 * Cmid), lambda i: (0, 0)),         # conv2 weights (T)
            pl.BlockSpec((Cout, 1), lambda i: (0, 0)),
        ],
        out_specs=pl.BlockSpec((Cout, NL), lambda i: (0, 0)),
        scratch_shapes=[
            pltpu.VMEM((crow, margin + NL + rmargin), jnp.float32),   # padded conv input
            pltpu.VMEM((9 * crow, NL), jnp.float32),                  # shared im2col buffer
        ],
        compiler_params=pltpu.CompilerParams(dimension_semantics=("arbitrary",)),
    )(x1k, z_pad, up_big, mask,
      params["wqk"], params["bqk"], params["wv"], params["bv"],
      params["w1"], params["b1"], params["w2"], params["b2"])

    # Drop the pad ring, go back to NCHW, and chunk channels in two.
    out = out_pad.reshape(Cout, N, Hp, Wp)[:, :, 1:H + 1, 1:W + 1]
    out = jnp.transpose(out, (1, 0, 2, 3))                            # (N, Cout, H, W)
    return out[:, :Cout // 2], out[:, Cout // 2:]


if __name__ == "__main__":
    key = jax.random.PRNGKey(0)
    k_param, k1, k1b, k2 = jax.random.split(key, 4)

    in_channels, out_channels = 16, 16      # GateUpv_4(16, 16), default k_factor=4 -> k_dim=2
    N, h, w = 2, 8, 8
    C1 = in_channels // 2
    H, W = 2 * h, 2 * w

    params = init_params(k_param, in_channels, out_channels)
    x1 = jax.random.normal(k1, (N, C1, h, w), jnp.float32)     # decoder feature (pre-upsample)
    x1_ = jax.random.normal(k1b, (N, C1, H, W), jnp.float32)   # unused by the reference forward
    x2_ = jax.random.normal(k2, (N, C1, H, W), jnp.float32)    # encoder skip feature

    fwd = jax.jit(gateupv4_forward)
    o1, o2 = fwd(x1, x1_, x2_, params)
    o1, o2 = jax.block_until_ready((o1, o2))
    assert o1.shape == (N, out_channels // 2, H, W), o1.shape
    assert o2.shape == (N, out_channels // 2, H, W), o2.shape
    print("KERNEL_OK")
</pallas_src>

<mosaic_0001>
module attributes {stable_mosaic.version = 11 : i64} {
  func.func @_gateup_kernel(%arg0: i32, %arg1: memref<8x128xf32, #tpu.memory_space<vmem>>, %arg2: memref<8x648xf32, #tpu.memory_space<vmem>>, %arg3: memref<128x648xf32, #tpu.memory_space<vmem>>, %arg4: memref<1x648xf32, #tpu.memory_space<vmem>>, %arg5: memref<10x72xf32, #tpu.memory_space<vmem>>, %arg6: memref<10x1xf32, #tpu.memory_space<vmem>>, %arg7: memref<2xf32, #tpu.memory_space<smem>>, %arg8: memref<2xf32, #tpu.memory_space<smem>>, %arg9: memref<16x144xf32, #tpu.memory_space<vmem>>, %arg10: memref<16x1xf32, #tpu.memory_space<vmem>>, %arg11: memref<16x144xf32, #tpu.memory_space<vmem>>, %arg12: memref<16x1xf32, #tpu.memory_space<vmem>>, %arg13: memref<16x648xf32, #tpu.memory_space<vmem>>, %arg14: memref<16x808xf32, #tpu.memory_space<vmem>>, %arg15: memref<144x648xf32, #tpu.memory_space<vmem>>) attributes {dimension_semantics = [#tpu.dimension_semantics<arbitrary>], iteration_bounds = array<i64: 1>, scalar_prefetch = 0 : i64, scratch_operands = 2 : i64, tpu.core_type = #tpu.core_type<tc>, window_params = [{pipeline_mode = #tpu.pipeline_mode<synchronous>, transform_indices = @transform_0, window_bounds = array<i64: 8, 128>}, {pipeline_mode = #tpu.pipeline_mode<synchronous>, transform_indices = @transform_1, window_bounds = array<i64: 8, 648>}, {pipeline_mode = #tpu.pipeline_mode<synchronous>, transform_indices = @transform_2, window_bounds = array<i64: 128, 648>}, {pipeline_mode = #tpu.pipeline_mode<synchronous>, transform_indices = @transform_3, window_bounds = array<i64: 1, 648>}, {pipeline_mode = #tpu.pipeline_mode<synchronous>, transform_indices = @transform_4, window_bounds = array<i64: 10, 72>}, {pipeline_mode = #tpu.pipeline_mode<synchronous>, transform_indices = @transform_5, window_bounds = array<i64: 10, 1>}, {transform_indices = @transform_6, window_bounds = array<i64: 2>}, {transform_indices = @transform_7, window_bounds = array<i64: 2>}, {pipeline_mode = #tpu.pipeline_mode<synchronous>, transform_indices = @transform_8, window_bounds = array<i64: 16, 144>}, {pipeline_mode = #tpu.pipeline_mode<synchronous>, transform_indices = @transform_9, window_bounds = array<i64: 16, 1>}, {pipeline_mode = #tpu.pipeline_mode<synchronous>, transform_indices = @transform_10, window_bounds = array<i64: 16, 144>}, {pipeline_mode = #tpu.pipeline_mode<synchronous>, transform_indices = @transform_11, window_bounds = array<i64: 16, 1>}, {pipeline_mode = #tpu.pipeline_mode<synchronous>, transform_indices = @transform_12, window_bounds = array<i64: 16, 648>}]} {
    %c0 = arith.constant 0 : index
    %c0_0 = arith.constant 0 : index
    %0 = vector.load %arg4[%c0, %c0_0] : memref<1x648xf32, #tpu.memory_space<vmem>>, vector<1x648xf32>
    %cst = arith.constant 5.000000e-01 : f32
    %1 = vector.broadcast %cst : f32 to vector<1x648xf32>
    %2 = arith.cmpf ogt, %0, %1 : vector<1x648xf32>
    %cst_1 = arith.constant 0.000000e+00 : f32
    %3 = vector.broadcast %cst_1 : f32 to vector<16x128xf32>
    %c0_2 = arith.constant 0 : index
    %c0_3 = arith.constant 0 : index
    %4 = vector.load %arg14[%c0_2, %c0_3] : memref<16x808xf32, #tpu.memory_space<vmem>>, vector<16x128xf32>
    tpu.vector_store %arg14[%c0_2, %c0_3], %3 {strides = array<i32>} : memref<16x808xf32, #tpu.memory_space<vmem>>, vector<16x128xf32>,
    %cst_4 = arith.constant 0.000000e+00 : f32
    %5 = vector.broadcast %cst_4 : f32 to vector<16x32xf32>
    %c0_5 = arith.constant 0 : index
    %c776 = arith.constant 776 : index
    %6 = vector.load %arg14[%c0_5, %c776] : memref<16x808xf32, #tpu.memory_space<vmem>>, vector<16x32xf32>
    tpu.vector_store %arg14[%c0_5, %c776], %5 {strides = array<i32>} : memref<16x808xf32, #tpu.memory_space<vmem>>, vector<16x32xf32>,
    %c0_6 = arith.constant 0 : index
    %c0_7 = arith.constant 0 : index
    %7 = vector.load %arg1[%c0_6, %c0_7] : memref<8x128xf32, #tpu.memory_space<vmem>>, vector<8x128xf32>
    %c0_8 = arith.constant 0 : index
    %c0_9 = arith.constant 0 : index
    %8 = vector.load %arg3[%c0_8, %c0_9] : memref<128x648xf32, #tpu.memory_space<vmem>>, vector<128x648xf32>
    %cst_10 = arith.constant dense<0.000000e+00> : vector<8x648xf32>
    %9 = tpu.matmul %7, %8, %cst_10 {dimension_numbers = #tpu.dot_dimension_numbers<[1], [0], [0], [1], [0, 0, 1, 1], [], []>} : vector<8x128xf32>, vector<128x648xf32>, vector<8x648xf32> -> vector<8x648xf32>
    %c8 = arith.constant 8 : index
    %c128 = arith.constant 128 : index
    %10 = vector.load %arg14[%c8, %c128] : memref<16x808xf32, #tpu.memory_space<vmem>>, vector<8x648xf32>
    tpu.vector_store %arg14[%c8, %c128], %9 {strides = array<i32>} : memref<16x808xf32, #tpu.memory_space<vmem>>, vector<8x648xf32>,
    %c8_11 = arith.constant 8 : index
    %c109 = arith.constant 109 : index
    %11 = vector.load %arg14[%c8_11, %c109] : memref<16x808xf32, #tpu.memory_space<vmem>>, vector<8x648xf32>
    %c0_12 = arith.constant 0 : index
    %c0_13 = arith.constant 0 : index
    %12 = vector.load %arg15[%c0_12, %c0_13] : memref<144x648xf32, #tpu.memory_space<vmem>>, vector<8x648xf32>
    tpu.vector_store %arg15[%c0_12, %c0_13], %11 {strides = array<i32>} : memref<144x648xf32, #tpu.memory_space<vmem>>, vector<8x648xf32>,
    %c8_14 = arith.constant 8 : index
    %c110 = arith.constant 110 : index
    %13 = vector.load %arg14[%c8_14, %c110] : memref<16x808xf32, #tpu.memory_space<vmem>>, vector<8x648xf32>
    %c8_15 = arith.constant 8 : index
    %c0_16 = arith.constant 0 : index
    %14 = vector.load %arg15[%c8_15, %c0_16] : memref<144x648xf32, #tpu.memory_space<vmem>>, vector<8x648xf32>
    tpu.vector_store %arg15[%c8_15, %c0_16], %13 {strides = array<i32>} : memref<144x648xf32, #tpu.memory_space<vmem>>, vector<8x648xf32>,
    %c8_17 = arith.constant 8 : index
    %c111 = arith.constant 111 : index
    %15 = vector.load %arg14[%c8_17, %c111] : memref<16x808xf32, #tpu.memory_space<vmem>>, vector<8x648xf32>
    %c16 = arith.constant 16 : index
    %c0_18 = arith.constant 0 : index
    %16 = vector.load %arg15[%c16, %c0_18] : memref<144x648xf32, #tpu.memory_space<vmem>>, vector<8x648xf32>
    tpu.vector_store %arg15[%c16, %c0_18], %15 {strides = array<i32>} : memref<144x648xf32, #tpu.memory_space<vmem>>, vector<8x648xf32>,
    %c8_19 = arith.constant 8 : index
    %c127 = arith.constant 127 : index
    %17 = vector.load %arg14[%c8_19, %c127] : memref<16x808xf32, #tpu.memory_space<vmem>>, vector<8x648xf32>
    %c24 = arith.constant 24 : index
    %c0_20 = arith.constant 0 : index
    %18 = vector.load %arg15[%c24, %c0_20] : memref<144x648xf32, #tpu.memory_space<vmem>>, vector<8x648xf32>
    tpu.vector_store %arg15[%c24, %c0_20], %17 {strides = array<i32>} : memref<144x648xf32, #tpu.memory_space<vmem>>, vector<8x648xf32>,
    %c8_21 = arith.constant 8 : index
    %c128_22 = arith.constant 128 : index
    %19 = vector.load %arg14[%c8_21, %c128_22] : memref<16x808xf32, #tpu.memory_space<vmem>>, vector<8x648xf32>
    %c32 = arith.constant 32 : index
    %c0_23 = arith.constant 0 : index
    %20 = vector.load %arg15[%c32, %c0_23] : memref<144x648xf32, #tpu.memory_space<vmem>>, vector<8x648xf32>
    tpu.vector_store %arg15[%c32, %c0_23], %19 {strides = array<i32>} : memref<144x648xf32, #tpu.memory_space<vmem>>, vector<8x648xf32>,
    %c8_24 = arith.constant 8 : index
    %c129 = arith.constant 129 : index
    %21 = vector.load %arg14[%c8_24, %c129] : memref<16x808xf32, #tpu.memory_space<vmem>>, vector<8x648xf32>
    %c40 = arith.constant 40 : index
    %c0_25 = arith.constant 0 : index
    %22 = vector.load %arg15[%c40, %c0_25] : memref<144x648xf32, #tpu.memory_space<vmem>>, vector<8x648xf32>
    tpu.vector_store %arg15[%c40, %c0_25], %21 {strides = array<i32>} : memref<144x648xf32, #tpu.memory_space<vmem>>, vector<8x648xf32>,
    %c8_26 = arith.constant 8 : index
    %c145 = arith.constant 145 : index
    %23 = vector.load %arg14[%c8_26, %c145] : memref<16x808xf32, #tpu.memory_space<vmem>>, vector<8x648xf32>
    %c48 = arith.constant 48 : index
    %c0_27 = arith.constant 0 : index
    %24 = vector.load %arg15[%c48, %c0_27] : memref<144x648xf32, #tpu.memory_space<vmem>>, vector<8x648xf32>
    tpu.vector_store %arg15[%c48, %c0_27], %23 {strides = array<i32>} : memref<144x648xf32, #tpu.memory_space<vmem>>, vector<8x648xf32>,
    %c8_28 = arith.constant 8 : index
    %c146 = arith.constant 146 : index
    %25 = vector.load %arg14[%c8_28, %c146] : memref<16x808xf32, #tpu.memory_space<vmem>>, vector<8x648xf32>
    %c56 = arith.constant 56 : index
    %c0_29 = arith.constant 0 : index
    %26 = vector.load %arg15[%c56, %c0_29] : memref<144x648xf32, #tpu.memory_space<vmem>>, vector<8x648xf32>
    tpu.vector_store %arg15[%c56, %c0_29], %25 {strides = array<i32>} : memref<144x648xf32, #tpu.memory_space<vmem>>, vector<8x648xf32>,
    %c8_30 = arith.constant 8 : index
    %c147 = arith.constant 147 : index
    %27 = vector.load %arg14[%c8_30, %c147] : memref<16x808xf32, #tpu.memory_space<vmem>>, vector<8x648xf32>
    %c64 = arith.constant 64 : index
    %c0_31 = arith.constant 0 : index
    %28 = vector.load %arg15[%c64, %c0_31] : memref<144x648xf32, #tpu.memory_space<vmem>>, vector<8x648xf32>
    tpu.vector_store %arg15[%c64, %c0_31], %27 {strides = array<i32>} : memref<144x648xf32, #tpu.memory_space<vmem>>, vector<8x648xf32>,
    %c0_32 = arith.constant 0 : index
    %c0_33 = arith.constant 0 : index
    %29 = vector.load %arg5[%c0_32, %c0_33] : memref<10x72xf32, #tpu.memory_space<vmem>>, vector<10x72xf32>
    %c0_34 = arith.constant 0 : index
    %c0_35 = arith.constant 0 : index
    %30 = vector.load %arg15[%c0_34, %c0_35] : memref<144x648xf32, #tpu.memory_space<vmem>>, vector<72x648xf32>
    %cst_36 = arith.constant dense<0.000000e+00> : vector<10x648xf32>
    %31 = tpu.matmul %29, %30, %cst_36 {dimension_numbers = #tpu.dot_dimension_numbers<[1], [0], [0], [1], [0, 0, 1, 1], [], []>} : vector<10x72xf32>, vector<72x648xf32>, vector<10x648xf32> -> vector<10x648xf32>
    %c0_37 = arith.constant 0 : index
    %c0_38 = arith.constant 0 : index
    %32 = vector.load %arg6[%c0_37, %c0_38] : memref<10x1xf32, #tpu.memory_space<vmem>>, vector<10x1xf32>
    %33 = vector.broadcast %32 : vector<10x1xf32> to vector<10x648xf32>
    %34 = arith.addf %31, %33 : vector<10x648xf32>
    %cst_39 = arith.constant 0.000000e+00 : f32
    %35 = vector.broadcast %cst_39 : f32 to vector<10x648xf32>
    %36 = arith.maximumf %34, %35 : vector<10x648xf32>
    %37 = vector.extract_strided_slice %36 {offsets = [0, 0], sizes = [8, 648], strides = [1, 1]} : vector<10x648xf32> to vector<8x648xf32>
    %c0_40 = arith.constant 0 : index
    %c0_41 = arith.constant 0 : index
    %38 = vector.load %arg2[%c0_40, %c0_41] : memref<8x648xf32, #tpu.memory_space<vmem>>, vector<8x648xf32>
    %39 = vector.extract_strided_slice %36 {offsets = [8, 0], sizes = [1, 648], strides = [1, 1]} : vector<10x648xf32> to vector<1x648xf32>
    %40 = vector.extract_strided_slice %36 {offsets = [9, 0], sizes = [1, 648], strides = [1, 1]} : vector<10x648xf32> to vector<1x648xf32>
    %41 = arith.subf %39, %40 : vector<1x648xf32>
    %42 = vector.broadcast %41 : vector<1x648xf32> to vector<8x648xf32>
    %43 = arith.mulf %37, %42 : vector<8x648xf32>
    %cst_42 = arith.constant 0.000000e+00 : f32
    %44 = vector.broadcast %cst_42 : f32 to vector<8x648xf32>
    %45 = arith.subf %44, %43 : vector<8x648xf32>
    %46 = math.exp %45 : vector<8x648xf32>
    %cst_43 = arith.constant 1.000000e+00 : f32
    %47 = vector.broadcast %cst_43 : f32 to vector<8x648xf32>
    %48 = arith.addf %47, %46 : vector<8x648xf32>
    %cst_44 = arith.constant 1.000000e+00 : f32
    %49 = vector.broadcast %cst_44 : f32 to vector<8x648xf32>
    %50 = arith.divf %49, %48 : vector<8x648xf32>
    %c0_45 = arith.constant 0 : index
    %51 = memref.load %arg7[%c0_45] : memref<2xf32, #tpu.memory_space<smem>>
    %52 = vector.broadcast %51 : f32 to vector<8x648xf32>
    %53 = arith.mulf %52, %38 : vector<8x648xf32>
    %c0_46 = arith.constant 0 : index
    %54 = memref.load %arg8[%c0_46] : memref<2xf32, #tpu.memory_space<smem>>
    %55 = vector.broadcast %54 : f32 to vector<8x648xf32>
    %56 = arith.addf %53, %55 : vector<8x648xf32>
    %cst_47 = arith.constant 0.000000e+00 : f32
    %57 = vector.broadcast %cst_47 : f32 to vector<8x648xf32>
    %58 = arith.maximumf %56, %57 : vector<8x648xf32>
    %c1 = arith.constant 1 : index
    %59 = memref.load %arg7[%c1] : memref<2xf32, #tpu.memory_space<smem>>
    %60 = vector.broadcast %59 : f32 to vector<8x648xf32>
    %61 = arith.mulf %60, %38 : vector<8x648xf32>
    %c1_48 = arith.constant 1 : index
    %62 = memref.load %arg8[%c1_48] : memref<2xf32, #tpu.memory_space<smem>>
    %63 = vector.broadcast %62 : f32 to vector<8x648xf32>
    %64 = arith.addf %61, %63 : vector<8x648xf32>
    %cst_49 = arith.constant 0.000000e+00 : f32
    %65 = vector.broadcast %cst_49 : f32 to vector<8x648xf32>
    %66 = arith.maximumf %64, %65 : vector<8x648xf32>
    %67 = arith.subf %58, %66 : vector<8x648xf32>
    %68 = arith.mulf %50, %67 : vector<8x648xf32>
    %69 = arith.addf %68, %66 : vector<8x648xf32>
    %cst_50 = arith.constant 0.000000e+00 : f32
    %70 = vector.shape_cast %2 : vector<1x648xi1> to vector<1x648xi1>
    %71 = vector.broadcast %70 : vector<1x648xi1> to vector<8x648xi1>
    %72 = vector.broadcast %cst_50 : f32 to vector<8x648xf32>
    %73 = arith.select %71, %69, %72 : vector<8x648xi1>, vector<8x648xf32>
    %c0_51 = arith.constant 0 : index
    %c128_52 = arith.constant 128 : index
    %74 = vector.load %arg14[%c0_51, %c128_52] : memref<16x808xf32, #tpu.memory_space<vmem>>, vector<8x648xf32>
    tpu.vector_store %arg14[%c0_51, %c128_52], %73 {strides = array<i32>} : memref<16x808xf32, #tpu.memory_space<vmem>>, vector<8x648xf32>,
    %c0_53 = arith.constant 0 : index
    %c109_54 = arith.constant 109 : index
    %75 = vector.load %arg14[%c0_53, %c109_54] : memref<16x808xf32, #tpu.memory_space<vmem>>, vector<16x648xf32>
    %c0_55 = arith.constant 0 : index
    %c0_56 = arith.constant 0 : index
    %76 = vector.load %arg15[%c0_55, %c0_56] : memref<144x648xf32, #tpu.memory_space<vmem>>, vector<16x648xf32>
    tpu.vector_store %arg15[%c0_55, %c0_56], %75 {strides = array<i32>} : memref<144x648xf32, #tpu.memory_space<vmem>>, vector<16x648xf32>,
    %c0_57 = arith.constant 0 : index
    %c110_58 = arith.constant 110 : index
    %77 = vector.load %arg14[%c0_57, %c110_58] : memref<16x808xf32, #tpu.memory_space<vmem>>, vector<16x648xf32>
    %c16_59 = arith.constant 16 : index
    %c0_60 = arith.constant 0 : index
    %78 = vector.load %arg15[%c16_59, %c0_60] : memref<144x648xf32, #tpu.memory_space<vmem>>, vector<16x648xf32>
    tpu.vector_store %arg15[%c16_59, %c0_60], %77 {strides = array<i32>} : memref<144x648xf32, #tpu.memory_space<vmem>>, vector<16x648xf32>,
    %c0_61 = arith.constant 0 : index
    %c111_62 = arith.constant 111 : index
    %79 = vector.load %arg14[%c0_61, %c111_62] : memref<16x808xf32, #tpu.memory_space<vmem>>, vector<16x648xf32>
    %c32_63 = arith.constant 32 : index
    %c0_64 = arith.constant 0 : index
    %80 = vector.load %arg15[%c32_63, %c0_64] : memref<144x648xf32, #tpu.memory_space<vmem>>, vector<16x648xf32>
    tpu.vector_store %arg15[%c32_63, %c0_64], %79 {strides = array<i32>} : memref<144x648xf32, #tpu.memory_space<vmem>>, vector<16x648xf32>,
    %c0_65 = arith.constant 0 : index
    %c127_66 = arith.constant 127 : index
    %81 = vector.load %arg14[%c0_65, %c127_66] : memref<16x808xf32, #tpu.memory_space<vmem>>, vector<16x648xf32>
    %c48_67 = arith.constant 48 : index
    %c0_68 = arith.constant 0 : index
    %82 = vector.load %arg15[%c48_67, %c0_68] : memref<144x648xf32, #tpu.memory_space<vmem>>, vector<16x648xf32>
    tpu.vector_store %arg15[%c48_67, %c0_68], %81 {strides = array<i32>} : memref<144x648xf32, #tpu.memory_space<vmem>>, vector<16x648xf32>,
    %c0_69 = arith.constant 0 : index
    %c128_70 = arith.constant 128 : index
    %83 = vector.load %arg14[%c0_69, %c128_70] : memref<16x808xf32, #tpu.memory_space<vmem>>, vector<16x648xf32>
    %c64_71 = arith.constant 64 : index
    %c0_72 = arith.constant 0 : index
    %84 = vector.load %arg15[%c64_71, %c0_72] : memref<144x648xf32, #tpu.memory_space<vmem>>, vector<16x648xf32>
    tpu.vector_store %arg15[%c64_71, %c0_72], %83 {strides = array<i32>} : memref<144x648xf32, #tpu.memory_space<vmem>>, vector<16x648xf32>,
    %c0_73 = arith.constant 0 : index
    %c129_74 = arith.constant 129 : index
    %85 = vector.load %arg14[%c0_73, %c129_74] : memref<16x808xf32, #tpu.memory_space<vmem>>, vector<16x648xf32>
    %c80 = arith.constant 80 : index
    %c0_75 = arith.constant 0 : index
    %86 = vector.load %arg15[%c80, %c0_75] : memref<144x648xf32, #tpu.memory_space<vmem>>, vector<16x648xf32>
    tpu.vector_store %arg15[%c80, %c0_75], %85 {strides = array<i32>} : memref<144x648xf32, #tpu.memory_space<vmem>>, vector<16x648xf32>,
    %c0_76 = arith.constant 0 : index
    %c145_77 = arith.constant 145 : index
    %87 = vector.load %arg14[%c0_76, %c145_77] : memref<16x808xf32, #tpu.memory_space<vmem>>, vector<16x648xf32>
    %c96 = arith.constant 96 : index
    %c0_78 = arith.constant 0 : index
    %88 = vector.load %arg15[%c96, %c0_78] : memref<144x648xf32, #tpu.memory_space<vmem>>, vector<16x648xf32>
    tpu.vector_store %arg15[%c96, %c0_78], %87 {strides = array<i32>} : memref<144x648xf32, #tpu.memory_space<vmem>>, vector<16x648xf32>,
    %c0_79 = arith.constant 0 : index
    %c146_80 = arith.constant 146 : index
    %89 = vector.load %arg14[%c0_79, %c146_80] : memref<16x808xf32, #tpu.memory_space<vmem>>, vector<16x648xf32>
    %c112 = arith.constant 112 : index
    %c0_81 = arith.constant 0 : index
    %90 = vector.load %arg15[%c112, %c0_81] : memref<144x648xf32, #tpu.memory_space<vmem>>, vector<16x648xf32>
    tpu.vector_store %arg15[%c112, %c0_81], %89 {strides = array<i32>} : memref<144x648xf32, #tpu.memory_space<vmem>>, vector<16x648xf32>,
    %c0_82 = arith.constant 0 : index
    %c147_83 = arith.constant 147 : index
    %91 = vector.load %arg14[%c0_82, %c147_83] : memref<16x808xf32, #tpu.memory_space<vmem>>, vector<16x648xf32>
    %c128_84 = arith.constant 128 : index
    %c0_85 = arith.constant 0 : index
    %92 = vector.load %arg15[%c128_84, %c0_85] : memref<144x648xf32, #tpu.memory_space<vmem>>, vector<16x648xf32>
    tpu.vector_store %arg15[%c128_84, %c0_85], %91 {strides = array<i32>} : memref<144x648xf32, #tpu.memory_space<vmem>>, vector<16x648xf32>,
    %c0_86 = arith.constant 0 : index
    %c0_87 = arith.constant 0 : index
    %93 = vector.load %arg9[%c0_86, %c0_87] : memref<16x144xf32, #tpu.memory_space<vmem>>, vector<16x144xf32>
    %c0_88 = arith.constant 0 : index
    %c0_89 = arith.constant 0 : index
    %94 = vector.load %arg15[%c0_88, %c0_89] : memref<144x648xf32, #tpu.memory_space<vmem>>, vector<144x648xf32>
    %cst_90 = arith.constant dense<0.000000e+00> : vector<16x648xf32>
    %95 = tpu.matmul %93, %94, %cst_90 {dimension_numbers = #tpu.dot_dimension_numbers<[1], [0], [0], [1], [0, 0, 1, 1], [], []>} : vector<16x144xf32>, vector<144x648xf32>, vector<16x648xf32> -> vector<16x648xf32>
    %c0_91 = arith.constant 0 : index
    %c0_92 = arith.constant 0 : index
    %96 = vector.load %arg10[%c0_91, %c0_92] : memref<16x1xf32, #tpu.memory_space<vmem>>, vector<16x1xf32>
    %97 = vector.broadcast %96 : vector<16x1xf32> to vector<16x648xf32>
    %98 = arith.addf %95, %97 : vector<16x648xf32>
    %cst_93 = arith.constant 0.000000e+00 : f32
    %99 = vector.broadcast %cst_93 : f32 to vector<16x648xf32>
    %100 = arith.maximumf %98, %99 : vector<16x648xf32>
    %cst_94 = arith.constant 0.000000e+00 : f32
    %101 = vector.shape_cast %2 : vector<1x648xi1> to vector<1x648xi1>
    %102 = vector.broadcast %101 : vector<1x648xi1> to vector<16x648xi1>
    %103 = vector.broadcast %cst_94 : f32 to vector<16x648xf32>
    %104 = arith.select %102, %100, %103 : vector<16x648xi1>, vector<16x648xf32>
    %c0_95 = arith.constant 0 : index
    %c128_96 = arith.constant 128 : index
    %105 = vector.load %arg14[%c0_95, %c128_96] : memref<16x808xf32, #tpu.memory_space<vmem>>, vector<16x648xf32>
    tpu.vector_store %arg14[%c0_95, %c128_96], %104 {strides = array<i32>} : memref<16x808xf32, #tpu.memory_space<vmem>>, vector<16x648xf32>,
    %c0_97 = arith.constant 0 : index
    %c109_98 = arith.constant 109 : index
    %106 = vector.load %arg14[%c0_97, %c109_98] : memref<16x808xf32, #tpu.memory_space<vmem>>, vector<16x648xf32>
    %c0_99 = arith.constant 0 : index
    %c0_100 = arith.constant 0 : index
    %107 = vector.load %arg15[%c0_99, %c0_100] : memref<144x648xf32, #tpu.memory_space<vmem>>, vector<16x648xf32>
    tpu.vector_store %arg15[%c0_99, %c0_100], %106 {strides = array<i32>} : memref<144x648xf32, #tpu.memory_space<vmem>>, vector<16x648xf32>,
    %c0_101 = arith.constant 0 : index
    %c110_102 = arith.constant 110 : index
    %108 = vector.load %arg14[%c0_101, %c110_102] : memref<16x808xf32, #tpu.memory_space<vmem>>, vector<16x648xf32>
    %c16_103 = arith.constant 16 : index
    %c0_104 = arith.constant 0 : index
    %109 = vector.load %arg15[%c16_103, %c0_104] : memref<144x648xf32, #tpu.memory_space<vmem>>, vector<16x648xf32>
    tpu.vector_store %arg15[%c16_103, %c0_104], %108 {strides = array<i32>} : memref<144x648xf32, #tpu.memory_space<vmem>>, vector<16x648xf32>,
    %c0_105 = arith.constant 0 : index
    %c111_106 = arith.constant 111 : index
    %110 = vector.load %arg14[%c0_105, %c111_106] : memref<16x808xf32, #tpu.memory_space<vmem>>, vector<16x648xf32>
    %c32_107 = arith.constant 32 : index
    %c0_108 = arith.constant 0 : index
    %111 = vector.load %arg15[%c32_107, %c0_108] : memref<144x648xf32, #tpu.memory_space<vmem>>, vector<16x648xf32>
    tpu.vector_store %arg15[%c32_107, %c0_108], %110 {strides = array<i32>} : memref<144x648xf32, #tpu.memory_space<vmem>>, vector<16x648xf32>,
    %c0_109 = arith.constant 0 : index
    %c127_110 = arith.constant 127 : index
    %112 = vector.load %arg14[%c0_109, %c127_110] : memref<16x808xf32, #tpu.memory_space<vmem>>, vector<16x648xf32>
    %c48_111 = arith.constant 48 : index
    %c0_112 = arith.constant 0 : index
    %113 = vector.load %arg15[%c48_111, %c0_112] : memref<144x648xf32, #tpu.memory_space<vmem>>, vector<16x648xf32>
    tpu.vector_store %arg15[%c48_111, %c0_112], %112 {strides = array<i32>} : memref<144x648xf32, #tpu.memory_space<vmem>>, vector<16x648xf32>,
    %c0_113 = arith.constant 0 : index
    %c128_114 = arith.constant 128 : index
    %114 = vector.load %arg14[%c0_113, %c128_114] : memref<16x808xf32, #tpu.memory_space<vmem>>, vector<16x648xf32>
    %c64_115 = arith.constant 64 : index
    %c0_116 = arith.constant 0 : index
    %115 = vector.load %arg15[%c64_115, %c0_116] : memref<144x648xf32, #tpu.memory_space<vmem>>, vector<16x648xf32>
    tpu.vector_store %arg15[%c64_115, %c0_116], %114 {strides = array<i32>} : memref<144x648xf32, #tpu.memory_space<vmem>>, vector<16x648xf32>,
    %c0_117 = arith.constant 0 : index
    %c129_118 = arith.constant 129 : index
    %116 = vector.load %arg14[%c0_117, %c129_118] : memref<16x808xf32, #tpu.memory_space<vmem>>, vector<16x648xf32>
    %c80_119 = arith.constant 80 : index
    %c0_120 = arith.constant 0 : index
    %117 = vector.load %arg15[%c80_119, %c0_120] : memref<144x648xf32, #tpu.memory_space<vmem>>, vector<16x648xf32>
    tpu.vector_store %arg15[%c80_119, %c0_120], %116 {strides = array<i32>} : memref<144x648xf32, #tpu.memory_space<vmem>>, vector<16x648xf32>,
    %c0_121 = arith.constant 0 : index
    %c145_122 = arith.constant 145 : index
    %118 = vector.load %arg14[%c0_121, %c145_122] : memref<16x808xf32, #tpu.memory_space<vmem>>, vector<16x648xf32>
    %c96_123 = arith.constant 96 : index
    %c0_124 = arith.constant 0 : index
    %119 = vector.load %arg15[%c96_123, %c0_124] : memref<144x648xf32, #tpu.memory_space<vmem>>, vector<16x648xf32>
    tpu.vector_store %arg15[%c96_123, %c0_124], %118 {strides = array<i32>} : memref<144x648xf32, #tpu.memory_space<vmem>>, vector<16x648xf32>,
    %c0_125 = arith.constant 0 : index
    %c146_126 = arith.constant 146 : index
    %120 = vector.load %arg14[%c0_125, %c146_126] : memref<16x808xf32, #tpu.memory_space<vmem>>, vector<16x648xf32>
    %c112_127 = arith.constant 112 : index
    %c0_128 = arith.constant 0 : index
    %121 = vector.load %arg15[%c112_127, %c0_128] : memref<144x648xf32, #tpu.memory_space<vmem>>, vector<16x648xf32>
    tpu.vector_store %arg15[%c112_127, %c0_128], %120 {strides = array<i32>} : memref<144x648xf32, #tpu.memory_space<vmem>>, vector<16x648xf32>,
    %c0_129 = arith.constant 0 : index
    %c147_130 = arith.constant 147 : index
    %122 = vector.load %arg14[%c0_129, %c147_130] : memref<16x808xf32, #tpu.memory_space<vmem>>, vector<16x648xf32>
    %c128_131 = arith.constant 128 : index
    %c0_132 = arith.constant 0 : index
    %123 = vector.load %arg15[%c128_131, %c0_132] : memref<144x648xf32, #tpu.memory_space<vmem>>, vector<16x648xf32>
    tpu.vector_store %arg15[%c128_131, %c0_132], %122 {strides = array<i32>} : memref<144x648xf32, #tpu.memory_space<vmem>>, vector<16x648xf32>,
    %c0_133 = arith.constant 0 : index
    %c0_134 = arith.constant 0 : index
    %124 = vector.load %arg11[%c0_133, %c0_134] : memref<16x144xf32, #tpu.memory_space<vmem>>, vector<16x144xf32>
    %c0_135 = arith.constant 0 : index
    %c0_136 = arith.constant 0 : index
    %125 = vector.load %arg15[%c0_135, %c0_136] : memref<144x648xf32, #tpu.memory_space<vmem>>, vector<144x648xf32>
    %cst_137 = arith.constant dense<0.000000e+00> : vector<16x648xf32>
    %126 = tpu.matmul %124, %125, %cst_137 {dimension_numbers = #tpu.dot_dimension_numbers<[1], [0], [0], [1], [0, 0, 1, 1], [], []>} : vector<16x144xf32>, vector<144x648xf32>, vector<16x648xf32> -> vector<16x648xf32>
    %c0_138 = arith.constant 0 : index
    %c0_139 = arith.constant 0 : index
    %127 = vector.load %arg12[%c0_138, %c0_139] : memref<16x1xf32, #tpu.memory_space<vmem>>, vector<16x1xf32>
    %128 = vector.broadcast %127 : vector<16x1xf32> to vector<16x648xf32>
    %129 = arith.addf %126, %128 : vector<16x648xf32>
    %cst_140 = arith.constant 0.000000e+00 : f32
    %130 = vector.broadcast %cst_140 : f32 to vector<16x648xf32>
    %131 = arith.maximumf %129, %130 : vector<16x648xf32>
    %c0_141 = arith.constant 0 : index
    %c0_142 = arith.constant 0 : index
    %132 = vector.load %arg13[%c0_141, %c0_142] : memref<16x648xf32, #tpu.memory_space<vmem>>, vector<16x648xf32>
    tpu.vector_store %arg13[%c0_141, %c0_142], %131 {strides = array<i32>} : memref<16x648xf32, #tpu.memory_space<vmem>>, vector<16x648xf32>,
    return
  }
  func.func @transform_0(%arg0: i32) -> (i32, i32) {
    %c0_i32 = arith.constant 0 : i32
    %c0_i32_0 = arith.constant 0 : i32
    %c0_i32_1 = arith.constant 0 : i32
    return %c0_i32, %c0_i32_0 : i32, i32
  }
  func.func @transform_1(%arg0: i32) -> (i32, i32) {
    %c0_i32 = arith.constant 0 : i32
    %c0_i32_0 = arith.constant 0 : i32
    %c0_i32_1 = arith.constant 0 : i32
    return %c0_i32, %c0_i32_0 : i32, i32
  }
  func.func @transform_2(%arg0: i32) -> (i32, i32) {
    %c0_i32 = arith.constant 0 : i32
    %c0_i32_0 = arith.constant 0 : i32
    %c0_i32_1 = arith.constant 0 : i32
    return %c0_i32, %c0_i32_0 : i32, i32
  }
  func.func @transform_3(%arg0: i32) -> (i32, i32) {
    %c0_i32 = arith.constant 0 : i32
    %c0_i32_0 = arith.constant 0 : i32
    %c0_i32_1 = arith.constant 0 : i32
    return %c0_i32, %c0_i32_0 : i32, i32
  }
  func.func @transform_4(%arg0: i32) -> (i32, i32) {
    %c0_i32 = arith.constant 0 : i32
    %c0_i32_0 = arith.constant 0 : i32
    %c0_i32_1 = arith.constant 0 : i32
    return %c0_i32, %c0_i32_0 : i32, i32
  }
  func.func @transform_5(%arg0: i32) -> (i32, i32) {
    %c0_i32 = arith.constant 0 : i32
    %c0_i32_0 = arith.constant 0 : i32
    %c0_i32_1 = arith.constant 0 : i32
    return %c0_i32, %c0_i32_0 : i32, i32
  }
  func.func @transform_6(%arg0: i32) -> i32 {
    %c0_i32 = arith.constant 0 : i32
    %c0_i32_0 = arith.constant 0 : i32
    return %c0_i32 : i32
  }
  func.func @transform_7(%arg0: i32) -> i32 {
    %c0_i32 = arith.constant 0 : i32
    %c0_i32_0 = arith.constant 0 : i32
    return %c0_i32 : i32
  }
  func.func @transform_8(%arg0: i32) -> (i32, i32) {
    %c0_i32 = arith.constant 0 : i32
    %c0_i32_0 = arith.constant 0 : i32
    %c0_i32_1 = arith.constant 0 : i32
    return %c0_i32, %c0_i32_0 : i32, i32
  }
  func.func @transform_9(%arg0: i32) -> (i32, i32) {
    %c0_i32 = arith.constant 0 : i32
    %c0_i32_0 = arith.constant 0 : i32
    %c0_i32_1 = arith.constant 0 : i32
    return %c0_i32, %c0_i32_0 : i32, i32
  }
  func.func @transform_10(%arg0: i32) -> (i32, i32) {
    %c0_i32 = arith.constant 0 : i32
    %c0_i32_0 = arith.constant 0 : i32
    %c0_i32_1 = arith.constant 0 : i32
    return %c0_i32, %c0_i32_0 : i32, i32
  }
  func.func @transform_11(%arg0: i32) -> (i32, i32) {
    %c0_i32 = arith.constant 0 : i32
    %c0_i32_0 = arith.constant 0 : i32
    %c0_i32_1 = arith.constant 0 : i32
    return %c0_i32, %c0_i32_0 : i32, i32
  }
  func.func @transform_12(%arg0: i32) -> (i32, i32) {
    %c0_i32 = arith.constant 0 : i32
    %c0_i32_0 = arith.constant 0 : i32
    %c0_i32_1 = arith.constant 0 : i32
    return %c0_i32, %c0_i32_0 : i32, i32
  }
}

</mosaic_0001>

<bundles_post_ra>
// kernel: gateupv4_forward.1
= control target key start
LH: loop header
LB: loop body
LE: loop exit
PB: predicated region body
PF: predicated region fallthrough
CT: control target
= control target key end

     0   :  { %17 = vsyncpa [#allocation5], 0  ;;  %s5998_s0 = inlined_call_operand.vmem [shape: f32[8,128], index: 0, kind: input, shape index: {}]   ;;  %s5999_s1 = inlined_call_operand.vmem [shape: f32[8,648], index: 1, kind: input, shape index: {}]   ;;  %s6000_s2 = inlined_call_operand.vmem [shape: f32[128,648], index: 2, kind: input, shape index: {}]   ;;  %s6001_s3 = inlined_call_operand.vmem [shape: f32[1,648], index: 3, kind: input, shape index: {}]   ;;  %s6002_s4 = inlined_call_operand.vmem [shape: f32[10,72], index: 4, kind: input, shape index: {}]   ;;  %s6003_s5 = inlined_call_operand.vmem [shape: f32[10,1], index: 5, kind: input, shape index: {}]   ;;  %s6004_s6 = inlined_call_operand.vmem [shape: f32[2], index: 6, kind: input, shape index: {}]   ;;  %s6005_s7 = inlined_call_operand.vmem [shape: f32[2], index: 7, kind: input, shape index: {}]   ;;  %s6006_s8 = inlined_call_operand.vmem [shape: f32[16,144], index: 8, kind: input, shape index: {}]   ;;  %s6007_s9 = inlined_call_operand.vmem [shape: f32[16,1], index: 9, kind: input, shape index: {}]   ;;  %s6008_s10 = inlined_call_operand.vmem [shape: f32[16,144], index: 10, kind: input, shape index: {}]   ;;  %s6009_s11 = inlined_call_operand.vmem [shape: f32[16,1], index: 11, kind: input, shape index: {}]   ;;  %s6010_s12 = inlined_call_operand.vmem [shape: f32[16,648], index: 12, kind: output, shape index: {}]  }
   0x1   :  { %s37_s23 = sshll.u32 %s6004_s6, 4  ;;  %s38_s23 = int_to_ptr.vmem [resolvable:$true] %s37_s23 }
   0x2   :  { %18 = vsyncpa [#allocation7], 0  ;;  %s47_s26 = sshll.u32 %s6005_s7, 4  ;;  %s3918_s27 = scalar_lea.vmem %s38_s23, 16  ;;  %s48_s26 = int_to_ptr.vmem [resolvable:$true] %s47_s26 }
   0x3   :  { %p3919_p0 = scmp.ne.s32.totalorder %s38_s23, %s3918_s27  ;;  %p3923_p1 = scmp.lt.s32.totalorder %s38_s23, %s38_s23 }
   0x4   :  { %p3924_p2 = scmp.lt.s32.totalorder %s3918_s27, %s3918_s27 }
   0x6   :  { %p3925_p3 = por %p3924_p2, %p3923_p1 }
   0x8   :  { %p3926_p4 = pnand %p3925_p3, %p3919_p0 }
   0xa   :  { %3929 = shalt.err (!%p3926_p4)
}
   0xb   :  { %s3946_s28 = smov [#allocation4]   ;;  %s3930_s29 = scalar_lea.vmem %s48_s26, 16 }
   0xc   :  { %40 = dma.vmem_to_smem %s38_s23, 16, %s3946_s28, [#allocation5]  }
   0xd   :  { %p3931_p5 = scmp.ne.s32.totalorder %s48_s26, %s3930_s29  ;;  %p3935_p6 = scmp.lt.s32.totalorder %s48_s26, %s48_s26 }
   0xe   :  { %p3936_p7 = scmp.lt.s32.totalorder %s3930_s29, %s3930_s29 }
  0x10   :  { %p3937_p8 = por %p3936_p7, %p3935_p6 }
  0x12   :  { %p3938_p9 = pnand %p3937_p8, %p3931_p5 }
  0x14   :  { %3941 = shalt.err (!%p3938_p9)
}
  0x15   :  { %s3947_s6 = smov [#allocation6]  }
  0x16   :  { %50 = dma.vmem_to_smem %s48_s26, 16, %s3947_s6, [#allocation7]  }
  0x17   :  { %3942 = dma.done.wait [#allocation5], 16  }
  0x18   :  { %3943 = vsyncadd [#allocation5], 4294967280 }
  0x19   :  { %3944 = dma.done.wait [#allocation7], 16  }
  0x1a   :  { %3945 = vsyncadd [#allocation7], 4294967280 }
  0x1b   :  { %65 = sfence }
  0x1c   :  { %v75_v0 = vld [vmem:[%s6000_s2 + $0x8] sm:$0xff]  ;;  %v81_v1 = vld [vmem:[%s6000_s2 + $0x38] sm:$0xff]  ;;  %v74_v2 = vld [vmem:[%s6000_s2] sm:$0xff]  ;;  %v3948_v7 = vmov 0.0   ;;  %s3949_s22 = smov 18   ;;  %s3950_s23 = smov 19  }
  0x1d   :  { %v3451_v3 = vpack.c.bf16 %v81_v1, %v75_v0  ;;  %v80_v4 = vld [vmem:[%s6000_s2 + $0x30] sm:$0xff]  ;;  %v87_v5 = vld [vmem:[%s6000_s2 + $0x68] sm:$0xff]  ;;  %v93_v6 = vld [vmem:[%s6000_s2 + $0x98] sm:$0xff]  ;;  %234 = vmatprep.mubr.f32.mxu0 %v3948_v7  ;;  %68 = vst [vmem:[#allocation2] sm:$0xff] %v3948_v7  ;;  %305 = vmatprep.mubr.f32.mxu1 %v3948_v7  ;;  %s3951_s24 = smov 1   ;;  %vm70_vm0 = vcmask 326720  }
  0x1e   :  { %v3453_v8 = vpack.c.bf16 %v80_v4, %v74_v2  ;;  %v3455_v9 = vpack.c.bf16 %v93_v6, %v87_v5  ;;  %v77_v10 = vld [vmem:[%s6000_s2 + $0x18] sm:$0xff]  ;;  %v83_v11 = vld [vmem:[%s6000_s2 + $0x48] sm:$0xff]  ;;  %v86_v12 = vld [vmem:[%s6000_s2 + $0x60] sm:$0xff]  ;;  %444 = vrot.lane.b32.xlu1 %v3948_v7, %s3949_s22  ;;  %71 = vst.msk [vmem:[#allocation2 + $0x30] sm:$0xff] %vm70_vm0, %v3948_v7  ;;  %s3955_s27 = smov 111   ;;  %s3956_s28 = smov 109  }
  0x1f   :  { %3452 = vmatprep.subr.bf16.mxu0 %v3451_v3  ;;  %v3483_v13 = vpack.c.bf16 %v83_v11, %v77_v10  ;;  %v92_v14 = vld [vmem:[%s6000_s2 + $0x90] sm:$0xff]  ;;  %v82_v16 = vld [vmem:[%s6000_s2 + $0x40] sm:$0xff]  ;;  %v99_v19 = vld [vmem:[%s6000_s2 + $0xc8] sm:$0xff]  ;;  %402 = vrot.lane.b32.xlu0 %v3948_v7, %s3950_s23  ;;  %72 = vst.msk [vmem:[#allocation2 + $0x68] sm:$0xff] %vm70_vm0, %v3948_v7  ;;  %s3957_s29 = smov 110   ;;  %vm388_vm2 = vcmask 64512  }
  0x20   :  { %v76_v15 = vld [vmem:[%s6000_s2 + $0x10] sm:$0xff]  ;;  %3454 = vmatpush1.bf16.msra.mxu0 %v3453_v8  ;;  %v3457_v17 = vpack.c.bf16 %v92_v14, %v86_v12  ;;  %v105_v20 = vld [vmem:[%s6000_s2 + $0xf8] sm:$0xff]  ;;  %v95_v23 = vld [vmem:[%s6000_s2 + $0xa8] sm:$0xff]  ;;  %vm456_vm3 = vcmask 146432   ;;  %vm414_vm4 = vcmask 154624   ;;  %vm544_vm5 = vcmask 7168  }
  0x21   :  { %v3485_v18 = vpack.c.bf16 %v82_v16, %v76_v15  ;;  %v89_v21 = vld [vmem:[%s6000_s2 + $0x78] sm:$0xff]  ;;  %3456 = vmatprep.subr.bf16.mxu0 %v3455_v9  ;;  %3484 = vmatprep.subr.bf16.mxu1 %v3483_v13  ;;  %v3459_v22 = vpack.c.bf16 %v105_v20, %v99_v19  ;;  %v98_v24 = vld [vmem:[%s6000_s2 + $0xc0] sm:$0xff]  ;;  %v104_v25 = vld [vmem:[%s6000_s2 + $0xf0] sm:$0xff]  ;;  %vm498_vm6 = vcmask 138240   ;;  %vm599_vm7 = vcmask 1039360   ;;  %s3437_s17 = sld [smem:[#allocation4 + $0x1]] }
  0x22   :  { %v3487_v26 = vpack.c.bf16 %v95_v23, %v89_v21  ;;  %v88_v27 = vld [vmem:[%s6000_s2 + $0x70] sm:$0xff]  ;;  %v94_v28 = vld [vmem:[%s6000_s2 + $0xa0] sm:$0xff]  ;;  %v111_v29 = vld [vmem:[%s6000_s2 + $0x128] sm:$0xff]  ;;  %v3461_v34 = vpack.c.bf16 %v104_v25, %v98_v24  ;;  %530 = vrot.lane.b32.xlu1 %v3948_v7, %s3951_s24  ;;  %vm683_vm8 = vcmask 900096   ;;  %vm641_vm9 = vcmask 908288   ;;  %s1165_s18 = sld [smem:[#allocation6]] }
  0x23   :  { %3486 = vmatpush1.bf16.msra.mxu1 %v3485_v18  ;;  %v3489_v30 = vpack.c.bf16 %v94_v28, %v88_v27  ;;  %v117_v31 = vld [vmem:[%s6000_s2 + $0x158] sm:$0xff]  ;;  %v107_v33 = vld [vmem:[%s6000_s2 + $0x108] sm:$0xff]  ;;  %v110_v36 = vld [vmem:[%s6000_s2 + $0x120] sm:$0xff]  ;;  %vm725_vm10 = vcmask 891904   ;;  %vm811_vm11 = vcmask 588800   ;;  %s3438_s19 = sld [smem:[#allocation6 + $0x1]] }
  0x24   :  { %v101_v32 = vld [vmem:[%s6000_s2 + $0xd8] sm:$0xff]  ;;  %3458 = vmatpush1.bf16.msra.mxu0 %v3457_v17  ;;  %3488 = vmatprep.subr.bf16.mxu1 %v3487_v26  ;;  %v100_v37 = vld [vmem:[%s6000_s2 + $0xd0] sm:$0xff]  ;;  %v3463_v38 = vpack.c.bf16 %v117_v31, %v111_v29  ;;  %v106_v40 = vld [vmem:[%s6000_s2 + $0x100] sm:$0xff]  ;;  %vm2076_vm0 = vcmask 130048  }
  0x25   :  { %v3491_v35 = vpack.c.bf16 %v107_v33, %v101_v32  ;;  %3460 = vmatprep.subr.bf16.mxu0 %v3459_v22  ;;  %v116_v39 = vld [vmem:[%s6000_s2 + $0x150] sm:$0xff]  ;;  %v123_v41 = vld [vmem:[%s6000_s2 + $0x188] sm:$0xff]  ;;  %v3493_v42 = vpack.c.bf16 %v106_v40, %v100_v37  ;;  %v129_v43 = vld [vmem:[%s6000_s2 + $0x1b8] sm:$0xff] }
  0x26   :  { %v113_v44 = vld [vmem:[%s6000_s2 + $0x138] sm:$0xff]  ;;  %v119_v45 = vld [vmem:[%s6000_s2 + $0x168] sm:$0xff]  ;;  %v112_v47 = vld [vmem:[%s6000_s2 + $0x130] sm:$0xff]  ;;  %v3465_v49 = vpack.c.bf16 %v116_v39, %v110_v36  ;;  %v3467_v51 = vpack.c.bf16 %v129_v43, %v123_v41 }
  0x27   :  { %3490 = vmatpush1.bf16.msra.mxu1 %v3489_v30  ;;  %v3495_v46 = vpack.c.bf16 %v119_v45, %v113_v44  ;;  %v118_v48 = vld [vmem:[%s6000_s2 + $0x160] sm:$0xff]  ;;  %v125_v50 = vld [vmem:[%s6000_s2 + $0x198] sm:$0xff]  ;;  %v128_v53 = vld [vmem:[%s6000_s2 + $0x1b0] sm:$0xff] }
  0x28   :  { %3492 = vmatprep.subr.bf16.mxu1 %v3491_v35  ;;  %3462 = vmatpush1.bf16.msra.mxu0 %v3461_v34  ;;  %v122_v52 = vld [vmem:[%s6000_s2 + $0x180] sm:$0xff]  ;;  %v131_v54 = vld [vmem:[%s6000_s2 + $0x1c8] sm:$0xff]  ;;  %v3497_v55 = vpack.c.bf16 %v118_v48, %v112_v47  ;;  %v141_v57 = vld [vmem:[%s6000_s2 + $0x218] sm:$0xff] }
  0x29   :  { %3464 = vmatprep.subr.bf16.mxu0 %v3463_v38  ;;  %v135_v56 = vld [vmem:[%s6000_s2 + $0x1e8] sm:$0xff]  ;;  %v3499_v58 = vpack.c.bf16 %v131_v54, %v125_v50  ;;  %v124_v59 = vld [vmem:[%s6000_s2 + $0x190] sm:$0xff]  ;;  %v130_v60 = vld [vmem:[%s6000_s2 + $0x1c0] sm:$0xff]  ;;  %v3469_v61 = vpack.c.bf16 %v128_v53, %v122_v52 }
  0x2a   :  { %v137_v62 = vld [vmem:[%s6000_s2 + $0x1f8] sm:$0xff]  ;;  %v143_v63 = vld [vmem:[%s6000_s2 + $0x228] sm:$0xff]  ;;  %v3471_v0 = vpack.c.bf16 %v141_v57, %v135_v56  ;;  %v134_v1 = vld [vmem:[%s6000_s2 + $0x1e0] sm:$0xff]  ;;  %v3501_v3 = vpack.c.bf16 %v130_v60, %v124_v59 }
  0x2b   :  { %3494 = vmatpush1.bf16.msra.mxu1 %v3493_v42  ;;  %v140_v2 = vld [vmem:[%s6000_s2 + $0x210] sm:$0xff]  ;;  %v147_v4 = vld [vmem:[%s6000_s2 + $0x248] sm:$0xff]  ;;  %v153_v5 = vld [vmem:[%s6000_s2 + $0x278] sm:$0xff]  ;;  %v3503_v6 = vpack.c.bf16 %v143_v63, %v137_v62 }
  0x2c   :  { %3496 = vmatprep.subr.bf16.mxu1 %v3495_v46  ;;  %3466 = vmatpush1.bf16.msra.mxu0 %v3465_v49  ;;  %v136_v8 = vld [vmem:[%s6000_s2 + $0x1f0] sm:$0xff]  ;;  %v142_v9 = vld [vmem:[%s6000_s2 + $0x220] sm:$0xff]  ;;  %v3473_v10 = vpack.c.bf16 %v140_v2, %v134_v1  ;;  %v149_v11 = vld [vmem:[%s6000_s2 + $0x258] sm:$0xff]  ;;  %v3475_v13 = vpack.c.bf16 %v153_v5, %v147_v4 }
  0x2d   :  { %3468 = vmatprep.subr.bf16.mxu0 %v3467_v51  ;;  %v155_v12 = vld [vmem:[%s6000_s2 + $0x288] sm:$0xff]  ;;  %v146_v14 = vld [vmem:[%s6000_s2 + $0x240] sm:$0xff]  ;;  %v152_v15 = vld [vmem:[%s6000_s2 + $0x270] sm:$0xff]  ;;  %v3505_v16 = vpack.c.bf16 %v142_v9, %v136_v8 }
  0x2e   :  { %v159_v17 = vld [vmem:[%s6000_s2 + $0x2a8] sm:$0xff]  ;;  %v165_v18 = vld [vmem:[%s6000_s2 + $0x2d8] sm:$0xff]  ;;  %v3507_v19 = vpack.c.bf16 %v155_v12, %v149_v11  ;;  %v148_v20 = vld [vmem:[%s6000_s2 + $0x250] sm:$0xff]  ;;  %v3477_v22 = vpack.c.bf16 %v152_v15, %v146_v14 }
  0x2f   :  { %3498 = vmatpush1.bf16.msra.mxu1 %v3497_v55  ;;  %v154_v21 = vld [vmem:[%s6000_s2 + $0x280] sm:$0xff]  ;;  %v161_v23 = vld [vmem:[%s6000_s2 + $0x2b8] sm:$0xff]  ;;  %v167_v24 = vld [vmem:[%s6000_s2 + $0x2e8] sm:$0xff]  ;;  %v3479_v25 = vpack.c.bf16 %v165_v18, %v159_v17 }
  0x30   :  { %3500 = vmatprep.subr.bf16.mxu1 %v3499_v58  ;;  %3470 = vmatpush1.bf16.msra.mxu0 %v3469_v61  ;;  %v158_v26 = vld [vmem:[%s6000_s2 + $0x2a0] sm:$0xff]  ;;  %v164_v27 = vld [vmem:[%s6000_s2 + $0x2d0] sm:$0xff]  ;;  %v3509_v28 = vpack.c.bf16 %v154_v21, %v148_v20  ;;  %v79_v29 = vld [vmem:[%s6000_s2 + $0x28] sm:$0xff]  ;;  %v3511_v31 = vpack.c.bf16 %v167_v24, %v161_v23  ;;  %v1091_v20 = vlaneseq }
  0x31   :  { %3472 = vmatprep.subr.bf16.mxu0 %v3471_v0  ;;  %v85_v30 = vld [vmem:[%s6000_s2 + $0x58] sm:$0xff]  ;;  %v160_v32 = vld [vmem:[%s6000_s2 + $0x2b0] sm:$0xff]  ;;  %v166_v33 = vld [vmem:[%s6000_s2 + $0x2e0] sm:$0xff]  ;;  %v3481_v34 = vpack.c.bf16 %v164_v27, %v158_v26 }
  0x32   :  { %v3515_v35 = vpack.c.bf16 %v85_v30, %v79_v29  ;;  %v78_v36 = vld [vmem:[%s6000_s2 + $0x20] sm:$0xff]  ;;  %v84_v37 = vld [vmem:[%s6000_s2 + $0x50] sm:$0xff]  ;;  %v3513_v38 = vpack.c.bf16 %v166_v33, %v160_v32  ;;  %v91_v39 = vld [vmem:[%s6000_s2 + $0x88] sm:$0xff]  ;;  %v4340_v23 = vshrl.u32 %v1091_v20, 7 }
  0x33   :  { %3502 = vmatpush1.bf16.msra.mxu1 %v3501_v3  ;;  %v97_v40 = vld [vmem:[%s6000_s2 + $0xb8] sm:$0xff]  ;;  %v73_v41 = vld [vmem:[%s5998_s0] sm:$0xff]  ;;  %v3517_v42 = vpack.c.bf16 %v84_v37, %v78_v36  ;;  %v96_v45 = vld [vmem:[%s6000_s2 + $0xb0] sm:$0xff] }
  0x34   :  { %3504 = vmatprep.subr.bf16.mxu1 %v3503_v6  ;;  %3474 = vmatpush1.bf16.msra.mxu0 %v3473_v10  ;;  %v3519_v43 = vpack.c.bf16 %v97_v40, %v91_v39  ;;  %v90_v44 = vld [vmem:[%s6000_s2 + $0x80] sm:$0xff]  ;;  %v103_v46 = vld [vmem:[%s6000_s2 + $0xe8] sm:$0xff]  ;;  %v109_v47 = vld [vmem:[%s6000_s2 + $0x118] sm:$0xff]  ;;  %v1234_v24 = vsub.s32 3, %v4340_v23  ;;  %v1242_v26 = vsub.s32 5, %v4340_v23 }
  0x35   :  { %3476 = vmatprep.subr.bf16.mxu0 %v3475_v13  ;;  %v3521_v48 = vpack.c.bf16 %v96_v45, %v90_v44  ;;  %v3523_v49 = vpack.c.bf16 %v109_v47, %v103_v46  ;;  %v102_v50 = vld [vmem:[%s6000_s2 + $0xe0] sm:$0xff]  ;;  %v108_v51 = vld [vmem:[%s6000_s2 + $0x110] sm:$0xff]  ;;  %v115_v52 = vld [vmem:[%s6000_s2 + $0x148] sm:$0xff] }
  0x36   :  { %v121_v53 = vld [vmem:[%s6000_s2 + $0x178] sm:$0xff]  ;;  %v3525_v54 = vpack.c.bf16 %v108_v51, %v102_v50  ;;  %v114_v56 = vld [vmem:[%s6000_s2 + $0x140] sm:$0xff]  ;;  %v120_v57 = vld [vmem:[%s6000_s2 + $0x170] sm:$0xff] }
  0x37   :  { %3506 = vmatpush1.bf16.msra.mxu1 %v3505_v16  ;;  %v3527_v55 = vpack.c.bf16 %v121_v53, %v115_v52  ;;  %v127_v58 = vld [vmem:[%s6000_s2 + $0x1a8] sm:$0xff]  ;;  %v133_v59 = vld [vmem:[%s6000_s2 + $0x1d8] sm:$0xff]  ;;  %v3529_v60 = vpack.c.bf16 %v120_v57, %v114_v56  ;;  %v126_v62 = vld [vmem:[%s6000_s2 + $0x1a0] sm:$0xff] }
  0x38   :  { %3508 = vmatprep.subr.bf16.mxu1 %v3507_v19  ;;  %3478 = vmatpush1.bf16.msra.mxu0 %v3477_v22  ;;  %v3531_v61 = vpack.c.bf16 %v133_v59, %v127_v58  ;;  %v132_v63 = vld [vmem:[%s6000_s2 + $0x1d0] sm:$0xff]  ;;  %v139_v0 = vld [vmem:[%s6000_s2 + $0x208] sm:$0xff]  ;;  %v145_v1 = vld [vmem:[%s6000_s2 + $0x238] sm:$0xff]  ;;  %v3953_v22 = vmov 0  }
  0x39   :  { %3480 = vmatprep.subr.bf16.mxu0 %v3479_v25  ;;  %v3533_v2 = vpack.c.bf16 %v132_v63, %v126_v62  ;;  %v3535_v3 = vpack.c.bf16 %v145_v1, %v139_v0  ;;  %v138_v4 = vld [vmem:[%s6000_s2 + $0x200] sm:$0xff]  ;;  %v144_v5 = vld [vmem:[%s6000_s2 + $0x230] sm:$0xff]  ;;  %v151_v6 = vld [vmem:[%s6000_s2 + $0x268] sm:$0xff]  ;;  %3823 = vset.pattern.permute.xlu1 %v3953_v22  ;;  %v1238_v25 = vsub.s32 4, %v4340_v23 }
  0x3a   :  { %v157_v8 = vld [vmem:[%s6000_s2 + $0x298] sm:$0xff]  ;;  %v3537_v9 = vpack.c.bf16 %v144_v5, %v138_v4  ;;  %v150_v11 = vld [vmem:[%s6000_s2 + $0x260] sm:$0xff]  ;;  %v156_v12 = vld [vmem:[%s6000_s2 + $0x290] sm:$0xff]  ;;  %3824 = vset.pattern.permute.xlu0 %v3953_v22 }
  0x3b   :  { %3510 = vmatpush1.bf16.msra.mxu1 %v3509_v28  ;;  %v3539_v10 = vpack.c.bf16 %v157_v8, %v151_v6  ;;  %v163_v13 = vld [vmem:[%s6000_s2 + $0x2c8] sm:$0xff]  ;;  %v169_v14 = vld [vmem:[%s6000_s2 + $0x2f8] sm:$0xff]  ;;  %v3541_v15 = vpack.c.bf16 %v156_v12, %v150_v11  ;;  %v162_v17 = vld [vmem:[%s6000_s2 + $0x2c0] sm:$0xff] }
  0x3c   :  { %3512 = vmatprep.subr.bf16.mxu1 %v3511_v31  ;;  %3482 = vmatpush1.bf16.msra.mxu0 %v3481_v34  ;;  %v3543_v16 = vpack.c.bf16 %v169_v14, %v163_v13  ;;  %v168_v18 = vld [vmem:[%s6000_s2 + $0x2f0] sm:$0xff]  ;;  %s3952_s2 = smov 17   ;;  %v66_v21 = vld [vmem:[%s6001_s3] sm:$0x3f]  ;;  %s3954_s3 = smov 127  }
  0x3d   :  { %3516 = vmatprep.subr.bf16.mxu0 %v3515_v35  ;;  %v3545_v19 = vpack.c.bf16 %v168_v18, %v162_v17  ;;  %486 = vrot.lane.b32.xlu0 %v3948_v7, %s3952_s2  ;;  %vm67_vm1 = vcmp.gt.f32.partialorder %v66_v21, 0.5  ;;  %v799_v39 = vld [vmem:[%s6003_s5] sm:$0xff] }
  0x3e   :  { %v4345_v27 = vsel %vm67_vm1, 1, %v3953_v22 }
  0x3f   :  { %3514 = vmatpush1.bf16.msra.mxu1 %v3513_v38  ;;  %235 = vmatmul.mubr.f32.vlgmr.msra.gmra.mrb[0].mxu0 %v73_v41  ;;  %v4348_v28 = vrot.slane %v4345_v27, %v1234_v24  ;;  %v4351_v29 = vrot.slane %v4345_v27, %v1238_v25  ;;  %v4354_v30 = vrot.slane %v4345_v27, %v1242_v26  ;;  %v800_v38 = vld [vmem:[%s6003_s5 + $0x8] sm:$0x3] }
  0x40   :  { %3518 = vmatpush1.bf16.msra.mxu0 %v3517_v42  ;;  %376 = vmatprep.mubr.f32.mxu0 %v3948_v7 }
  0x41   :  { %3520 = vmatprep.subr.bf16.mxu0 %v3519_v43  ;;  %vm1247_vm15 = vcmp.eq.s32.totalorder %v4348_v28, 1  ;;  %vm6015_vm1 = vcmp.eq.s32.totalorder %v4351_v29, 1 }
  0x42   :  { %306 = vmatmul.mubr.f32.vlgmr.msra.gmra.mrb[0].mxu1 %v73_v41 }
  0x43   :  { %882 = vmatprep.mubr.f32.mxu1 %v3948_v7 }
  0x44   :  { %3522 = vmatpush1.bf16.msra.mxu0 %v3521_v48 }
  0x45   :  { %3524 = vmatprep.subr.bf16.mxu0 %v3523_v49 }
  0x48   :  { %3526 = vmatpush1.bf16.msra.mxu0 %v3525_v54 }
  0x49   :  { %3528 = vmatprep.subr.bf16.mxu0 %v3527_v55 }
  0x4c   :  { %3530 = vmatpush1.bf16.msra.mxu0 %v3529_v60 }
  0x4d   :  { %3532 = vmatprep.subr.bf16.mxu0 %v3531_v61 }
  0x50   :  { %3534 = vmatpush1.bf16.msra.mxu0 %v3533_v2 }
  0x51   :  { %3536 = vmatprep.subr.bf16.mxu0 %v3535_v3 }
  0x54   :  { %3538 = vmatpush1.bf16.msra.mxu0 %v3537_v9 }
  0x55   :  { %3540 = vmatprep.subr.bf16.mxu0 %v3539_v10 }
  0x58   :  { %3542 = vmatpush1.bf16.msra.mxu0 %v3541_v15 }
  0x59   :  { %3544 = vmatprep.subr.bf16.mxu0 %v3543_v16 }
  0x5c   :  { %3546 = vmatpush1.bf16.msra.mxu0 %v3545_v19 }
  0x5f   :  { %377 = vmatmul.mubr.f32.vlgmr.msra.gmra.mrb[2].mxu0 %v73_v41 }
  0x60   :  { %1036 = vmatprep.mubr.f32.mxu0 %v3948_v7 }
  0x90   :  { %v445_v40 = vpop.permute.xlu1 %444 }
  0x91   :  { %v403_v41 = vpop.permute.xlu0 %402 }
  0x94   :  { %v531_v42 = vpop.permute.xlu1 %530 }
  0xaf   :  { %v487_v43 = vpop.permute.xlu0 %486 }
 0x112   :  { %v4356_v31 = vpop.f32.mrb[0].mxu0 }
 0x113   :  { %1618 = vst [vmem:[#allocation3 + $0x1b0] sm:$0xff] %v4356_v31  ;;  %v4359_v32 = vpop.f32.mrb[1].mxu0  ;;  %446 = vrot.lane.b32.xlu1 %v4356_v31, %s3949_s22  ;;  %404 = vrot.lane.b32.xlu0 %v4356_v31, %s3950_s23 }
 0x114   :  { %1619 = vst [vmem:[#allocation3 + $0x1b8] sm:$0xff] %v4359_v32 }
 0x115   :  { %v4366_v33 = vpop.f32.mrb[0].mxu1 }
 0x116   :  { %1620 = vst [vmem:[#allocation3 + $0x1c0] sm:$0xff] %v4366_v33  ;;  %v4369_v34 = vpop.f32.mrb[1].mxu1 }
 0x117   :  { %386 = vst [vmem:[#allocation2 + $0x58] sm:$0xff] %v4369_v34  ;;  %1621 = vst [vmem:[#allocation3 + $0x1c8] sm:$0xff] %v4369_v34  ;;  %591 = vrot.lane.b32.xlu1 %v4366_v33, %s3954_s3  ;;  %488 = vrot.lane.b32.xlu0 %v4356_v31, %s3952_s2 }
 0x11b   :  { %629 = vrot.lane.b32.xlu1 %v4356_v31, %s3955_s27  ;;  %532 = vrot.lane.b32.xlu0 %v4356_v31, %s3951_s24 }
 0x11f   :  { %713 = vrot.lane.b32.xlu1 %v4356_v31, %s3956_s28  ;;  %587 = vrot.lane.b32.xlu0 %v4356_v31, %s3954_s3 }
 0x123   :  { %448 = vrot.lane.b32.xlu1 %v4359_v32, %s3949_s22  ;;  %633 = vrot.lane.b32.xlu0 %v4366_v33, %s3955_s27 }
 0x127   :  { %490 = vrot.lane.b32.xlu1 %v4359_v32, %s3952_s2  ;;  %675 = vrot.lane.b32.xlu0 %v4366_v33, %s3957_s29 }
 0x12b   :  { %534 = vrot.lane.b32.xlu1 %v4359_v32, %s3951_s24  ;;  %671 = vrot.lane.b32.xlu0 %v4356_v31, %s3957_s29 }
 0x12f   :  { %631 = vrot.lane.b32.xlu1 %v4359_v32, %s3955_s27  ;;  %717 = vrot.lane.b32.xlu0 %v4366_v33, %s3956_s28 }
 0x132   :  { %v4401_v35 = vpop.f32.mrb[2].mxu0 }
 0x133   :  { %673 = vrot.lane.b32.xlu1 %v4359_v32, %s3957_s29  ;;  %406 = vrot.lane.b32.xlu0 %v4359_v32, %s3950_s23  ;;  %387 = vst [vmem:[#allocation2 + $0x60] sm:$0xff] %v4401_v35  ;;  %1622 = vst [vmem:[#allocation3 + $0x1d0] sm:$0xff] %v4401_v35  ;;  %v380_v36 = vpop.f32.mrb[3].mxu0 }
 0x134   :  { %389 = vst.msk [vmem:[#allocation2 + $0x68] sm:$0xff] %vm388_vm2, %v380_v36 }
 0x137   :  { %715 = vrot.lane.b32.xlu1 %v4359_v32, %s3956_s28  ;;  %408 = vrot.lane.b32.xlu0 %v4366_v33, %s3950_s23 }
 0x13b   :  { %410 = vrot.lane.b32.xlu1 %v4369_v34, %s3950_s23  ;;  %589 = vrot.lane.b32.xlu0 %v4359_v32, %s3954_s3  ;;  %v4418_v37 = vld [vmem:[#allocation2 + $0x68] sm:$0xff] }
 0x13c   :  { %574 = vst.msk [vmem:[#allocation3 + $0xe8] sm:$0xff] %vm388_vm2, %v4418_v37  ;;  %1623 = vst.msk [vmem:[#allocation3 + $0x1d8] sm:$0xff] %vm388_vm2, %v4418_v37 }
 0x13f   :  { %452 = vrot.lane.b32.xlu1 %v4369_v34, %s3949_s22  ;;  %450 = vrot.lane.b32.xlu0 %v4366_v33, %s3949_s22 }
 0x143   :  { %494 = vrot.lane.b32.xlu1 %v4369_v34, %s3952_s2  ;;  %492 = vrot.lane.b32.xlu0 %v4366_v33, %s3952_s2 }
 0x147   :  { %538 = vrot.lane.b32.xlu1 %v4369_v34, %s3951_s24  ;;  %536 = vrot.lane.b32.xlu0 %v4366_v33, %s3951_s24 }
 0x14b   :  { %595 = vrot.lane.b32.xlu1 %v4401_v35, %s3954_s3  ;;  %593 = vrot.lane.b32.xlu0 %v4369_v34, %s3954_s3 }
 0x14f   :  { %637 = vrot.lane.b32.xlu1 %v4401_v35, %s3955_s27  ;;  %635 = vrot.lane.b32.xlu0 %v4369_v34, %s3955_s27 }
 0x153   :  { %679 = vrot.lane.b32.xlu1 %v4401_v35, %s3957_s29  ;;  %677 = vrot.lane.b32.xlu0 %v4369_v34, %s3957_s29 }
 0x157   :  { %721 = vrot.lane.b32.xlu1 %v4401_v35, %s3956_s28  ;;  %719 = vrot.lane.b32.xlu0 %v4369_v34, %s3956_s28 }
 0x15b   :  { %454 = vrot.lane.b32.xlu1 %v4401_v35, %s3949_s22  ;;  %412 = vrot.lane.b32.xlu0 %v4401_v35, %s3950_s23 }
 0x15f   :  { %542 = vrot.lane.b32.xlu1 %v4418_v37, %s3951_s24  ;;  %540 = vrot.lane.b32.xlu0 %v4401_v35, %s3951_s24 }
 0x163   :  { %597 = vrot.lane.b32.xlu1 %v4418_v37, %s3954_s3  ;;  %496 = vrot.lane.b32.xlu0 %v4401_v35, %s3952_s2 }
 0x167   :  { %681 = vrot.lane.b32.xlu1 %v4418_v37, %s3957_s29  ;;  %639 = vrot.lane.b32.xlu0 %v4418_v37, %s3955_s27 }
 0x16b   :  { %808 = vperm.xlu1 %3823, %v800_v38   ;;  %723 = vrot.lane.b32.xlu0 %v4418_v37, %s3956_s28 }
 0x16f   :  { %1302 = vrot.lane.b32.xlu1 %v4359_v32, %s3950_s23  ;;  %803 = vperm.xlu0 %3824, %v799_v39  }
 0x173   :  { %1382 = vrot.lane.b32.xlu1 %v4356_v31, %s3949_s22  ;;  %1300 = vrot.lane.b32.xlu0 %v4356_v31, %s3950_s23 }
 0x177   :  { %3831 = vrot.lane.b32.xlu1 %v3948_v7, %s3949_s22  ;;  %3826 = vrot.lane.b32.xlu0 %v3948_v7, %s3950_s23 }
 0x17b   :  { %1466 = vrot.lane.b32.xlu1 %v4359_v32, %s3952_s2  ;;  %1384 = vrot.lane.b32.xlu0 %v4359_v32, %s3949_s22 }
 0x17f   :  { %1552 = vrot.lane.b32.xlu1 %v4356_v31, %s3951_s24  ;;  %1464 = vrot.lane.b32.xlu0 %v4356_v31, %s3952_s2 }
 0x183   :  { %3841 = vrot.lane.b32.xlu1 %v3948_v7, %s3951_s24  ;;  %3836 = vrot.lane.b32.xlu0 %v3948_v7, %s3952_s2 }
 0x185   :  { %v447_v44 = vpop.permute.xlu1 %446  ;;  %v405_v45 = vpop.permute.xlu0 %404 }
 0x186   :  { %v457_v60 = vsel %vm456_vm3, %v445_v40, %v447_v44  ;;  %v415_v61 = vsel %vm414_vm4, %v403_v41, %v405_v45  ;;  %v4609_v41 = vld [vmem:[%s6002_s4] sm:$0xff] }
 0x187   :  { %1664 = vrot.lane.b32.xlu1 %v4366_v33, %s3954_s3  ;;  %1554 = vrot.lane.b32.xlu0 %v4359_v32, %s3951_s24  ;;  %v3549_v4 = vpack.c.bf16 %v457_v60, %v415_v61 }
 0x189   :  { %v4502_v46 = vpop.permute.xlu1 %591  ;;  %v489_v47 = vpop.permute.xlu0 %488 }
 0x18a   :  { %v499_v11 = vsel %vm498_vm6, %v487_v43, %v489_v47 }
 0x18b   :  { %1306 = vrot.lane.b32.xlu1 %v4369_v34, %s3950_s23  ;;  %1662 = vrot.lane.b32.xlu0 %v4359_v32, %s3954_s3 }
 0x18d   :  { %v4508_v48 = vpop.permute.xlu1 %629  ;;  %v533_v49 = vpop.permute.xlu0 %532 }
 0x18e   :  { %v545_v5 = vsel %vm544_vm5, %v531_v42, %v533_v49 }
 0x18f   :  { %1660 = vrot.lane.b32.xlu1 %v4356_v31, %s3954_s3  ;;  %1304 = vrot.lane.b32.xlu0 %v4366_v33, %s3950_s23  ;;  %v3553_v12 = vpack.c.bf16 %v545_v5, %v499_v11 }
 0x191   :  { %v4514_v50 = vpop.permute.xlu1 %713  ;;  %v588_v51 = vpop.permute.xlu0 %587 }
 0x193   :  { %1746 = vrot.lane.b32.xlu1 %v4366_v33, %s3955_s27  ;;  %1744 = vrot.lane.b32.xlu0 %v4359_v32, %s3955_s27 }
 0x195   :  { %v4520_v52 = vpop.permute.xlu1 %448  ;;  %v4522_v53 = vpop.permute.xlu0 %633 }
 0x196   :  { %v458_v0 = vsel %vm456_vm3, %v447_v44, %v4520_v52 }
 0x197   :  { %1388 = vrot.lane.b32.xlu1 %v4369_v34, %s3949_s22  ;;  %1386 = vrot.lane.b32.xlu0 %v4366_v33, %s3949_s22 }
 0x199   :  { %v4528_v54 = vpop.permute.xlu1 %490  ;;  %v4530_v55 = vpop.permute.xlu0 %675 }
 0x19a   :  { %v500_v6 = vsel %vm498_vm6, %v489_v47, %v4528_v54 }
 0x19b   :  { %1742 = vrot.lane.b32.xlu1 %v4356_v31, %s3955_s27  ;;  %1826 = vrot.lane.b32.xlu0 %v4359_v32, %s3957_s29 }
 0x19d   :  { %v4536_v56 = vpop.permute.xlu1 %534  ;;  %v672_v57 = vpop.permute.xlu0 %671 }
 0x19e   :  { %v546_v2 = vsel %vm544_vm5, %v533_v49, %v4536_v56 }
 0x19f   :  { %1828 = vrot.lane.b32.xlu1 %v4366_v33, %s3957_s29  ;;  %1468 = vrot.lane.b32.xlu0 %v4366_v33, %s3952_s2  ;;  %v3551_v10 = vpack.c.bf16 %v546_v2, %v500_v6 }
 0x1a1   :  { %v632_v58 = vpop.permute.xlu1 %631  ;;  %v4542_v59 = vpop.permute.xlu0 %717 }
 0x1a2   :  { %v643_v20 = vsel %vm641_vm9, %v632_v58, %v4522_v53  ;;  %v642_v26 = vsel %vm641_vm9, %v4508_v48, %v632_v58  ;;  %v4633_v58 = vld [vmem:[%s6002_s4 + $0x8] sm:$0x3]  ;;  %s1157_s4 = sld [smem:[#allocation4]] }
 0x1a3   :  { %1470 = vrot.lane.b32.xlu1 %v4369_v34, %s3952_s2  ;;  %1908 = vrot.lane.b32.xlu0 %v4359_v32, %s3956_s28 }
 0x1a5   :  { %v674_v62 = vpop.permute.xlu1 %673  ;;  %v4550_v63 = vpop.permute.xlu0 %406 }
 0x1a6   :  { %v416_v1 = vsel %vm414_vm4, %v405_v45, %v4550_v63  ;;  %v685_v17 = vsel %vm683_vm8, %v674_v62, %v4530_v55  ;;  %v684_v21 = vsel %vm683_vm8, %v672_v57, %v674_v62 }
 0x1a7   :  { %1824 = vrot.lane.b32.xlu1 %v4356_v31, %s3957_s29  ;;  %1556 = vrot.lane.b32.xlu0 %v4366_v33, %s3951_s24  ;;  %v3547_v3 = vpack.c.bf16 %v458_v0, %v416_v1  ;;  %v3559_v25 = vpack.c.bf16 %v685_v17, %v643_v20 }
 0x1a9   :  { %v716_v8 = vpop.permute.xlu1 %715  ;;  %v409_v9 = vpop.permute.xlu0 %408  ;;  %3548 = vmatprep.subr.bf16.mxu1 %v3547_v3 }
 0x1aa   :  { %3550 = vmatpush1.bf16.msra.mxu1 %v3549_v4  ;;  %v727_v39 = vsel %vm725_vm10, %v716_v8, %v4542_v59  ;;  %v726_v42 = vsel %vm725_vm10, %v4514_v50, %v716_v8  ;;  %v417_v47 = vsel %vm414_vm4, %v4550_v63, %v409_v9 }
 0x1ab   :  { %1910 = vrot.lane.b32.xlu1 %v4366_v33, %s3956_s28  ;;  %1666 = vrot.lane.b32.xlu0 %v4369_v34, %s3954_s3 }
 0x1ac   :  { %3552 = vmatprep.subr.bf16.mxu1 %v3551_v10 }
 0x1ad   :  { %v4570_v13 = vpop.permute.xlu1 %410  ;;  %v590_v14 = vpop.permute.xlu0 %589 }
 0x1ae   :  { %v600_v15 = vsel %vm599_vm7, %v588_v51, %v590_v14  ;;  %v601_v16 = vsel %vm599_vm7, %v590_v14, %v4502_v46  ;;  %3554 = vmatpush1.bf16.msra.mxu1 %v3553_v12  ;;  %v418_v43 = vsel %vm414_vm4, %v409_v9, %v4570_v13 }
 0x1af   :  { %1558 = vrot.lane.b32.xlu1 %v4369_v34, %s3951_s24  ;;  %1748 = vrot.lane.b32.xlu0 %v4369_v34, %s3955_s27  ;;  %v3555_v18 = vpack.c.bf16 %v601_v16, %v4359_v32  ;;  %v3557_v19 = vpack.c.bf16 %v600_v15, %v4356_v31  ;;  %v3561_v32 = vpack.c.bf16 %v684_v21, %v642_v26 }
 0x1b1   :  { %v4586_v22 = vpop.permute.xlu1 %452  ;;  %v451_v24 = vpop.permute.xlu0 %450  ;;  %3556 = vmatprep.subr.bf16.mxu1 %v3555_v18 }
 0x1b2   :  { %3558 = vmatpush1.bf16.msra.mxu1 %v3557_v19  ;;  %v460_v40 = vsel %vm456_vm3, %v451_v24, %v4586_v22 }
 0x1b3   :  { %1906 = vrot.lane.b32.xlu1 %v4356_v31, %s3956_s28  ;;  %1830 = vrot.lane.b32.xlu0 %v4369_v34, %s3957_s29  ;;  %v459_v31 = vsel %vm456_vm3, %v4520_v52, %v451_v24  ;;  %v3563_v51 = vpack.c.bf16 %v460_v40, %v418_v43  ;;  %v774_v43 = vld [vmem:[#allocation3 + $0xe8] sm:$0xff] }
 0x1b4   :  { %3560 = vmatprep.subr.bf16.mxu1 %v3559_v25  ;;  %v3565_v50 = vpack.c.bf16 %v459_v31, %v417_v47 }
 0x1b5   :  { %v4594_v36 = vpop.permute.xlu1 %494  ;;  %v493_v38 = vpop.permute.xlu0 %492 }
 0x1b6   :  { %3562 = vmatpush1.bf16.msra.mxu1 %v3561_v32  ;;  %v502_v48 = vsel %vm498_vm6, %v493_v38, %v4594_v36  ;;  %v501_v62 = vsel %vm498_vm6, %v4528_v54, %v493_v38 }
 0x1b7   :  { %1308 = vrot.lane.b32.xlu1 %v4401_v35, %s3950_s23  ;;  %1560 = vrot.lane.b32.xlu0 %v4401_v35, %s3951_s24 }
 0x1b8   :  { %834 = vmatprep.subr.mxu1 %v727_v39 }
 0x1b9   :  { %v4615_v44 = vpop.permute.xlu1 %538  ;;  %v537_v45 = vpop.permute.xlu0 %536 }
 0x1ba   :  { %v548_v49 = vsel %vm544_vm5, %v537_v45, %v4615_v44  ;;  %835 = vmatpush1.msra.mxu1 %v726_v42  ;;  %v547_v57 = vsel %vm544_vm5, %v4536_v56, %v537_v45 }
 0x1bb   :  { %1668 = vrot.lane.b32.xlu1 %v4401_v35, %s3954_s3  ;;  %3431 = vmatmul.mubr.msk.f32.vlgmr.msra.gmra.mrb[2].mxu1 %vm811_vm11, %v4609_v41  ;;  %v3567_v52 = vpack.c.bf16 %v548_v49, %v502_v48  ;;  %v3569_v56 = vpack.c.bf16 %v547_v57, %v501_v62 }
 0x1bc   :  { %3564 = vmatprep.subr.bf16.mxu1 %v3563_v51  ;;  %888 = vmatprep.mubr.f32.mxu1 %v3948_v7 }
 0x1bd   :  { %v4635_v60 = vpop.permute.xlu1 %595  ;;  %v594_v61 = vpop.permute.xlu0 %593  ;;  %3566 = vmatpush1.bf16.msra.mxu1 %v3565_v50 }
 0x1be   :  { %v603_v63 = vsel %vm599_vm7, %v594_v61, %v4635_v60  ;;  %3568 = vmatprep.subr.bf16.mxu1 %v3567_v52  ;;  %v602_v1 = vsel %vm599_vm7, %v4502_v46, %v594_v61 }
 0x1bf   :  { %1390 = vrot.lane.b32.xlu1 %v4401_v35, %s3949_s22  ;;  %3432 = vmatmul.mubr.msk.f32.gmra.mrb[4].mxu1 %vm811_vm11, %v4633_v58  ;;  %v3571_v0 = vpack.c.bf16 %v603_v63, %v4369_v34  ;;  %v3573_v3 = vpack.c.bf16 %v602_v1, %v4366_v33  ;;  %v3889_v63 = vld [vmem:[#allocation2] sm:$0xff] }
 0x1c0   :  { %959 = vmatprep.mubr.f32.mxu1 %v3948_v7 }
 0x1c1   :  { %v4649_v2 = vpop.permute.xlu1 %637  ;;  %v636_v54 = vpop.permute.xlu0 %635  ;;  %3570 = vmatpush1.bf16.msra.mxu1 %v3569_v56 }
 0x1c2   :  { %3572 = vmatprep.subr.bf16.mxu1 %v3571_v0  ;;  %v644_v34 = vsel %vm641_vm9, %v4522_v53, %v636_v54  ;;  %v645_v46 = vsel %vm641_vm9, %v636_v54, %v4649_v2 }
 0x1c3   :  { %1750 = vrot.lane.b32.xlu1 %v4401_v35, %s3955_s27 }
 0x1c5   :  { %v4654_v4 = vpop.permute.xlu1 %679  ;;  %v678_v5 = vpop.permute.xlu0 %677  ;;  %3574 = vmatpush1.bf16.msra.mxu1 %v3573_v3 }
 0x1c6   :  { %v686_v6 = vsel %vm683_vm8, %v4530_v55, %v678_v5  ;;  %v687_v8 = vsel %vm683_vm8, %v678_v5, %v4654_v4 }
 0x1c7   :  { %1472 = vrot.lane.b32.xlu1 %v4401_v35, %s3952_s2  ;;  %v3575_v33 = vpack.c.bf16 %v687_v8, %v645_v46  ;;  %v3577_v9 = vpack.c.bf16 %v686_v6, %v644_v34 }
 0x1c9   :  { %v4666_v10 = vpop.permute.xlu1 %721  ;;  %v720_v11 = vpop.permute.xlu0 %719  ;;  %3576 = vmatprep.subr.bf16.mxu1 %v3575_v33 }
 0x1ca   :  { %v729_v53 = vsel %vm725_vm10, %v720_v11, %v4666_v10  ;;  %3578 = vmatpush1.bf16.msra.mxu1 %v3577_v9  ;;  %v728_v55 = vsel %vm725_vm10, %v4542_v59, %v720_v11 }
 0x1cb   :  { %1832 = vrot.lane.b32.xlu1 %v4401_v35, %s3957_s29  ;;  %911 = vmatprep.subr.mxu1 %v729_v53 }
 0x1cd   :  { %v455_v12 = vpop.permute.xlu1 %454  ;;  %v413_v14 = vpop.permute.xlu0 %412 }
 0x1ce   :  { %473 = vst.msk [vmem:[#allocation3 + $0x58] sm:$0xff] %vm388_vm2, %v455_v12  ;;  %431 = vst.msk [vmem:[#allocation3 + $0x28] sm:$0xff] %vm388_vm2, %v413_v14  ;;  %912 = vmatpush1.msra.mxu1 %v728_v55  ;;  %v461_v59 = vsel %vm456_vm3, %v4586_v22, %v455_v12 }
 0x1cf   :  { %1562 = vrot.lane.b32.xlu1 %v4418_v37, %s3951_s24  ;;  %3433 = vmatmul.mubr.msk.f32.vlgmr.msra.gmra.mrb[6].mxu1 %vm811_vm11, %v4609_v41  ;;  %v419_v37 = vsel %vm414_vm4, %v4570_v13, %v413_v14 }
 0x1d0   :  { %965 = vmatprep.mubr.f32.mxu1 %v3948_v7  ;;  %v3581_v24 = vpack.c.bf16 %v461_v59, %v419_v37 }
 0x1d1   :  { %v543_v15 = vpop.permute.xlu1 %542  ;;  %v541_v16 = vpop.permute.xlu0 %540 }
 0x1d2   :  { %v550_v17 = vsel %vm544_vm5, %v541_v16, %v543_v15  ;;  %v549_v40 = vsel %vm544_vm5, %v4615_v44, %v541_v16 }
 0x1d3   :  { %562 = vst.msk [vmem:[#allocation3 + $0xb8] sm:$0xff] %vm388_vm2, %v550_v17  ;;  %3434 = vmatmul.mubr.msk.f32.gmra.mrb[8].mxu1 %vm811_vm11, %v4633_v58 }
 0x1d5   :  { %v598_v18 = vpop.permute.xlu1 %597  ;;  %v497_v19 = vpop.permute.xlu0 %496  ;;  %v750_v20 = vld [vmem:[#allocation3 + $0x28] sm:$0xff]  ;;  %v756_v21 = vld [vmem:[#allocation3 + $0x58] sm:$0xff] }
 0x1d6   :  { %616 = vst.msk [vmem:[#allocation3 + $0x118] sm:$0xff] %vm388_vm2, %v598_v18  ;;  %515 = vst.msk [vmem:[#allocation3 + $0x88] sm:$0xff] %vm388_vm2, %v497_v19  ;;  %v3579_v7 = vpack.c.bf16 %v756_v21, %v750_v20  ;;  %v503_v13 = vsel %vm498_vm6, %v4594_v36, %v497_v19  ;;  %v604_v45 = vsel %vm599_vm7, %v4635_v60, %v598_v18 }
 0x1d7   :  { %v3585_v42 = vpack.c.bf16 %v549_v40, %v503_v13  ;;  %v3589_v49 = vpack.c.bf16 %v604_v45, %v4401_v35 }
 0x1d8   :  { %3580 = vmatprep.subr.bf16.mxu0 %v3579_v7 }
 0x1d9   :  { %v682_v25 = vpop.permute.xlu1 %681  ;;  %3582 = vmatpush1.bf16.msra.mxu0 %v3581_v24  ;;  %v640_v26 = vpop.permute.xlu0 %639 }
 0x1da   :  { %700 = vst.msk [vmem:[#allocation3 + $0x178] sm:$0xff] %vm388_vm2, %v682_v25  ;;  %658 = vst.msk [vmem:[#allocation3 + $0x148] sm:$0xff] %vm388_vm2, %v640_v26  ;;  %v768_v38 = vld [vmem:[#allocation3 + $0xb8] sm:$0xff]  ;;  %v688_v51 = vsel %vm683_vm8, %v4654_v4, %v682_v25  ;;  %v646_v44 = vsel %vm641_vm9, %v4649_v2, %v640_v26 }
 0x1db   :  { %v3593_v52 = vpack.c.bf16 %v688_v51, %v646_v44 }
 0x1dd   :  { %v724_v22 = vpop.permute.xlu0 %723  ;;  %v762_v32 = vld [vmem:[#allocation3 + $0x88] sm:$0xff]  ;;  %v780_v39 = vld [vmem:[#allocation3 + $0x118] sm:$0xff] }
 0x1de   :  { %742 = vst.msk [vmem:[#allocation3 + $0x1a8] sm:$0xff] %vm388_vm2, %v724_v22  ;;  %v3583_v31 = vpack.c.bf16 %v768_v38, %v762_v32  ;;  %v3587_v47 = vpack.c.bf16 %v780_v39, %v774_v43  ;;  %v730_v61 = vsel %vm725_vm10, %v4666_v10, %v724_v22 }
 0x1e0   :  { %3584 = vmatprep.subr.bf16.mxu0 %v3583_v31 }
 0x1e1   :  { %3586 = vmatpush1.bf16.msra.mxu0 %v3585_v42  ;;  %v786_v48 = vld [vmem:[#allocation3 + $0x148] sm:$0xff]  ;;  %v792_v36 = vld [vmem:[#allocation3 + $0x178] sm:$0xff] }
 0x1e2   :  { %3588 = vmatprep.subr.bf16.mxu0 %v3587_v47  ;;  %v3591_v50 = vpack.c.bf16 %v792_v36, %v786_v48 }
 0x1e5   :  { %3590 = vmatpush1.bf16.msra.mxu0 %v3589_v49  ;;  %v798_v57 = vld [vmem:[#allocation3 + $0x1a8] sm:$0xff] }
 0x1e6   :  { %3592 = vmatprep.subr.bf16.mxu0 %v3591_v50 }
 0x1e9   :  { %3594 = vmatpush1.bf16.msra.mxu0 %v3593_v52 }
 0x1ea   :  { %v4705_v60 = vpop.permute.xlu1 %808  ;;  %988 = vmatprep.subr.mxu0 %v798_v57 }
 0x1ed   :  { %989 = vmatpush1.msra.mxu0 %v730_v61 }
 0x1ee   :  { %v4709_v35 = vpop.permute.xlu1 %1302  ;;  %3435 = vmatmul.mubr.msk.f32.vlgmr.msra.gmra.mrb[4].mxu0 %vm811_vm11, %v4609_v41  ;;  %v4713_v62 = vpop.permute.xlu0 %803 }
 0x1ef   :  { %1042 = vmatprep.mubr.f32.mxu0 %v3889_v63 }
 0x1f2   :  { %v4715_v56 = vpop.permute.xlu1 %1382  ;;  %3436 = vmatmul.mubr.msk.f32.gmra.mrb[6].mxu0 %vm811_vm11, %v4633_v58  ;;  %v4719_v0 = vpop.permute.xlu0 %1300  ;;  %vm6014_vm11 = vcmp.eq.s32.totalorder %v4354_v30, 1 }
 0x1f6   :  { %v4721_v1 = vpop.permute.xlu1 %3831  ;;  %v4723_v2 = vpop.permute.xlu0 %3826 }
 0x1fa   :  { %v4725_v54 = vpop.permute.xlu1 %1466  ;;  %v4727_v3 = vpop.permute.xlu0 %1384 }
 0x1fe   :  { %v4729_v41 = vpop.permute.xlu1 %1552  ;;  %v4731_v4 = vpop.permute.xlu0 %1464 }
 0x202   :  { %v4733_v5 = vpop.permute.xlu1 %3841  ;;  %v4735_v34 = vpop.permute.xlu0 %3836 }
 0x206   :  { %v4737_v46 = vpop.permute.xlu1 %1664  ;;  %v4739_v58 = vpop.permute.xlu0 %1554 }
 0x20a   :  { %v4741_v6 = vpop.permute.xlu1 %1306  ;;  %v4743_v8 = vpop.permute.xlu0 %1662 }
 0x20e   :  { %v4745_v33 = vpop.permute.xlu1 %1660  ;;  %v4747_v9 = vpop.permute.xlu0 %1304 }
 0x212   :  { %v4749_v10 = vpop.permute.xlu1 %1746  ;;  %v4751_v11 = vpop.permute.xlu0 %1744 }
 0x216   :  { %v4753_v53 = vpop.permute.xlu1 %1388  ;;  %v4755_v55 = vpop.permute.xlu0 %1386 }
 0x217   :  { %v1399_v12 = vsel %vm456_vm3, %v4727_v3, %v4755_v55 }
 0x218   :  { %1422 = vst [vmem:[#allocation3 + $0xa0] sm:$0xff] %v1399_v12 }
 0x21a   :  { %v4760_v14 = vpop.permute.xlu1 %1742  ;;  %v4762_v15 = vpop.permute.xlu0 %1826 }
 0x21e   :  { %v4764_v16 = vpop.permute.xlu1 %1828  ;;  %v1469_v17 = vpop.permute.xlu0 %1468 }
 0x21f   :  { %v1481_v59 = vsel %vm498_vm6, %v4725_v54, %v1469_v17 }
 0x220   :  { %1504 = vst [vmem:[#allocation3 + $0x100] sm:$0xff] %v1481_v59 }
 0x222   :  { %v1471_v37 = vpop.permute.xlu1 %1470  ;;  %v4768_v18 = vpop.permute.xlu0 %1908 }
 0x223   :  { %v1482_v19 = vsel %vm498_vm6, %v1469_v17, %v1471_v37 }
 0x224   :  { %1505 = vst [vmem:[#allocation3 + $0x108] sm:$0xff] %v1482_v19 }
 0x226   :  { %v4771_v20 = vpop.permute.xlu1 %1824  ;;  %v1557_v21 = vpop.permute.xlu0 %1556 }
 0x227   :  { %v1572_v7 = vsel %vm544_vm5, %v4739_v58, %v1557_v21 }
 0x228   :  { %1596 = vst [vmem:[#allocation3 + $0x160] sm:$0xff] %v1572_v7 }
 0x22a   :  { %v4775_v24 = vpop.permute.xlu1 %1910  ;;  %v1667_v25 = vpop.permute.xlu0 %1666 }
 0x22b   :  { %v1679_v26 = vsel %vm599_vm7, %v4737_v46, %v1667_v25 }
 0x22c   :  { %1702 = vst [vmem:[#allocation3 + $0x220] sm:$0xff] %v1679_v26 }
 0x22e   :  { %v1559_v13 = vpop.permute.xlu1 %1558  ;;  %v1749_v22 = vpop.permute.xlu0 %1748 }
 0x22f   :  { %v1573_v32 = vsel %vm544_vm5, %v1557_v21, %v1559_v13  ;;  %v1761_v38 = vsel %vm641_vm9, %v4749_v10, %v1749_v22 }
 0x230   :  { %1597 = vst [vmem:[#allocation3 + $0x168] sm:$0xff] %v1573_v32  ;;  %1784 = vst [vmem:[#allocation3 + $0x280] sm:$0xff] %v1761_v38 }
 0x232   :  { %v4782_v39 = vpop.permute.xlu1 %1906  ;;  %v1831_v40 = vpop.permute.xlu0 %1830 }
 0x233   :  { %6022 = vst [vmem:[#allocation10_spill] sm:$0xff] %v4782_v39  ;;  %v1843_v31 = vsel %vm683_vm8, %v4764_v16, %v1831_v40 }
 0x234   :  { %1866 = vst [vmem:[#allocation3 + $0x2e0] sm:$0xff] %v1843_v31 }
 0x236   :  { %v1309_v42 = vpop.permute.xlu1 %1308  ;;  %v1561_v43 = vpop.permute.xlu0 %1560 }
 0x237   :  { %v1319_v45 = vsel %vm414_vm4, %v4741_v6, %v1309_v42  ;;  %1343 = vst.msk [vmem:[#allocation3 + $0x58] sm:$0xff] %vm388_vm2, %v1309_v42  ;;  %v1574_v47 = vsel %vm544_vm5, %v1559_v13, %v1561_v43 }
 0x238   :  { %1342 = vst [vmem:[#allocation3 + $0x50] sm:$0xff] %v1319_v45  ;;  %1598 = vst [vmem:[#allocation3 + $0x170] sm:$0xff] %v1574_v47 }
 0x23a   :  { %v4790_v48 = vpop.permute.xlu1 %1668 }
 0x23b   :  { %6023 = vst [vmem:[#allocation11_spill] sm:$0xff] %v4790_v48  ;;  %v1680_v36 = vsel %vm599_vm7, %v1667_v25, %v4790_v48 }
 0x23c   :  { %1703 = vst [vmem:[#allocation3 + $0x228] sm:$0xff] %v1680_v36 }
 0x23e   :  { %v1391_v49 = vpop.permute.xlu1 %1390 }
 0x23f   :  { %v1401_v51 = vsel %vm456_vm3, %v4753_v53, %v1391_v49  ;;  %1425 = vst.msk [vmem:[#allocation3 + $0xb8] sm:$0xff] %vm388_vm2, %v1391_v49 }
 0x240   :  { %1424 = vst [vmem:[#allocation3 + $0xb0] sm:$0xff] %v1401_v51 }
 0x242   :  { %v4797_v44 = vpop.permute.xlu1 %1750 }
 0x243   :  { %6024 = vst [vmem:[#allocation12_spill] sm:$0xff] %v4797_v44  ;;  %v1762_v50 = vsel %vm641_vm9, %v1749_v22, %v4797_v44  ;;  %v4812_v22 = vsub.s32 0, %v4340_v23 }
 0x244   :  { %1785 = vst [vmem:[#allocation3 + $0x288] sm:$0xff] %v1762_v50 }
 0x246   :  { %v1473_v52 = vpop.permute.xlu1 %1472 }
 0x247   :  { %v1483_v57 = vsel %vm498_vm6, %v1471_v37, %v1473_v52  ;;  %1507 = vst.msk [vmem:[#allocation3 + $0x118] sm:$0xff] %vm388_vm2, %v1473_v52 }
 0x248   :  { %1506 = vst [vmem:[#allocation3 + $0x110] sm:$0xff] %v1483_v57 }
 0x24a   :  { %v4803_v61 = vpop.permute.xlu1 %1832 }
 0x24b   :  { %6025 = vst [vmem:[#allocation13_spill] sm:$0xff] %v4803_v61  ;;  %v1844_v63 = vsel %vm683_vm8, %v1831_v40, %v4803_v61 }
 0x24c   :  { %1867 = vst [vmem:[#allocation3 + $0x2e8] sm:$0xff] %v1844_v63 }
 0x24e   :  { %v1563_v12 = vpop.permute.xlu1 %1562 }
 0x24f   :  { %v1575_v17 = vsel %vm544_vm5, %v1561_v43, %v1563_v12 }
 0x250   :  { %1599 = vst.msk [vmem:[#allocation3 + $0x178] sm:$0xff] %vm388_vm2, %v1575_v17 }
 0x28e   :  { %v884_v59 = vpop.f32.mrb[2].mxu1 }
 0x28f   :  { %v886_v19 = vpop.f32.mrb[3].mxu1  ;;  %v885_v32 = vadd.f32 %v884_v59, %v4713_v62 }
 0x290   :  { %v887_v40 = vadd.f32 %v886_v19, %v4713_v62 }
 0x291   :  { %v1049_v45 = vmax.f32 %v885_v32, 0.0 }
 0x292   :  { %v890_v21 = vpop.f32.mrb[4].mxu1  ;;  %v1050_v36 = vmax.f32 %v887_v40, 0.0 }
 0x293   :  { %v891_v7 = vadd.f32 %v890_v21, %v4705_v60  ;;  %v892_v37 = vpop.f32.mrb[5].mxu1 }
 0x294   :  { %v893_v25 = vadd.f32 %v892_v37, %v4705_v60  ;;  %v1061_v37 = vld [vmem:[%s5999_s1] sm:$0xff] }
 0x295   :  { %v1055_v26 = vmax.f32 %v891_v7, 0.0 }
 0x296   :  { %v1056_v13 = vmax.f32 %v893_v25, 0.0  ;;  %v4822_v25 = vstv %s1157_s4 }
 0x297   :  { %v1073_v38 = vrot.slane %v1055_v26, 1  ;;  %v1159_v40 = vmul.f32 %v4822_v25, %v1061_v37 }
 0x298   :  { %v1074_v31 = vrot.slane %v1056_v13, 1 }
 0x299   :  { %v1085_v42 = vsub.f32 %v1055_v26, %v1073_v38  ;;  %v4824_v26 = vstv %s3437_s17 }
 0x29a   :  { %v1086_v43 = vsub.f32 %v1056_v13, %v1074_v31  ;;  %v1181_v31 = vmul.f32 %v4824_v26, %v1061_v37 }
 0x29b   :  { %v1094_v47 = vrot.slane %v1085_v42, %v4812_v22 }
 0x29c   :  { %v1098_v49 = vrot.slane %v1086_v43, %v4812_v22 }
 0x29d   :  { %v1115_v51 = vmul.f32 %v1094_v47, %v1049_v45  ;;  %v4830_v45 = vstv %s1165_s18  ;;  %v4832_v47 = vstv %s3438_s19 }
 0x29e   :  { %v1116_v50 = vmul.f32 %v1098_v49, %v1050_v36 }
 0x29f   :  { %v1121_v52 = vsub.f32 0.0, %v1115_v51 }
 0x2a0   :  { %v1122_v57 = vsub.f32 0.0, %v1116_v50 }
 0x2a1   :  { %v1127_v63 = vmul.f32 1.442695, %v1121_v52 }
 0x2a2   :  { %v1129_v12 = vmul.f32 1.442695, %v1122_v57  ;;  %v961_v17 = vpop.f32.mrb[6].mxu1 }
 0x2a3   :  { %3865 = vpow2.f32 %v1127_v63  ;;  %v963_v59 = vpop.f32.mrb[7].mxu1  ;;  %v962_v42 = vadd.f32 %v961_v17, %v4713_v62  ;;  %v1062_v17 = vld [vmem:[%s5999_s1 + $0x8] sm:$0xff] }
 0x2a4   :  { %3867 = vpow2.f32 %v1129_v12  ;;  %v964_v36 = vadd.f32 %v963_v59, %v4713_v62  ;;  %v1167_v12 = vadd.f32 %v4830_v45, %v1159_v40 }
 0x2a6   :  { %v967_v19 = vpop.f32.mrb[8].mxu1  ;;  %v1052_v37 = vmax.f32 %v964_v36, 0.0 }
 0x2a7   :  { %v968_v21 = vadd.f32 %v967_v19, %v4705_v60  ;;  %v969_v7 = vpop.f32.mrb[9].mxu1  ;;  %v1189_v19 = vadd.f32 %v4832_v47, %v1181_v31  ;;  %v1182_v31 = vmul.f32 %v4824_v26, %v1062_v17 }
 0x2a8   :  { %v970_v13 = vadd.f32 %v969_v7, %v4705_v60 }
 0x2a9   :  { %v1057_v32 = vmax.f32 %v968_v21, 0.0  ;;  %v1051_v21 = vmax.f32 %v962_v42, 0.0  ;;  %v1195_v40 = vmax.f32 %v1189_v19, 0.0  ;;  %v1190_v36 = vadd.f32 %v4832_v47, %v1182_v31 }
 0x2aa   :  { %v1058_v38 = vmax.f32 %v970_v13, 0.0 }
 0x2ab   :  { %v1075_v43 = vrot.slane %v1057_v32, 1  ;;  %v1196_v19 = vmax.f32 %v1190_v36, 0.0 }
 0x2ac   :  { %v1076_v49 = vrot.slane %v1058_v38, 1 }
 0x2ad   :  { %v3866_v51 = vpop.eup %3865  ;;  %v1087_v50 = vsub.f32 %v1057_v32, %v1075_v43 }
 0x2ae   :  { %v1139_v52 = vadd.f32 1.0, %v3866_v51  ;;  %v1088_v57 = vsub.f32 %v1058_v38, %v1076_v49  ;;  %v3868_v63 = vpop.eup %3867  ;;  %v1160_v38 = vmul.f32 %v4822_v25, %v1062_v17  ;;  %v1173_v49 = vmax.f32 %v1167_v12, 0.0 }
 0x2af   :  { %v1102_v7 = vrot.slane %v1087_v50, %v4812_v22  ;;  %v1140_v32 = vadd.f32 1.0, %v3868_v63 }
 0x2b0   :  { %3869 = vrcp.f32 %v1139_v52  ;;  %v1106_v59 = vrot.slane %v1088_v57, %v4812_v22  ;;  %v1201_v42 = vsub.f32 %v1173_v49, %v1195_v40  ;;  %v1168_v50 = vadd.f32 %v4830_v45, %v1160_v38 }
 0x2b1   :  { %v1117_v13 = vmul.f32 %v1102_v7, %v1051_v21  ;;  %3871 = vrcp.f32 %v1140_v32  ;;  %v1223_v52 = vrot.slane %v4345_v27, %v4812_v22  ;;  %v1063_v7 = vld [vmem:[%s5999_s1 + $0x10] sm:$0xff]  ;;  %v1226_v38 = vsub.s32 1, %v4340_v23 }
 0x2b2   :  { %v1118_v43 = vmul.f32 %v1106_v59, %v1052_v37  ;;  %v1174_v12 = vmax.f32 %v1168_v50, 0.0  ;;  %v1161_v59 = vmul.f32 %v4822_v25, %v1063_v7 }
 0x2b3   :  { %v1123_v51 = vsub.f32 0.0, %v1117_v13  ;;  %vm4848_vm12 = vcmp.eq.s32.totalorder %v1223_v52, 1  ;;  %v1183_v13 = vmul.f32 %v4824_v26, %v1063_v7  ;;  %v4868_v36 = vrot.slane %v4345_v27, %v1226_v38 }
 0x2b4   :  { %v1124_v44 = vsub.f32 0.0, %v1118_v43 }
 0x2b5   :  { %v1131_v61 = vmul.f32 1.442695, %v1123_v51  ;;  %v1191_v50 = vadd.f32 %v4832_v47, %v1183_v13  ;;  %vm6016_vm13 = vcmp.eq.s32.totalorder %v4868_v36, 1 }
 0x2b6   :  { %v1133_v57 = vmul.f32 1.442695, %v1124_v44  ;;  %v1202_v44 = vsub.f32 %v1174_v12, %v1196_v19 }
 0x2b7   :  { %3873 = vpow2.f32 %v1131_v61 }
 0x2b8   :  { %3875 = vpow2.f32 %v1133_v57  ;;  %v1064_v57 = vld [vmem:[%s5999_s1 + $0x18] sm:$0xff] }
 0x2ba   :  { %v3870_v63 = vpop.eup %3869 }
 0x2bb   :  { %v1207_v21 = vmul.f32 %v3870_v63, %v1201_v42  ;;  %v3872_v32 = vpop.eup %3871  ;;  %v1169_v42 = vadd.f32 %v4830_v45, %v1161_v59  ;;  %v1197_v59 = vmax.f32 %v1191_v50, 0.0 }
 0x2bc   :  { %v1208_v51 = vmul.f32 %v3872_v32, %v1202_v44  ;;  %v1230_v32 = vsub.s32 2, %v4340_v23 }
 0x2bd   :  { %v4855_v37 = vadd.f32 %v1207_v21, %v1195_v40  ;;  %v1175_v44 = vmax.f32 %v1169_v42, 0.0 }
 0x2be   :  { %v4876_v7 = vadd.f32 %v1208_v51, %v1196_v19  ;;  %v1184_v19 = vmul.f32 %v4824_v26, %v1064_v57 }
 0x2bf   :  { %v1250_v61 = vsel %vm4848_vm12, %v4855_v37, 0.0 }
 0x2c0   :  { %1452 = vrot.lane.b32.xlu0 %v1250_v61, %s3952_s2  ;;  %1288 = vrot.lane.b32.xlu1 %v1250_v61, %s3950_s23  ;;  %v4889_v23 = vsel %vm6016_vm13, %v4876_v7, 0.0 }
 0x2c1   :  { %v3874_v43 = vpop.eup %3873  ;;  %v1038_v49 = vpop.f32.mrb[4].mxu0 }
 0x2c2   :  { %v1141_v40 = vadd.f32 1.0, %v3874_v43  ;;  %v1040_v31 = vpop.f32.mrb[5].mxu0  ;;  %v3876_v12 = vpop.eup %3875  ;;  %v1162_v43 = vmul.f32 %v4822_v25, %v1064_v57  ;;  %v1039_v51 = vadd.f32 %v1038_v49, %v4713_v62 }
 0x2c3   :  { %v1041_v50 = vadd.f32 %v1040_v31, %v4713_v62  ;;  %v1192_v62 = vadd.f32 %v4832_v47, %v1184_v19 }
 0x2c4   :  { %3877 = vrcp.f32 %v1141_v40  ;;  %1648 = vrot.lane.b32.xlu0 %v1250_v61, %s3954_s3  ;;  %1370 = vrot.lane.b32.xlu1 %v1250_v61, %s3949_s22 }
 0x2c5   :  { %v1044_v52 = vpop.f32.mrb[6].mxu0  ;;  %v1054_v31 = vmax.f32 %v1041_v50, 0.0  ;;  %v1198_v19 = vmax.f32 %v1192_v62, 0.0  ;;  %v1066_v50 = vld [vmem:[%s5999_s1 + $0x28] sm:$0xff] }
 0x2c6   :  { %v1045_v63 = vadd.f32 %v1044_v52, %v4705_v60  ;;  %v1046_v21 = vpop.f32.mrb[7].mxu0  ;;  %v1142_v52 = vadd.f32 1.0, %v3876_v12  ;;  %v1170_v12 = vadd.f32 %v4830_v45, %v1162_v43 }
 0x2c7   :  { %v1047_v13 = vadd.f32 %v1046_v21, %v4705_v60  ;;  %v1203_v60 = vsub.f32 %v1175_v44, %v1197_v59  ;;  %v4893_v21 = vrot.slane %v4345_v27, %v1230_v32 }
 0x2c8   :  { %v1059_v38 = vmax.f32 %v1045_v63, 0.0  ;;  %1730 = vrot.lane.b32.xlu0 %v1250_v61, %s3955_s27  ;;  %1538 = vrot.lane.b32.xlu1 %v1250_v61, %s3951_s24  ;;  %3879 = vrcp.f32 %v1142_v52  ;;  %v1176_v52 = vmax.f32 %v1170_v12, 0.0  ;;  %v1164_v12 = vmul.f32 %v4822_v25, %v1066_v50 }
 0x2c9   :  { %v1060_v40 = vmax.f32 %v1047_v13, 0.0  ;;  %v1053_v13 = vmax.f32 %v1039_v51, 0.0  ;;  %vm6021_vm14 = vcmp.eq.s32.totalorder %v4893_v21, 1 }
 0x2ca   :  { %v1077_v42 = vrot.slane %v1059_v38, 1 }
 0x2cb   :  { %v1078_v63 = vrot.slane %v1060_v40, 1 }
 0x2cc   :  { %v1089_v48 = vsub.f32 %v1059_v38, %v1077_v42  ;;  %1812 = vrot.lane.b32.xlu0 %v1250_v61, %s3957_s29  ;;  %1290 = vrot.lane.b32.xlu1 %v4889_v23, %s3950_s23 }
 0x2cd   :  { %v1090_v49 = vsub.f32 %v1060_v40, %v1078_v63 }
 0x2ce   :  { %v3878_v57 = vpop.eup %3877  ;;  %v1110_v44 = vrot.slane %v1089_v48, %v4812_v22 }
 0x2cf   :  { %v1209_v39 = vmul.f32 %v3878_v57, %v1203_v60  ;;  %v1114_v27 = vrot.slane %v1090_v49, %v4812_v22  ;;  %v1065_v60 = vld [vmem:[%s5999_s1 + $0x20] sm:$0xff] }
 0x2d0   :  { %v1119_v32 = vmul.f32 %v1110_v44, %v1053_v13  ;;  %1894 = vrot.lane.b32.xlu0 %v1250_v61, %s3956_s28  ;;  %1454 = vrot.lane.b32.xlu1 %v4889_v23, %s3952_s2  ;;  %v1163_v63 = vmul.f32 %v4822_v25, %v1065_v60  ;;  %v1185_v49 = vmul.f32 %v4824_v26, %v1065_v60 }
 0x2d1   :  { %v4906_v38 = vadd.f32 %v1209_v39, %v1197_v59  ;;  %v1120_v43 = vmul.f32 %v1114_v27, %v1054_v31  ;;  %v1204_v39 = vsub.f32 %v1176_v52, %v1198_v19  ;;  %v1186_v13 = vmul.f32 %v4824_v26, %v1066_v50 }
 0x2d2   :  { %v1125_v40 = vsub.f32 0.0, %v1119_v32  ;;  %v3880_v59 = vpop.eup %3879  ;;  %v1171_v27 = vadd.f32 %v4830_v45, %v1163_v63  ;;  %v1193_v32 = vadd.f32 %v4832_v47, %v1185_v49  ;;  %v1172_v26 = vadd.f32 %v4830_v45, %v1164_v12  ;;  %v4958_v45 = vld [vmem:[%s6006_s8 + $0x8] sm:$0xff] }
 0x2d3   :  { %v4911_v48 = vsel %vm6021_vm14, %v4906_v38, 0.0  ;;  %v1126_v22 = vsub.f32 0.0, %v1120_v43  ;;  %v1210_v42 = vmul.f32 %v3880_v59, %v1204_v39  ;;  %3439 = vmatprep.mubr.msk.f32.mxu1 %vm2076_vm0, %v4958_v45  ;;  %3441 = vmatprep.mubr.msk.f32.mxu0 %vm2076_vm0, %v4958_v45 }
 0x2d4   :  { %v1135_v51 = vmul.f32 1.442695, %v1125_v40  ;;  %1372 = vrot.lane.b32.xlu0 %v4889_v23, %s3949_s22  ;;  %1652 = vrot.lane.b32.xlu1 %v4911_v48, %s3954_s3  ;;  %v1194_v40 = vadd.f32 %v4832_v47, %v1186_v13  ;;  %v1177_v52 = vmax.f32 %v1171_v27, 0.0  ;;  %v1880_v13 = vld [vmem:[#allocation2 + $0x60] sm:$0xff] }
 0x2d5   :  { %v1137_v61 = vmul.f32 1.442695, %v1126_v22  ;;  %v4933_v57 = vadd.f32 %v1210_v42, %v1198_v19  ;;  %v1199_v19 = vmax.f32 %v1193_v32, 0.0  ;;  %v1178_v22 = vmax.f32 %v1172_v26, 0.0 }
 0x2d6   :  { %3881 = vpow2.f32 %v1135_v51  ;;  %v1200_v51 = vmax.f32 %v1194_v40, 0.0 }
 0x2d7   :  { %3883 = vpow2.f32 %v1137_v61  ;;  %v1253_v25 = vsel %vm1247_vm15, %v4933_v57, 0.0  ;;  %v1205_v47 = vsub.f32 %v1177_v52, %v1199_v19  ;;  %v3829_v52 = vunpack.i.h.bf16 %v4723_v2 }
 0x2d8   :  { %1540 = vrot.lane.b32.xlu0 %v4889_v23, %s3951_s24  ;;  %1734 = vrot.lane.b32.xlu1 %v4911_v48, %s3955_s27  ;;  %v1206_v61 = vsub.f32 %v1178_v22, %v1200_v51 }
 0x2dc   :  { %1650 = vrot.lane.b32.xlu0 %v4889_v23, %s3954_s3  ;;  %1816 = vrot.lane.b32.xlu1 %v4911_v48, %s3957_s29 }
 0x2e0   :  { %v3882_v44 = vpop.eup %3881  ;;  %1732 = vrot.lane.b32.xlu0 %v4889_v23, %s3955_s27  ;;  %1898 = vrot.lane.b32.xlu1 %v4911_v48, %s3956_s28 }
 0x2e1   :  { %v3884_v62 = vpop.eup %3883  ;;  %v1143_v31 = vadd.f32 1.0, %v3882_v44  ;;  %v2065_v44 = vld [vmem:[%s6007_s9 + $0x8] sm:$0xff] }
 0x2e2   :  { %v1144_v43 = vadd.f32 1.0, %v3884_v62  ;;  %v1879_v62 = vld [vmem:[#allocation2 + $0x58] sm:$0xff] }
 0x2e3   :  { %3885 = vrcp.f32 %v1143_v31  ;;  %v2064_v31 = vld [vmem:[%s6007_s9] sm:$0xff] }
 0x2e4   :  { %3887 = vrcp.f32 %v1144_v43  ;;  %1814 = vrot.lane.b32.xlu0 %v4889_v23, %s3957_s29  ;;  %1294 = vrot.lane.b32.xlu1 %v1253_v25, %s3950_s23 }
 0x2e8   :  { %1896 = vrot.lane.b32.xlu0 %v4889_v23, %s3956_s28  ;;  %1376 = vrot.lane.b32.xlu1 %v1253_v25, %s3949_s22 }
 0x2ec   :  { %1292 = vrot.lane.b32.xlu0 %v4911_v48, %s3950_s23  ;;  %1458 = vrot.lane.b32.xlu1 %v1253_v25, %s3952_s2 }
 0x2ed   :  { %v3886_v23 = vpop.eup %3885 }
 0x2ee   :  { %v3888_v39 = vpop.eup %3887  ;;  %v1211_v59 = vmul.f32 %v3886_v23, %v1205_v47 }
 0x2ef   :  { %v1212_v42 = vmul.f32 %v3888_v39, %v1206_v61  ;;  %v1316_v61 = vsel %vm414_vm4, %v4719_v0, %v4709_v35  ;;  %v1315_v39 = vsel %vm414_vm4, %v3829_v52, %v4719_v0  ;;  %v1398_v0 = vsel %vm456_vm3, %v4715_v56, %v4727_v3 }
 0x2f0   :  { %v4969_v60 = vadd.f32 %v1211_v59, %v1199_v19  ;;  %1374 = vrot.lane.b32.xlu0 %v4911_v48, %s3949_s22  ;;  %1544 = vrot.lane.b32.xlu1 %v1253_v25, %s3951_s24  ;;  %v3828_v19 = vunpack.i.l.bf16 %v4723_v2 }
 0x2f1   :  { %v1218_v50 = vadd.f32 %v1212_v42, %v1200_v51 }
 0x2f2   :  { %v1254_v63 = vsel %vm6015_vm1, %v4969_v60, 0.0 }
 0x2f3   :  { %v1255_v49 = vsel %vm6014_vm11, %v1218_v50, 0.0  ;;  %vm3958_vm11 = vmmov 1  }
 0x2f4   :  { %1261 = vst.msk [vmem:[#allocation2 + $0x30] sm:$0xff] %vm388_vm2, %v1255_v49  ;;  %1456 = vrot.lane.b32.xlu0 %v4911_v48, %s3952_s2  ;;  %1656 = vrot.lane.b32.xlu1 %v1254_v63, %s3954_s3  ;;  %v3833_v49 = vunpack.i.l.bf16 %v4721_v1  ;;  %vm3891_vm1 = vmpackc.low %vm3958_vm11, %vm6016_vm13 }
 0x2f5   :  { %vm3894_vm13 = vmpackc.low %vm3958_vm11, %vm4848_vm12 }
 0x2f8   :  { %1542 = vrot.lane.b32.xlu0 %v4911_v48, %s3951_s24  ;;  %1738 = vrot.lane.b32.xlu1 %v1254_v63, %s3955_s27  ;;  %v1635_v48 = vld [vmem:[#allocation2 + $0x68] sm:$0xff] }
 0x2fb   :  { %v1514_v12 = vld [vmem:[#allocation2 + $0x30] sm:$0xff] }
 0x2fc   :  { %1654 = vrot.lane.b32.xlu0 %v1253_v25, %s3954_s3  ;;  %1820 = vrot.lane.b32.xlu1 %v1254_v63, %s3957_s29  ;;  %1617 = vst.msk [vmem:[#allocation3 + $0x1a8] sm:$0xff] %vm388_vm2, %v1514_v12 }
 0x300   :  { %1736 = vrot.lane.b32.xlu0 %v1253_v25, %s3955_s27  ;;  %1902 = vrot.lane.b32.xlu1 %v1254_v63, %s3956_s28 }
 0x304   :  { %1818 = vrot.lane.b32.xlu0 %v1253_v25, %s3957_s29  ;;  %1548 = vrot.lane.b32.xlu1 %v1514_v12, %s3951_s24 }
 0x308   :  { %1900 = vrot.lane.b32.xlu0 %v1253_v25, %s3956_s28  ;;  %1914 = vrot.lane.b32.xlu1 %v1880_v13, %s3956_s28 }
 0x30c   :  { %1296 = vrot.lane.b32.xlu0 %v1254_v63, %s3950_s23  ;;  %1670 = vrot.lane.b32.xlu1 %v1635_v48, %s3954_s3 }
 0x310   :  { %1378 = vrot.lane.b32.xlu0 %v1254_v63, %s3949_s22  ;;  %1752 = vrot.lane.b32.xlu1 %v1635_v48, %s3955_s27 }
 0x314   :  { %1460 = vrot.lane.b32.xlu0 %v1254_v63, %s3952_s2  ;;  %1834 = vrot.lane.b32.xlu1 %v1635_v48, %s3957_s29 }
 0x318   :  { %1546 = vrot.lane.b32.xlu0 %v1254_v63, %s3951_s24  ;;  %1916 = vrot.lane.b32.xlu1 %v1635_v48, %s3956_s28  ;;  %v3834_v63 = vunpack.i.h.bf16 %v4721_v1  ;;  %v3839_v1 = vunpack.i.h.bf16 %v4735_v34 }
 0x31c   :  { %1912 = vrot.lane.b32.xlu0 %v1879_v62, %s3956_s28  ;;  %2073 = vperm.xlu1 %3823, %v2065_v44  }
 0x320   :  { %1658 = vrot.lane.b32.xlu0 %v1514_v12, %s3954_s3 }
 0x324   :  { %1740 = vrot.lane.b32.xlu0 %v1514_v12, %s3955_s27 }
 0x328   :  { %1822 = vrot.lane.b32.xlu0 %v1514_v12, %s3957_s29 }
 0x32c   :  { %1904 = vrot.lane.b32.xlu0 %v1514_v12, %s3956_s28 }
 0x330   :  { %2068 = vperm.xlu0 %3824, %v2064_v31   ;;  %v1397_v31 = vsel %vm456_vm3, %v3834_v63, %v4715_v56 }
 0x332   :  { %v1453_v27 = vpop.permute.xlu0 %1452  ;;  %v1289_v32 = vpop.permute.xlu1 %1288 }
 0x333   :  { %v1310_v22 = vsel %vm414_vm4, %v3828_v19, %v1289_v32  ;;  %v1480_v19 = vsel %vm498_vm6, %v4731_v4, %v4725_v54  ;;  %v1479_v54 = vsel %vm498_vm6, %v3839_v1, %v4731_v4 }
 0x334   :  { %v3597_v42 = vpack.c.bf16 %v1315_v39, %v1310_v22  ;;  %v3843_v39 = vunpack.i.l.bf16 %v4733_v5 }
 0x336   :  { %v5014_v43 = vpop.permute.xlu0 %1648  ;;  %v1371_v25 = vpop.permute.xlu1 %1370 }
 0x337   :  { %v1392_v12 = vsel %vm456_vm3, %v3833_v49, %v1371_v25 }
 0x338   :  { %v3601_v22 = vpack.c.bf16 %v1397_v31, %v1392_v12  ;;  %v2010_v31 = vld [vmem:[#allocation3 + $0x1b0] sm:$0xff] }
 0x33a   :  { %v5016_v26 = vpop.permute.xlu0 %1730  ;;  %v1539_v40 = vpop.permute.xlu1 %1538 }
 0x33e   :  { %v5021_v51 = vpop.permute.xlu0 %1812  ;;  %v5023_v47 = vpop.permute.xlu1 %1290 }
 0x33f   :  { %v1311_v23 = vsel %vm414_vm4, %v1289_v32, %v5023_v47  ;;  %v3838_v32 = vunpack.i.l.bf16 %v4735_v34  ;;  %v3844_v34 = vunpack.i.h.bf16 %v4733_v5 }
 0x340   :  { %v3595_v59 = vpack.c.bf16 %v1316_v61, %v1311_v23 }
 0x341   :  { %v1474_v3 = vsel %vm498_vm6, %v3838_v32, %v1453_v27 }
 0x342   :  { %v5032_v50 = vpop.permute.xlu0 %1894  ;;  %v5034_v2 = vpop.permute.xlu1 %1454  ;;  %3596 = vmatprep.subr.bf16.mxu1 %v3595_v59  ;;  %v3605_v59 = vpack.c.bf16 %v1479_v54, %v1474_v3 }
 0x343   :  { %3598 = vmatpush1.bf16.msra.mxu1 %v3597_v42  ;;  %v1475_v44 = vsel %vm498_vm6, %v1453_v27, %v5034_v2  ;;  %v1571_v27 = vsel %vm544_vm5, %v4729_v41, %v4739_v58  ;;  %v1564_v42 = vsel %vm544_vm5, %v3843_v39, %v1539_v40 }
 0x346   :  { %v5039_v13 = vpop.permute.xlu0 %1372  ;;  %v5041_v48 = vpop.permute.xlu1 %1652 }
 0x347   :  { %v1393_v62 = vsel %vm456_vm3, %v1371_v25, %v5039_v13  ;;  %v3603_v25 = vpack.c.bf16 %v1480_v19, %v1475_v44  ;;  %v2011_v44 = vld [vmem:[#allocation3 + $0x1b8] sm:$0xff] }
 0x348   :  { %v3599_v52 = vpack.c.bf16 %v1398_v0, %v1393_v62  ;;  %v1570_v0 = vsel %vm544_vm5, %v3844_v34, %v4729_v41  ;;  %v1678_v41 = vsel %vm599_vm7, %v4743_v8, %v4737_v46  ;;  %v1677_v46 = vsel %vm599_vm7, %v4745_v33, %v4743_v8 }
 0x349   :  { %v3609_v5 = vpack.c.bf16 %v1570_v0, %v1564_v42  ;;  %v1759_v8 = vsel %vm641_vm9, %v4760_v14, %v4751_v11  ;;  %v1842_v33 = vsel %vm683_vm8, %v4762_v15, %v4764_v16 }
 0x34a   :  { %v5058_v61 = vpop.permute.xlu0 %1540  ;;  %v5060_v23 = vpop.permute.xlu1 %1734  ;;  %3600 = vmatprep.subr.bf16.mxu1 %v3599_v52 }
 0x34b   :  { %v1565_v56 = vsel %vm544_vm5, %v1539_v40, %v5058_v61  ;;  %3602 = vmatpush1.bf16.msra.mxu1 %v3601_v22  ;;  %v3892_v40 = vpack.c.bf16 %v2011_v44, %v4876_v7  ;;  %v3895_v7 = vpack.c.bf16 %v2010_v31, %v4855_v37 }
 0x34c   :  { %3604 = vmatprep.subr.bf16.mxu1 %v3603_v25  ;;  %v3607_v12 = vpack.c.bf16 %v1571_v27, %v1565_v56 }
 0x34e   :  { %v1651_v63 = vpop.permute.xlu0 %1650  ;;  %v5072_v49 = vpop.permute.xlu1 %1816 }
 0x34f   :  { %3606 = vmatpush1.bf16.msra.mxu1 %v3605_v59  ;;  %v1673_v58 = vsel %vm599_vm7, %v1651_v63, %v5041_v48  ;;  %v1672_v1 = vsel %vm599_vm7, %v5014_v43, %v1651_v63  ;;  %v1760_v43 = vsel %vm641_vm9, %v4751_v11, %v4749_v10  ;;  %v1318_v11 = vsel %vm414_vm4, %v4747_v9, %v4741_v6 }
 0x350   :  { %3608 = vmatprep.subr.bf16.mxu1 %v3607_v12  ;;  %v3615_v19 = vpack.c.bf16 %v1678_v41, %v1673_v58  ;;  %v3617_v3 = vpack.c.bf16 %v1677_v46, %v1672_v1  ;;  %v1924_v6 = vsel %vm725_vm10, %v4768_v18, %v4775_v24  ;;  %v1976_v58 = vld [vmem:[#allocation3 + $0xa0] sm:$0xff] }
 0x352   :  { %v1733_v4 = vpop.permute.xlu0 %1732  ;;  %v5076_v62 = vpop.permute.xlu1 %1898 }
 0x353   :  { %3610 = vmatpush1.bf16.msra.mxu1 %v3609_v5  ;;  %v1755_v22 = vsel %vm641_vm9, %v1733_v4, %v5060_v23  ;;  %v1754_v25 = vsel %vm641_vm9, %v5016_v26, %v1733_v4  ;;  %v1317_v26 = vsel %vm414_vm4, %v4709_v35, %v4747_v9 }
 0x354   :  { %3893 = vmatprep.subr.msk.bf16.mxu1 %vm3891_vm1, %v3892_v40  ;;  %v3619_v39 = vpack.c.bf16 %v1760_v43, %v1755_v22  ;;  %v3621_v10 = vpack.c.bf16 %v1759_v8, %v1754_v25  ;;  %v1988_v22 = vld [vmem:[#allocation3 + $0x100] sm:$0xff]  ;;  %v5165_v43 = vld [vmem:[%s6006_s8 + $0x18] sm:$0xff]  ;;  %vm3900_vm1 = vmpackc.low %vm3958_vm11, %vm6021_vm14 }
 0x355   :  { %v2000_v8 = vld [vmem:[#allocation3 + $0x160] sm:$0xff] }
 0x356   :  { %v1815_v32 = vpop.permute.xlu0 %1814  ;;  %v5089_v52 = vpop.permute.xlu1 %1294 }
 0x357   :  { %3896 = vmatpush1.bf16.msk.msra.mxu1 %vm3894_vm13, %v3895_v7  ;;  %v1837_v37 = vsel %vm683_vm8, %v1815_v32, %v5072_v49  ;;  %v1836_v54 = vsel %vm683_vm8, %v5021_v51, %v1815_v32  ;;  %v1841_v51 = vsel %vm683_vm8, %v4771_v20, %v4762_v15  ;;  %v1400_v15 = vsel %vm456_vm3, %v4755_v55, %v4753_v53  ;;  %vm3897_vm13 = vmpackc.low %vm3958_vm11, %vm1247_vm15 }
 0x358   :  { %3616 = vmatprep.subr.bf16.mxu1 %v3615_v19  ;;  %v3623_v42 = vpack.c.bf16 %v1842_v33, %v1837_v37  ;;  %v3625_v9 = vpack.c.bf16 %v1841_v51, %v1836_v54  ;;  %v2001_v37 = vld [vmem:[#allocation3 + $0x168] sm:$0xff] }
 0x35a   :  { %v1897_v56 = vpop.permute.xlu0 %1896  ;;  %v5105_v34 = vpop.permute.xlu1 %1376 }
 0x35b   :  { %3618 = vmatpush1.bf16.msra.mxu1 %v3617_v3  ;;  %v1919_v14 = vsel %vm725_vm10, %v1897_v56, %v5076_v62  ;;  %v1918_v0 = vsel %vm725_vm10, %v5032_v50, %v1897_v56  ;;  %v6028_v50 = vld [vmem:[#allocation10_spill] sm:$0xff] }
 0x35c   :  { %3620 = vmatprep.subr.bf16.mxu1 %v3619_v39  ;;  %v3627_v44 = vpack.c.bf16 %v1924_v6, %v1919_v14  ;;  %v1923_v40 = vsel %vm725_vm10, %v6028_v50, %v4768_v18  ;;  %v5160_v18 = vld [vmem:[%s6006_s8] sm:$0xff]  ;;  %v5179_v39 = vld [vmem:[%s6006_s8 + $0x10] sm:$0xff]  ;;  %v2025_v14 = vld [vmem:[#allocation3 + $0x228] sm:$0xff] }
 0x35d   :  { %v3629_v1 = vpack.c.bf16 %v1923_v40, %v1918_v0 }
 0x35e   :  { %v1293_v27 = vpop.permute.xlu0 %1292  ;;  %v5120_v59 = vpop.permute.xlu1 %1458 }
 0x35f   :  { %v1312_v16 = vsel %vm414_vm4, %v5023_v47, %v1293_v27  ;;  %v1313_v35 = vsel %vm414_vm4, %v1293_v27, %v5089_v52  ;;  %3622 = vmatpush1.bf16.msra.mxu1 %v3621_v10 }
 0x360   :  { %3624 = vmatprep.subr.bf16.mxu1 %v3623_v42  ;;  %v3631_v63 = vpack.c.bf16 %v1318_v11, %v1313_v35  ;;  %v3633_v12 = vpack.c.bf16 %v1317_v26, %v1312_v16  ;;  %v2013_v26 = vld [vmem:[#allocation3 + $0x1c8] sm:$0xff]  ;;  %v2012_v11 = vld [vmem:[#allocation3 + $0x1c0] sm:$0xff] }
 0x361   :  { %v3898_v42 = vpack.c.bf16 %v2013_v26, %v4933_v57  ;;  %v2024_v57 = vld [vmem:[#allocation3 + $0x220] sm:$0xff] }
 0x362   :  { %v1375_v47 = vpop.permute.xlu0 %1374  ;;  %v5139_v5 = vpop.permute.xlu1 %1544  ;;  %3632 = vmatprep.subr.bf16.mxu0 %v3631_v63 }
 0x363   :  { %v1394_v20 = vsel %vm456_vm3, %v5039_v13, %v1375_v47  ;;  %v1395_v4 = vsel %vm456_vm3, %v1375_v47, %v5105_v34  ;;  %3626 = vmatpush1.bf16.msra.mxu1 %v3625_v9  ;;  %3634 = vmatpush1.bf16.msra.mxu0 %v3633_v12  ;;  %v1989_v13 = vld [vmem:[#allocation3 + $0x108] sm:$0xff] }
 0x364   :  { %3628 = vmatprep.subr.bf16.mxu1 %v3627_v44  ;;  %v3635_v31 = vpack.c.bf16 %v1400_v15, %v1395_v4  ;;  %v3637_v41 = vpack.c.bf16 %v1976_v58, %v1394_v20  ;;  %v2037_v9 = vld [vmem:[#allocation3 + $0x288] sm:$0xff]  ;;  %v2036_v20 = vld [vmem:[#allocation3 + $0x280] sm:$0xff] }
 0x365   :  { %v2049_v58 = vld [vmem:[#allocation3 + $0x2e8] sm:$0xff] }
 0x366   :  { %v1457_v32 = vpop.permute.xlu0 %1456  ;;  %v5151_v19 = vpop.permute.xlu1 %1656  ;;  %3636 = vmatprep.subr.bf16.mxu0 %v3635_v31 }
 0x367   :  { %v1476_v53 = vsel %vm498_vm6, %v5034_v2, %v1457_v32  ;;  %v1477_v55 = vsel %vm498_vm6, %v1457_v32, %v5120_v59  ;;  %3630 = vmatpush1.bf16.msra.mxu1 %v3629_v1  ;;  %3638 = vmatpush1.bf16.msra.mxu0 %v3637_v41 }
 0x368   :  { %v3639_v7 = vpack.c.bf16 %v1989_v13, %v1477_v55  ;;  %v3641_v46 = vpack.c.bf16 %v1988_v22, %v1476_v53 }
 0x36a   :  { %v1543_v2 = vpop.permute.xlu0 %1542  ;;  %v5167_v3 = vpop.permute.xlu1 %1738  ;;  %2148 = vmatmul.mubr.f32.vlgmr.msra.gmra.mrb[10].mxu1 %v5160_v18  ;;  %3640 = vmatprep.subr.bf16.mxu0 %v3639_v7 }
 0x36b   :  { %v1566_v25 = vsel %vm544_vm5, %v5058_v61, %v1543_v2  ;;  %v1567_v56 = vsel %vm544_vm5, %v1543_v2, %v5139_v5  ;;  %3642 = vmatpush1.bf16.msra.mxu0 %v3641_v46  ;;  %3440 = vmatprep.mubr.msk.f32.mxu1 %vm2076_vm0, %v5165_v43  ;;  %v1967_v46 = vld [vmem:[#allocation3 + $0x58] sm:$0xff] }
 0x36c   :  { %v3643_v33 = vpack.c.bf16 %v2001_v37, %v1567_v56  ;;  %v3645_v10 = vpack.c.bf16 %v2000_v8, %v1566_v25  ;;  %v1966_v25 = vld [vmem:[#allocation3 + $0x50] sm:$0xff] }
 0x36e   :  { %v1655_v54 = vpop.permute.xlu0 %1654  ;;  %v5181_v27 = vpop.permute.xlu1 %1820  ;;  %2154 = vmatmul.mubr.f32.gmra.mrb[12].mxu1 %v5179_v39  ;;  %3644 = vmatprep.subr.bf16.mxu0 %v3643_v33 }
 0x36f   :  { %v1675_v61 = vsel %vm599_vm7, %v1655_v54, %v5151_v19  ;;  %3646 = vmatpush1.bf16.msra.mxu0 %v3645_v10  ;;  %3443 = vmatprep.mubr.msk.f32.mxu1 %vm2076_vm0, %v4958_v45  ;;  %v1674_v16 = vsel %vm599_vm7, %v5041_v48, %v1655_v54  ;;  %v3901_v45 = vpack.c.bf16 %v2012_v11, %v4906_v38  ;;  %v1979_v10 = vld [vmem:[#allocation3 + $0xb8] sm:$0xff] }
 0x370   :  { %3899 = vmatprep.subr.msk.bf16.mxu0 %vm3897_vm13, %v3898_v42  ;;  %v3651_v63 = vpack.c.bf16 %v2025_v14, %v1675_v61  ;;  %v3653_v6 = vpack.c.bf16 %v2024_v57, %v1674_v16  ;;  %v1978_v61 = vld [vmem:[#allocation3 + $0xb0] sm:$0xff]  ;;  %vm6029_vm13 = vcmp.eq.s32.totalorder %v4351_v29, 1 }
 0x372   :  { %v1737_v35 = vpop.permute.xlu0 %1736  ;;  %v5194_v51 = vpop.permute.xlu1 %1902 }
 0x373   :  { %v1757_v12 = vsel %vm641_vm9, %v1737_v35, %v5167_v3  ;;  %3902 = vmatpush1.bf16.msk.msra.mxu0 %vm3900_vm1, %v3901_v45  ;;  %v1756_v48 = vsel %vm641_vm9, %v5060_v23, %v1737_v35  ;;  %v2048_v23 = vld [vmem:[#allocation3 + $0x2e0] sm:$0xff]  ;;  %v1991_v35 = vld [vmem:[#allocation3 + $0x118] sm:$0xff]  ;;  %vm3903_vm1 = vmpackc.low %vm3958_vm11, %vm6029_vm13  ;;  %vm6033_vm13 = vcmp.eq.s32.totalorder %v4868_v36, 1 }
 0x374   :  { %3652 = vmatprep.subr.bf16.mxu0 %v3651_v63  ;;  %v3655_v44 = vpack.c.bf16 %v2037_v9, %v1757_v12  ;;  %v3657_v4 = vpack.c.bf16 %v2036_v20, %v1756_v48  ;;  %v2002_v20 = vld [vmem:[#allocation3 + $0x170] sm:$0xff] }
 0x376   :  { %v1819_v0 = vpop.permute.xlu0 %1818  ;;  %v1549_v47 = vpop.permute.xlu1 %1548 }
 0x377   :  { %v1839_v15 = vsel %vm683_vm8, %v1819_v0, %v5181_v27  ;;  %3654 = vmatpush1.bf16.msra.mxu0 %v3653_v6  ;;  %v1838_v38 = vsel %vm683_vm8, %v5072_v49, %v1819_v0  ;;  %v1990_v6 = vld [vmem:[#allocation3 + $0x110] sm:$0xff] }
 0x378   :  { %3656 = vmatprep.subr.bf16.mxu0 %v3655_v44  ;;  %v3659_v31 = vpack.c.bf16 %v2049_v58, %v1839_v15  ;;  %v3661_v41 = vpack.c.bf16 %v2048_v23, %v1838_v38  ;;  %v2003_v44 = vld [vmem:[#allocation3 + $0x178] sm:$0xff] }
 0x379   :  { %v2015_v58 = vld [vmem:[#allocation3 + $0x1d8] sm:$0xff] }
 0x37a   :  { %v1901_v50 = vpop.permute.xlu0 %1900  ;;  %v5208_v40 = vpop.permute.xlu1 %1914 }
 0x37b   :  { %3658 = vmatpush1.bf16.msra.mxu0 %v3657_v4  ;;  %v1920_v11 = vsel %vm725_vm10, %v5076_v62, %v1901_v50  ;;  %v1921_v63 = vsel %vm725_vm10, %v1901_v50, %v5194_v51 }
 0x37c   :  { %3660 = vmatprep.subr.bf16.mxu0 %v3659_v31 }
 0x37e   :  { %v1297_v1 = vpop.permute.xlu0 %1296  ;;  %v5210_v32 = vpop.permute.xlu1 %1670 }
 0x37f   :  { %1337 = vst.msk [vmem:[#allocation3 + $0x28] sm:$0xff] %vm388_vm2, %v1297_v1  ;;  %1705 = vst.msk [vmem:[#allocation3 + $0x238] sm:$0xff] %vm388_vm2, %v5210_v32  ;;  %3662 = vmatpush1.bf16.msra.mxu0 %v3661_v41  ;;  %v1314_v49 = vsel %vm414_vm4, %v5089_v52, %v1297_v1 }
 0x380   :  { %v3669_v56 = vpack.c.bf16 %v1966_v25, %v1314_v49 }
 0x382   :  { %v1379_v53 = vpop.permute.xlu0 %1378  ;;  %v5215_v55 = vpop.permute.xlu1 %1752 }
 0x383   :  { %1419 = vst.msk [vmem:[#allocation3 + $0x88] sm:$0xff] %vm388_vm2, %v1379_v53  ;;  %1787 = vst.msk [vmem:[#allocation3 + $0x298] sm:$0xff] %vm388_vm2, %v5215_v55  ;;  %v1396_v37 = vsel %vm456_vm3, %v5105_v34, %v1379_v53 }
 0x384   :  { %v3673_v42 = vpack.c.bf16 %v1978_v61, %v1396_v37 }
 0x386   :  { %v1461_v13 = vpop.permute.xlu0 %1460  ;;  %v5222_v22 = vpop.permute.xlu1 %1834  ;;  %v1961_v7 = vld [vmem:[#allocation3 + $0x28] sm:$0xff]  ;;  %v2027_v1 = vld [vmem:[#allocation3 + $0x238] sm:$0xff] }
 0x387   :  { %1501 = vst.msk [vmem:[#allocation3 + $0xe8] sm:$0xff] %vm388_vm2, %v1461_v13  ;;  %1869 = vst.msk [vmem:[#allocation3 + $0x2f8] sm:$0xff] %vm388_vm2, %v5222_v22  ;;  %v3667_v2 = vpack.c.bf16 %v1967_v46, %v1961_v7  ;;  %v1478_v34 = vsel %vm498_vm6, %v5120_v59, %v1461_v13  ;;  %v6030_v13 = vld [vmem:[#allocation11_spill] sm:$0xff] }
 0x388   :  { %v3677_v59 = vpack.c.bf16 %v1990_v6, %v1478_v34  ;;  %v1681_v7 = vsel %vm599_vm7, %v6030_v13, %v5210_v32 }
 0x389   :  { %3668 = vmatprep.subr.bf16.mxu1 %v3667_v2 }
 0x38a   :  { %v1547_v8 = vpop.permute.xlu0 %1546  ;;  %3670 = vmatpush1.bf16.msra.mxu1 %v3669_v56  ;;  %v5229_v52 = vpop.permute.xlu1 %1916  ;;  %v1973_v33 = vld [vmem:[#allocation3 + $0x88] sm:$0xff]  ;;  %v2039_v56 = vld [vmem:[#allocation3 + $0x298] sm:$0xff] }
 0x38b   :  { %v1569_v26 = vsel %vm544_vm5, %v1547_v8, %v1549_v47  ;;  %1951 = vst.msk [vmem:[#allocation3 + $0x358] sm:$0xff] %vm388_vm2, %v5229_v52  ;;  %v3671_v54 = vpack.c.bf16 %v1979_v10, %v1973_v33  ;;  %v1568_v62 = vsel %vm544_vm5, %v5139_v5, %v1547_v8  ;;  %v2014_v5 = vld [vmem:[#allocation3 + $0x1d0] sm:$0xff] }
 0x38c   :  { %1593 = vst.msk [vmem:[#allocation3 + $0x148] sm:$0xff] %vm388_vm2, %v1569_v26  ;;  %v3681_v4 = vpack.c.bf16 %v2002_v20, %v1568_v62  ;;  %v3904_v53 = vpack.c.bf16 %v2014_v5, %v4969_v60  ;;  %v6031_v60 = vld [vmem:[#allocation12_spill] sm:$0xff] }
 0x38d   :  { %3672 = vmatprep.subr.bf16.mxu1 %v3671_v54  ;;  %v1763_v8 = vsel %vm641_vm9, %v6031_v60, %v5215_v55  ;;  %v6032_v54 = vld [vmem:[#allocation13_spill] sm:$0xff] }
 0x38e   :  { %v1913_v14 = vpop.permute.xlu0 %1912  ;;  %3674 = vmatpush1.bf16.msra.mxu1 %v3673_v42  ;;  %v1985_v16 = vld [vmem:[#allocation3 + $0xe8] sm:$0xff]  ;;  %v2051_v26 = vld [vmem:[#allocation3 + $0x2f8] sm:$0xff]  ;;  %v1845_v61 = vsel %vm683_vm8, %v6032_v54, %v5222_v22  ;;  %v3890_v22 = vld [vmem:[#allocation2] sm:$0xff] }
 0x38f   :  { %v1925_v12 = vsel %vm725_vm10, %v4775_v24, %v1913_v14  ;;  %v1926_v45 = vsel %vm725_vm10, %v1913_v14, %v5208_v40  ;;  %v3675_v57 = vpack.c.bf16 %v1991_v35, %v1985_v16  ;;  %v2009_v24 = vld [vmem:[#allocation3 + $0x1a8] sm:$0xff] }
 0x390   :  { %v3663_v9 = vpack.c.bf16 %v1926_v45, %v1921_v63  ;;  %v3665_v48 = vpack.c.bf16 %v1925_v12, %v1920_v11  ;;  %v3683_v50 = vpack.c.bf16 %v2015_v58, %v2009_v24 }
 0x391   :  { %3676 = vmatprep.subr.bf16.mxu1 %v3675_v57 }
 0x392   :  { %v1659_v0 = vpop.permute.xlu0 %1658  ;;  %3678 = vmatpush1.bf16.msra.mxu1 %v3677_v59  ;;  %3664 = vmatprep.subr.bf16.mxu0 %v3663_v9  ;;  %v2063_v55 = vld [vmem:[#allocation3 + $0x358] sm:$0xff] }
 0x393   :  { %1699 = vst.msk [vmem:[#allocation3 + $0x208] sm:$0xff] %vm388_vm2, %v1659_v0  ;;  %v1997_v47 = vld [vmem:[#allocation3 + $0x148] sm:$0xff]  ;;  %3666 = vmatpush1.bf16.msra.mxu0 %v3665_v48  ;;  %v1676_v31 = vsel %vm599_vm7, %v5151_v19, %v1659_v0 }
 0x394   :  { %v3679_v15 = vpack.c.bf16 %v2003_v44, %v1997_v47  ;;  %v3689_v19 = vpack.c.bf16 %v1681_v7, %v1676_v31 }
 0x396   :  { %v1741_v38 = vpop.permute.xlu0 %1740  ;;  %3680 = vmatprep.subr.bf16.mxu1 %v3679_v15  ;;  %2225 = vmatmul.mubr.f32.vlgmr.msra.gmra.mrb[8].mxu0 %v5160_v18 }
 0x397   :  { %1781 = vst.msk [vmem:[#allocation3 + $0x268] sm:$0xff] %vm388_vm2, %v1741_v38  ;;  %3682 = vmatpush1.bf16.msra.mxu1 %v3681_v4  ;;  %3442 = vmatprep.mubr.msk.f32.mxu0 %vm2076_vm0, %v5165_v43  ;;  %v1758_v46 = vsel %vm641_vm9, %v5167_v3, %v1741_v38 }
 0x398   :  { %3684 = vmatprep.subr.bf16.mxu1 %v3683_v50  ;;  %v3693_v33 = vpack.c.bf16 %v1763_v8, %v1758_v46 }
 0x39a   :  { %v1823_v23 = vpop.permute.xlu0 %1822  ;;  %v2021_v41 = vld [vmem:[#allocation3 + $0x208] sm:$0xff]  ;;  %2231 = vmatmul.mubr.f32.gmra.mrb[10].mxu0 %v5179_v39 }
 0x39b   :  { %1863 = vst.msk [vmem:[#allocation3 + $0x2c8] sm:$0xff] %vm388_vm2, %v1823_v23  ;;  %3905 = vmatpush1.bf16.msk.msra.mxu1 %vm3903_vm1, %v3904_v53  ;;  %v3687_v49 = vpack.c.bf16 %v2027_v1, %v2021_v41  ;;  %v1840_v32 = vsel %vm683_vm8, %v5181_v27, %v1823_v23  ;;  %v1927_v27 = vsel %vm725_vm10, %v5208_v40, %v5229_v52  ;;  %v5296_v63 = vpop.permute.xlu1 %2073  ;;  %vm6034_vm1 = vmmov %vm6033_vm13 }
 0x39c   :  { %v3697_v42 = vpack.c.bf16 %v1845_v61, %v1840_v32 }
 0x39d   :  { %3688 = vmatprep.subr.bf16.mxu1 %v3687_v49 }
 0x39e   :  { %v1905_v2 = vpop.permute.xlu0 %1904  ;;  %v2033_v25 = vld [vmem:[#allocation3 + $0x268] sm:$0xff] }
 0x39f   :  { %1945 = vst.msk [vmem:[#allocation3 + $0x328] sm:$0xff] %vm388_vm2, %v1905_v2  ;;  %3690 = vmatpush1.bf16.msra.mxu1 %v3689_v19  ;;  %v3691_v37 = vpack.c.bf16 %v2039_v56, %v2033_v25  ;;  %v1922_v34 = vsel %vm725_vm10, %v5194_v51, %v1905_v2  ;;  %v3845_v51 = vpack.i.bf16 %v3890_v22, %v3890_v22 }
 0x3a0   :  { %v3701_v16 = vpack.c.bf16 %v1927_v27, %v1922_v34  ;;  %v5469_v27 = vld [vmem:[%s6008_s10 + $0x8] sm:$0xff] }
 0x3a1   :  { %3692 = vmatprep.subr.bf16.mxu1 %v3691_v37  ;;  %3846 = vrot.lane.b32.xlu0 %v3845_v51, %s3950_s23 }
 0x3a2   :  { %v2045_v10 = vld [vmem:[#allocation3 + $0x2c8] sm:$0xff]  ;;  %3851 = vrot.lane.b32.xlu1 %v3845_v51, %s3949_s22  ;;  %3445 = vmatprep.mubr.msk.f32.mxu0 %vm2076_vm0, %v5469_v27 }
 0x3a3   :  { %3694 = vmatpush1.bf16.msra.mxu1 %v3693_v33  ;;  %v3695_v3 = vpack.c.bf16 %v2051_v26, %v2045_v10 }
 0x3a5   :  { %3696 = vmatprep.subr.bf16.mxu1 %v3695_v3  ;;  %3856 = vrot.lane.b32.xlu0 %v3845_v51, %s3952_s2 }
 0x3a6   :  { %v2057_v11 = vld [vmem:[#allocation3 + $0x328] sm:$0xff]  ;;  %3861 = vrot.lane.b32.xlu1 %v3845_v51, %s3951_s24 }
 0x3a7   :  { %3698 = vmatpush1.bf16.msra.mxu1 %v3697_v42  ;;  %v3699_v14 = vpack.c.bf16 %v2063_v55, %v2057_v11 }
 0x3a9   :  { %3700 = vmatprep.subr.bf16.mxu1 %v3699_v14 }
 0x3ab   :  { %3702 = vmatpush1.bf16.msra.mxu1 %v3701_v16 }
 0x3ae   :  { %2302 = vmatmul.mubr.f32.vlgmr.msra.gmra.mrb[14].mxu1 %v5160_v18 }
 0x3af   :  { %3444 = vmatprep.mubr.msk.f32.mxu1 %vm2076_vm0, %v5165_v43  ;;  %v5287_v40 = vpop.permute.xlu0 %2068 }
 0x3b2   :  { %2308 = vmatmul.mubr.f32.gmra.mrb[16].mxu1 %v5179_v39 }
 0x3b3   :  { %3447 = vmatprep.mubr.msk.f32.mxu1 %vm2076_vm0, %v5469_v27 }
 0x413   :  { %v5491_v16 = vpop.permute.xlu0 %3846 }
 0x414   :  { %v3852_v22 = vpop.permute.xlu1 %3851 }
 0x417   :  { %v5501_v51 = vpop.permute.xlu0 %3856 }
 0x43d   :  { %v2149_v52 = vpop.f32.mrb[10].mxu1 }
 0x43e   :  { %v5290_v18 = vadd.f32 %v2149_v52, %v5287_v40  ;;  %v2151_v35 = vpop.f32.mrb[11].mxu1  ;;  %v3848_v52 = vunpack.i.l.bf16 %v5491_v16 }
 0x43f   :  { %v5293_v43 = vadd.f32 %v2151_v35, %v5287_v40  ;;  %v3853_v35 = vunpack.i.l.bf16 %v3852_v22 }
 0x440   :  { %v2314_v39 = vmax.f32 %v5290_v18, 0.0 }
 0x441   :  { %v2315_v12 = vmax.f32 %v5293_v43, 0.0  ;;  %v2155_v45 = vpop.f32.mrb[12].mxu1 }
 0x442   :  { %v2326_v57 = vsel %vm4848_vm12, %v2314_v39, 0.0  ;;  %v5304_v6 = vadd.f32 %v2155_v45, %v5296_v63  ;;  %v2157_v59 = vpop.f32.mrb[13].mxu1 }
 0x443   :  { %v2327_v9 = vsel %vm6033_vm13, %v2315_v12, 0.0  ;;  %v5311_v48 = vadd.f32 %v2157_v59, %v5296_v63  ;;  %2458 = vrot.lane.b32.xlu1 %v2326_v57, %s3949_s22  ;;  %2376 = vrot.lane.b32.xlu0 %v2326_v57, %s3950_s23  ;;  %vm6035_vm13 = vcmp.eq.s32.totalorder %v4351_v29, 1 }
 0x444   :  { %v6020_v62 = vmax.f32 %v5304_v6, 0.0 }
 0x445   :  { %v2321_v0 = vmax.f32 %v5311_v48, 0.0 }
 0x446   :  { %v2332_v47 = vsel %vm4848_vm12, %v6020_v62, 0.0 }
 0x447   :  { %v5325_v44 = vsel %vm6034_vm1, %v2321_v0, 0.0  ;;  %2626 = vrot.lane.b32.xlu1 %v2326_v57, %s3951_s24  ;;  %2540 = vrot.lane.b32.xlu0 %v2326_v57, %s3952_s2  ;;  %2706 = vst [vmem:[#allocation3 + $0x1b0] sm:$0xff] %v2332_v47  ;;  %vm6036_vm1 = vcmp.eq.s32.totalorder %v4354_v30, 1 }
 0x448   :  { %2707 = vst [vmem:[#allocation3 + $0x1b8] sm:$0xff] %v5325_v44 }
 0x44b   :  { %2378 = vrot.lane.b32.xlu1 %v2327_v9, %s3950_s23  ;;  %2736 = vrot.lane.b32.xlu0 %v2326_v57, %s3954_s3 }
 0x44f   :  { %2542 = vrot.lane.b32.xlu1 %v2327_v9, %s3952_s2  ;;  %2818 = vrot.lane.b32.xlu0 %v2326_v57, %s3955_s27 }
 0x453   :  { %2900 = vrot.lane.b32.xlu0 %v2326_v57, %s3957_s29  ;;  %2470 = vrot.lane.b32.xlu1 %v2332_v47, %s3949_s22 }
 0x457   :  { %2982 = vrot.lane.b32.xlu0 %v2326_v57, %s3956_s28  ;;  %2640 = vrot.lane.b32.xlu1 %v2332_v47, %s3951_s24 }
 0x45b   :  { %2460 = vrot.lane.b32.xlu0 %v2327_v9, %s3949_s22  ;;  %2748 = vrot.lane.b32.xlu1 %v2332_v47, %s3954_s3 }
 0x45f   :  { %2628 = vrot.lane.b32.xlu0 %v2327_v9, %s3951_s24  ;;  %2830 = vrot.lane.b32.xlu1 %v2332_v47, %s3955_s27 }
 0x463   :  { %2738 = vrot.lane.b32.xlu0 %v2327_v9, %s3954_s3  ;;  %2912 = vrot.lane.b32.xlu1 %v2332_v47, %s3957_s29 }
 0x467   :  { %2820 = vrot.lane.b32.xlu0 %v2327_v9, %s3955_s27  ;;  %2994 = vrot.lane.b32.xlu1 %v2332_v47, %s3956_s28 }
 0x469   :  { %v2226_v24 = vpop.f32.mrb[8].mxu0 }
 0x46a   :  { %v2227_v15 = vadd.f32 %v2226_v24, %v5287_v40  ;;  %v2228_v20 = vpop.f32.mrb[9].mxu0 }
 0x46b   :  { %v5348_v4 = vadd.f32 %v2228_v20, %v5287_v40  ;;  %2902 = vrot.lane.b32.xlu0 %v2327_v9, %s3957_s29  ;;  %2390 = vrot.lane.b32.xlu1 %v5325_v44, %s3950_s23 }
 0x46c   :  { %v2316_v58 = vmax.f32 %v2227_v15, 0.0 }
 0x46d   :  { %v6019_v38 = vmax.f32 %v5348_v4, 0.0  ;;  %v2232_v50 = vpop.f32.mrb[10].mxu0 }
 0x46e   :  { %v5356_v5 = vsel %vm6021_vm14, %v2316_v58, 0.0  ;;  %v5359_v31 = vadd.f32 %v2232_v50, %v5296_v63  ;;  %v2234_v23 = vpop.f32.mrb[11].mxu0 }
 0x46f   :  { %2340 = vst [vmem:[#allocation2 + $0x18] sm:$0xff] %v5356_v5  ;;  %v5366_v41 = vsel %vm1247_vm15, %v6019_v38, 0.0  ;;  %v5369_v1 = vadd.f32 %v2234_v23, %v5296_v63  ;;  %2984 = vrot.lane.b32.xlu0 %v2327_v9, %s3956_s28  ;;  %2554 = vrot.lane.b32.xlu1 %v5325_v44, %s3952_s2  ;;  %v3858_v9 = vunpack.i.l.bf16 %v5501_v51 }
 0x470   :  { %v6017_v53 = vmax.f32 %v5359_v31, 0.0  ;;  %v6042_v28 = vmax.f32 %v5359_v31, 0.0 }
 0x471   :  { %v6018_v49 = vmax.f32 %v5369_v1, 0.0 }
 0x472   :  { %v5380_v13 = vsel %vm6021_vm14, %v6017_v53, 0.0  ;;  %vm3909_vm14 = vmpackc.low %vm4848_vm12, %vm4848_vm12 }
 0x473   :  { %v5386_v7 = vsel %vm1247_vm15, %v6018_v49, 0.0  ;;  %2740 = vrot.lane.b32.xlu1 %v5356_v5, %s3954_s3  ;;  %2388 = vrot.lane.b32.xlu0 %v2332_v47, %s3950_s23  ;;  %2708 = vst [vmem:[#allocation3 + $0x1c0] sm:$0xff] %v5380_v13  ;;  %v3859_v49 = vunpack.i.h.bf16 %v5501_v51  ;;  %vm3912_vm12 = vmpackc.low %vm1247_vm15, %vm1247_vm15 }
 0x474   :  { %2347 = vst [vmem:[#allocation2 + $0x58] sm:$0xff] %v5386_v7  ;;  %2709 = vst [vmem:[#allocation3 + $0x1c8] sm:$0xff] %v5386_v7 }
 0x476   :  { %v5394_v19 = vld [vmem:[#allocation2 + $0x18] sm:$0xff] }
 0x477   :  { %2822 = vrot.lane.b32.xlu1 %v5356_v5, %s3955_s27  ;;  %2552 = vrot.lane.b32.xlu0 %v2332_v47, %s3952_s2 }
 0x47b   :  { %2904 = vrot.lane.b32.xlu1 %v5356_v5, %s3957_s29  ;;  %2472 = vrot.lane.b32.xlu0 %v5325_v44, %s3949_s22 }
 0x47f   :  { %2986 = vrot.lane.b32.xlu1 %v5356_v5, %s3956_s28  ;;  %2642 = vrot.lane.b32.xlu0 %v5325_v44, %s3951_s24 }
 0x481   :  { %v2303_v46 = vpop.f32.mrb[14].mxu1 }
 0x482   :  { %v2304_v2 = vadd.f32 %v2303_v46, %v5287_v40  ;;  %v2305_v25 = vpop.f32.mrb[15].mxu1 }
 0x483   :  { %v2306_v56 = vadd.f32 %v2305_v25, %v5287_v40  ;;  %2382 = vrot.lane.b32.xlu1 %v5366_v41, %s3950_s23  ;;  %2750 = vrot.lane.b32.xlu0 %v5325_v44, %s3954_s3  ;;  %v3862_v40 = vpop.permute.xlu1 %3861 }
 0x484   :  { %v2318_v37 = vmax.f32 %v2304_v2, 0.0  ;;  %v3863_v47 = vunpack.i.l.bf16 %v3862_v40  ;;  %v3854_v2 = vunpack.i.h.bf16 %v3852_v22 }
 0x485   :  { %v2319_v60 = vmax.f32 %v2306_v56, 0.0  ;;  %v2309_v8 = vpop.f32.mrb[16].mxu1 }
 0x486   :  { %v5415_v33 = vsel %vm6035_vm13, %v2318_v37, 0.0  ;;  %v2310_v32 = vadd.f32 %v2309_v8, %v5296_v63  ;;  %v2311_v10 = vpop.f32.mrb[17].mxu1 }
 0x487   :  { %2342 = vst [vmem:[#allocation2 + $0x28] sm:$0xff] %v5415_v33  ;;  %v2331_v26 = vsel %vm6036_vm1, %v2319_v60, 0.0  ;;  %v2312_v3 = vadd.f32 %v2311_v10, %v5296_v63  ;;  %2464 = vrot.lane.b32.xlu1 %v5366_v41, %s3949_s22  ;;  %2832 = vrot.lane.b32.xlu0 %v5325_v44, %s3955_s27  ;;  %v3864_v60 = vunpack.i.h.bf16 %v3862_v40 }
 0x488   :  { %2343 = vst.msk [vmem:[#allocation2 + $0x30] sm:$0xff] %vm388_vm2, %v2331_v26  ;;  %v2324_v54 = vmax.f32 %v2310_v32, 0.0 }
 0x489   :  { %v2325_v61 = vmax.f32 %v2312_v3, 0.0 }
 0x48a   :  { %v5429_v42 = vsel %vm6035_vm13, %v2324_v54, 0.0  ;;  %vm6037_vm13 = vcmp.eq.s32.totalorder %v4868_v36, 1  ;;  %v6038_v36 = vmax.f32 %v5304_v6, 0.0 }
 0x48b   :  { %2348 = vst [vmem:[#allocation2 + $0x60] sm:$0xff] %v5429_v42  ;;  %v2337_v34 = vsel %vm6036_vm1, %v2325_v61, 0.0  ;;  %2546 = vrot.lane.b32.xlu1 %v5366_v41, %s3952_s2  ;;  %2914 = vrot.lane.b32.xlu0 %v5325_v44, %s3957_s29  ;;  %vm3906_vm1 = vmpackc.low %vm6037_vm13, %vm6037_vm13 }
 0x48c   :  { %2349 = vst.msk [vmem:[#allocation2 + $0x68] sm:$0xff] %vm388_vm2, %v2337_v34 }
 0x48e   :  { %v5439_v11 = vld [vmem:[#allocation2 + $0x28] sm:$0xff] }
 0x48f   :  { %2632 = vrot.lane.b32.xlu1 %v5366_v41, %s3951_s24  ;;  %2996 = vrot.lane.b32.xlu0 %v5325_v44, %s3956_s28  ;;  %v5445_v29 = vld [vmem:[#allocation2 + $0x30] sm:$0xff] }
 0x490   :  { %2705 = vst.msk [vmem:[#allocation3 + $0x1a8] sm:$0xff] %vm388_vm2, %v5445_v29 }
 0x492   :  { %v5449_v30 = vld [vmem:[#allocation2 + $0x60] sm:$0xff] }
 0x493   :  { %2752 = vrot.lane.b32.xlu1 %v5380_v13, %s3954_s3  ;;  %2380 = vrot.lane.b32.xlu0 %v5356_v5, %s3950_s23  ;;  %v5455_v55 = vld [vmem:[#allocation2 + $0x68] sm:$0xff]  ;;  %2710 = vst [vmem:[#allocation3 + $0x1d0] sm:$0xff] %v5449_v30 }
 0x494   :  { %2711 = vst.msk [vmem:[#allocation3 + $0x1d8] sm:$0xff] %vm388_vm2, %v5455_v55 }
 0x497   :  { %2834 = vrot.lane.b32.xlu1 %v5380_v13, %s3955_s27  ;;  %2462 = vrot.lane.b32.xlu0 %v5356_v5, %s3949_s22 }
 0x49b   :  { %2916 = vrot.lane.b32.xlu1 %v5380_v13, %s3957_s29  ;;  %2544 = vrot.lane.b32.xlu0 %v5356_v5, %s3952_s2 }
 0x49f   :  { %2998 = vrot.lane.b32.xlu1 %v5380_v13, %s3956_s28  ;;  %2630 = vrot.lane.b32.xlu0 %v5356_v5, %s3951_s24 }
 0x4a3   :  { %2394 = vrot.lane.b32.xlu1 %v5386_v7, %s3950_s23  ;;  %2742 = vrot.lane.b32.xlu0 %v5366_v41, %s3954_s3 }
 0x4a7   :  { %2476 = vrot.lane.b32.xlu1 %v5386_v7, %s3949_s22  ;;  %2824 = vrot.lane.b32.xlu0 %v5366_v41, %s3955_s27 }
 0x4ab   :  { %2558 = vrot.lane.b32.xlu1 %v5386_v7, %s3952_s2  ;;  %2392 = vrot.lane.b32.xlu0 %v5380_v13, %s3950_s23 }
 0x4af   :  { %2646 = vrot.lane.b32.xlu1 %v5386_v7, %s3951_s24  ;;  %2474 = vrot.lane.b32.xlu0 %v5380_v13, %s3949_s22 }
 0x4b3   :  { %2744 = vrot.lane.b32.xlu1 %v5415_v33, %s3954_s3  ;;  %2556 = vrot.lane.b32.xlu0 %v5380_v13, %s3952_s2 }
 0x4b5   :  { %v2377_v63 = vpop.permute.xlu0 %2376  ;;  %v2459_v45 = vpop.permute.xlu1 %2458 }
 0x4b6   :  { %v5509_v57 = vsel %vm414_vm4, %v3848_v52, %v2377_v63  ;;  %v5512_v59 = vsel %vm456_vm3, %v3853_v35, %v2459_v45 }
 0x4b7   :  { %2826 = vrot.lane.b32.xlu1 %v5415_v33, %s3955_s27  ;;  %2644 = vrot.lane.b32.xlu0 %v5380_v13, %s3951_s24 }
 0x4b9   :  { %v2541_v44 = vpop.permute.xlu0 %2540  ;;  %v2627_v24 = vpop.permute.xlu1 %2626 }
 0x4ba   :  { %v5520_v15 = vsel %vm498_vm6, %v3858_v9, %v2541_v44  ;;  %v5523_v20 = vsel %vm544_vm5, %v3863_v47, %v2627_v24 }
 0x4bb   :  { %2636 = vrot.lane.b32.xlu1 %v5445_v29, %s3951_s24  ;;  %2754 = vrot.lane.b32.xlu0 %v5386_v7, %s3954_s3 }
 0x4bd   :  { %v2737_v58 = vpop.permute.xlu0 %2736  ;;  %v5529_v50 = vpop.permute.xlu1 %2378 }
 0x4be   :  { %v5533_v5 = vsel %vm414_vm4, %v2377_v63, %v5529_v50 }
 0x4bf   :  { %2396 = vrot.lane.b32.xlu1 %v5429_v42, %s3950_s23  ;;  %2836 = vrot.lane.b32.xlu0 %v5386_v7, %s3955_s27 }
 0x4c1   :  { %v2819_v23 = vpop.permute.xlu0 %2818  ;;  %v5539_v13 = vpop.permute.xlu1 %2542 }
 0x4c2   :  { %v5543_v46 = vsel %vm498_vm6, %v2541_v44, %v5539_v13 }
 0x4c3   :  { %2478 = vrot.lane.b32.xlu1 %v5429_v42, %s3949_s22  ;;  %2384 = vrot.lane.b32.xlu0 %v5415_v33, %s3950_s23 }
 0x4c5   :  { %v2901_v25 = vpop.permute.xlu0 %2900  ;;  %v5549_v56 = vpop.permute.xlu1 %2470 }
 0x4c6   :  { %v5553_v37 = vsel %vm456_vm3, %v3854_v2, %v5549_v56 }
 0x4c7   :  { %2560 = vrot.lane.b32.xlu1 %v5429_v42, %s3952_s2  ;;  %2466 = vrot.lane.b32.xlu0 %v5415_v33, %s3949_s22 }
 0x4c9   :  { %v2983_v8 = vpop.permute.xlu0 %2982  ;;  %v5559_v32 = vpop.permute.xlu1 %2640 }
 0x4ca   :  { %v5563_v10 = vsel %vm544_vm5, %v3864_v60, %v5559_v32 }
 0x4cb   :  { %2908 = vrot.lane.b32.xlu1 %v5415_v33, %s3957_s29  ;;  %2548 = vrot.lane.b32.xlu0 %v5415_v33, %s3952_s2 }
 0x4cd   :  { %v5569_v26 = vpop.permute.xlu0 %2460  ;;  %v5571_v3 = vpop.permute.xlu1 %2748 }
 0x4ce   :  { %v2481_v54 = vsel %vm456_vm3, %v2459_v45, %v5569_v26 }
 0x4cf   :  { %2756 = vrot.lane.b32.xlu1 %v5429_v42, %s3954_s3  ;;  %2634 = vrot.lane.b32.xlu0 %v5415_v33, %s3951_s24 }
 0x4d1   :  { %v5579_v61 = vpop.permute.xlu0 %2628  ;;  %v5581_v34 = vpop.permute.xlu1 %2830 }
 0x4d2   :  { %v5585_v22 = vsel %vm544_vm5, %v2627_v24, %v5579_v61 }
 0x4d3   :  { %2838 = vrot.lane.b32.xlu1 %v5429_v42, %s3955_s27  ;;  %2746 = vrot.lane.b32.xlu0 %v5445_v29, %s3954_s3 }
 0x4d5   :  { %v2739_v40 = vpop.permute.xlu0 %2738  ;;  %v5591_v52 = vpop.permute.xlu1 %2912 }
 0x4d6   :  { %v5594_v35 = vsel %vm599_vm7, %v2737_v58, %v2739_v40 }
 0x4d7   :  { %2920 = vrot.lane.b32.xlu1 %v5429_v42, %s3957_s29  ;;  %2828 = vrot.lane.b32.xlu0 %v5445_v29, %s3955_s27 }
 0x4d9   :  { %v2821_v63 = vpop.permute.xlu0 %2820  ;;  %v5600_v45 = vpop.permute.xlu1 %2994 }
 0x4da   :  { %v5603_v9 = vsel %vm641_vm9, %v2819_v23, %v2821_v63 }
 0x4db   :  { %2650 = vrot.lane.b32.xlu1 %v5455_v55, %s3951_s24  ;;  %2648 = vrot.lane.b32.xlu0 %v5429_v42, %s3951_s24 }
 0x4dd   :  { %v2903_v47 = vpop.permute.xlu0 %2902  ;;  %v5609_v44 = vpop.permute.xlu1 %2390 }
 0x4de   :  { %v5612_v24 = vsel %vm683_vm8, %v2901_v25, %v2903_v47  ;;  %v3849_v25 = vunpack.i.h.bf16 %v5491_v16 }
 0x4df   :  { %2990 = vrot.lane.b32.xlu1 %v5415_v33, %s3956_s28  ;;  %2906 = vrot.lane.b32.xlu0 %v5366_v41, %s3957_s29 }
 0x4e1   :  { %v2985_v58 = vpop.permute.xlu0 %2984  ;;  %v5618_v23 = vpop.permute.xlu1 %2554 }
 0x4e2   :  { %v5621_v2 = vsel %vm725_vm10, %v2983_v8, %v2985_v58 }
 0x4e3   :  { %3002 = vrot.lane.b32.xlu1 %v5429_v42, %s3956_s28  ;;  %2918 = vrot.lane.b32.xlu0 %v5386_v7, %s3957_s29 }
 0x4e5   :  { %v2389_v60 = vpop.permute.xlu0 %2388  ;;  %v5628_v14 = vpop.permute.xlu1 %2740 }
 0x4e6   :  { %v2403_v33 = vsel %vm414_vm4, %v3849_v25, %v2389_v60  ;;  %v2404_v53 = vsel %vm414_vm4, %v2389_v60, %v5609_v44  ;;  %v5635_v8 = vsel %vm599_vm7, %v2739_v40, %v5628_v14 }
 0x4e7   :  { %2758 = vrot.lane.b32.xlu1 %v5455_v55, %s3954_s3  ;;  %2910 = vrot.lane.b32.xlu0 %v5445_v29, %s3957_s29  ;;  %v3703_v42 = vpack.c.bf16 %v2404_v53, %v5533_v5  ;;  %v3705_v16 = vpack.c.bf16 %v2403_v33, %v5509_v57 }
 0x4e9   :  { %v2553_v25 = vpop.permute.xlu0 %2552  ;;  %v5644_v38 = vpop.permute.xlu1 %2822  ;;  %3704 = vmatprep.subr.bf16.mxu0 %v3703_v42 }
 0x4ea   :  { %v2567_v60 = vsel %vm498_vm6, %v3859_v49, %v2553_v25  ;;  %v2568_v40 = vsel %vm498_vm6, %v2553_v25, %v5618_v23  ;;  %v5651_v62 = vsel %vm641_vm9, %v2821_v63, %v5644_v38  ;;  %3706 = vmatpush1.bf16.msra.mxu0 %v3705_v16 }
 0x4eb   :  { %2840 = vrot.lane.b32.xlu1 %v5455_v55, %s3955_s27  ;;  %2988 = vrot.lane.b32.xlu0 %v5366_v41, %s3956_s28  ;;  %v3709_v41 = vpack.c.bf16 %v5553_v37, %v5512_v59  ;;  %v3153_v59 = vld [vmem:[%s6009_s11 + $0x8] sm:$0xff]  ;;  %v3152_v37 = vld [vmem:[%s6009_s11] sm:$0xff] }
 0x4ed   :  { %v5657_v53 = vpop.permute.xlu0 %2472  ;;  %v5659_v51 = vpop.permute.xlu1 %2904 }
 0x4ee   :  { %v2486_v49 = vsel %vm456_vm3, %v5549_v56, %v5657_v53  ;;  %v5666_v57 = vsel %vm683_vm8, %v2903_v47, %v5659_v51 }
 0x4ef   :  { %2922 = vrot.lane.b32.xlu1 %v5455_v55, %s3957_s29  ;;  %3000 = vrot.lane.b32.xlu0 %v5386_v7, %s3956_s28  ;;  %v3707_v5 = vpack.c.bf16 %v2486_v49, %v2481_v54  ;;  %v3711_v7 = vpack.c.bf16 %v2568_v40, %v5543_v46  ;;  %v3717_v46 = vpack.c.bf16 %v5563_v10, %v5523_v20 }
 0x4f0   :  { %v3910_v10 = vpack.c.bf16 %v6038_v36, %v2314_v39 }
 0x4f1   :  { %v5674_v63 = vpop.permute.xlu0 %2642  ;;  %v5676_v33 = vpop.permute.xlu1 %2986  ;;  %3708 = vmatprep.subr.bf16.mxu0 %v3707_v5 }
 0x4f2   :  { %v2659_v56 = vsel %vm544_vm5, %v5559_v32, %v5674_v63  ;;  %v5683_v47 = vsel %vm725_vm10, %v2985_v58, %v5676_v33  ;;  %3710 = vmatpush1.bf16.msra.mxu0 %v3709_v41  ;;  %v3713_v32 = vpack.c.bf16 %v2567_v60, %v5520_v15 }
 0x4f3   :  { %3004 = vrot.lane.b32.xlu1 %v5455_v55, %s3956_s28  ;;  %2992 = vrot.lane.b32.xlu0 %v5445_v29, %s3956_s28  ;;  %v3715_v29 = vpack.c.bf16 %v2659_v56, %v5585_v22 }
 0x4f4   :  { %3712 = vmatprep.subr.bf16.mxu0 %v3711_v7 }
 0x4f5   :  { %v2751_v54 = vpop.permute.xlu0 %2750  ;;  %v5697_v58 = vpop.permute.xlu1 %2382 }
 0x4f6   :  { %v2765_v55 = vsel %vm599_vm7, %v5571_v3, %v2751_v54  ;;  %3714 = vmatpush1.bf16.msra.mxu0 %v3713_v32  ;;  %v3907_v3 = vpack.c.bf16 %v2321_v0, %v2315_v12 }
 0x4f7   :  { %3161 = vperm.xlu1 %3823, %v3153_v59   ;;  %3156 = vperm.xlu0 %3824, %v3152_v37   ;;  %v3725_v6 = vpack.c.bf16 %v2765_v55, %v5594_v35 }
 0x4f8   :  { %3716 = vmatprep.subr.bf16.mxu0 %v3715_v29 }
 0x4f9   :  { %v2833_v42 = vpop.permute.xlu0 %2832  ;;  %v5704_v16 = vpop.permute.xlu1 %2464 }
 0x4fa   :  { %v2847_v15 = vsel %vm641_vm9, %v5581_v34, %v2833_v42  ;;  %3718 = vmatpush1.bf16.msra.mxu0 %v3717_v46 }
 0x4fb   :  { %3908 = vmatprep.subr.msk.bf16.mxu0 %vm3906_vm1, %v3907_v3 }
 0x4fd   :  { %v2915_v22 = vpop.permute.xlu0 %2914  ;;  %v5715_v25 = vpop.permute.xlu1 %2546 }
 0x4fe   :  { %v2929_v20 = vsel %vm683_vm8, %v5591_v52, %v2915_v22  ;;  %3911 = vmatpush1.bf16.msk.msra.mxu0 %vm3909_vm14, %v3910_v10  ;;  %vm6041_vm14 = vcmp.eq.s32.totalorder %v4893_v21, 1 }
 0x4ff   :  { %vm3915_vm15 = vmpackc.low %vm6041_vm14, %vm3958_vm11 }
 0x501   :  { %v2997_v43 = vpop.permute.xlu0 %2996  ;;  %v5726_v48 = vpop.permute.xlu1 %2632 }
 0x502   :  { %v3011_v12 = vsel %vm725_vm10, %v5600_v45, %v2997_v43 }
 0x505   :  { %v2381_v0 = vpop.permute.xlu0 %2380  ;;  %v5730_v34 = vpop.permute.xlu1 %2752 }
 0x506   :  { %v2400_v17 = vsel %vm414_vm4, %v5529_v50, %v2381_v0  ;;  %v2401_v52 = vsel %vm414_vm4, %v2381_v0, %v5697_v58  ;;  %v2766_v18 = vsel %vm599_vm7, %v2751_v54, %v5730_v34 }
 0x507   :  { %v3723_v39 = vpack.c.bf16 %v2766_v18, %v5635_v8  ;;  %v3729_v8 = vpack.c.bf16 %v2847_v15, %v5603_v9  ;;  %v5802_v15 = vld [vmem:[%s6008_s10 + $0x10] sm:$0xff] }
 0x509   :  { %v2463_v60 = vpop.permute.xlu0 %2462  ;;  %v5740_v40 = vpop.permute.xlu1 %2834  ;;  %3724 = vmatprep.subr.bf16.mxu0 %v3723_v39 }
 0x50a   :  { %v2482_v45 = vsel %vm456_vm3, %v5569_v26, %v2463_v60  ;;  %v2483_v50 = vsel %vm456_vm3, %v2463_v60, %v5704_v16  ;;  %v2848_v49 = vsel %vm641_vm9, %v2833_v42, %v5740_v40  ;;  %3726 = vmatpush1.bf16.msra.mxu0 %v3725_v6 }
 0x50b   :  { %v3727_v5 = vpack.c.bf16 %v2848_v49, %v5651_v62  ;;  %v3733_v62 = vpack.c.bf16 %v2929_v20, %v5612_v24 }
 0x50d   :  { %v2545_v41 = vpop.permute.xlu0 %2544  ;;  %v5750_v35 = vpop.permute.xlu1 %2916  ;;  %3728 = vmatprep.subr.bf16.mxu0 %v3727_v5 }
 0x50e   :  { %v5754_v56 = vsel %vm498_vm6, %v5539_v13, %v2545_v41  ;;  %v2565_v26 = vsel %vm498_vm6, %v2545_v41, %v5715_v25  ;;  %v2930_v7 = vsel %vm683_vm8, %v2915_v22, %v5750_v35  ;;  %3730 = vmatpush1.bf16.msra.mxu0 %v3729_v8 }
 0x50f   :  { %v3731_v59 = vpack.c.bf16 %v2930_v7, %v5666_v57  ;;  %v3737_v57 = vpack.c.bf16 %v3011_v12, %v5621_v2 }
 0x511   :  { %v2631_v9 = vpop.permute.xlu0 %2630  ;;  %v5762_v37 = vpop.permute.xlu1 %2998  ;;  %3732 = vmatprep.subr.bf16.mxu0 %v3731_v59 }
 0x512   :  { %v5766_v32 = vsel %vm544_vm5, %v5579_v61, %v2631_v9  ;;  %v2655_v13 = vsel %vm544_vm5, %v2631_v9, %v5726_v48  ;;  %v3012_v54 = vsel %vm725_vm10, %v2997_v43, %v5762_v37  ;;  %3734 = vmatpush1.bf16.msra.mxu0 %v3733_v62  ;;  %v5783_v61 = vld [vmem:[%s6008_s10] sm:$0xff]  ;;  %v6040_v62 = vmax.f32 %v5369_v1, 0.0 }
 0x513   :  { %v3735_v55 = vpack.c.bf16 %v3012_v54, %v5683_v47  ;;  %v5788_v47 = vld [vmem:[%s6008_s10 + $0x18] sm:$0xff] }
 0x515   :  { %v2743_v24 = vpop.permute.xlu0 %2742  ;;  %v5774_v29 = vpop.permute.xlu1 %2394  ;;  %3736 = vmatprep.subr.bf16.mxu0 %v3735_v55 }
 0x516   :  { %v5778_v46 = vsel %vm599_vm7, %v5628_v14, %v2743_v24  ;;  %3738 = vmatpush1.bf16.msra.mxu0 %v3737_v57 }
 0x519   :  { %v2825_v2 = vpop.permute.xlu0 %2824  ;;  %v5790_v42 = vpop.permute.xlu1 %2476  ;;  %3235 = vmatmul.mubr.f32.vlgmr.msra.gmra.mrb[12].mxu0 %v5783_v61 }
 0x51a   :  { %v5795_v14 = vsel %vm641_vm9, %v5644_v38, %v2825_v2  ;;  %3446 = vmatprep.mubr.msk.f32.mxu0 %vm2076_vm0, %v5788_v47 }
 0x51d   :  { %v2393_v3 = vpop.permute.xlu0 %2392  ;;  %v5804_v22 = vpop.permute.xlu1 %2558  ;;  %3241 = vmatmul.mubr.f32.gmra.mrb[14].mxu0 %v5802_v15 }
 0x51e   :  { %v2405_v20 = vsel %vm414_vm4, %v5609_v44, %v2393_v3  ;;  %v2406_v38 = vsel %vm414_vm4, %v2393_v3, %v5774_v29  ;;  %3449 = vmatprep.mubr.msk.f32.mxu0 %vm2076_vm0, %v5469_v27 }
 0x51f   :  { %v3739_v36 = vpack.c.bf16 %v2406_v38, %v2401_v52  ;;  %v3741_v10 = vpack.c.bf16 %v2405_v20, %v2400_v17 }
 0x521   :  { %v2475_v43 = vpop.permute.xlu0 %2474  ;;  %v5813_v12 = vpop.permute.xlu1 %2646  ;;  %3740 = vmatprep.subr.bf16.mxu1 %v3739_v36 }
 0x522   :  { %v2487_v0 = vsel %vm456_vm3, %v5657_v53, %v2475_v43  ;;  %v2488_v18 = vsel %vm456_vm3, %v2475_v43, %v5790_v42  ;;  %3742 = vmatpush1.bf16.msra.mxu1 %v3741_v10 }
 0x523   :  { %2510 = vst [vmem:[#allocation3 + $0xa0] sm:$0xff] %v2487_v0  ;;  %v3743_v44 = vpack.c.bf16 %v2488_v18, %v2483_v50  ;;  %v3745_v39 = vpack.c.bf16 %v2487_v0, %v2482_v45 }
 0x525   :  { %v2557_v6 = vpop.permute.xlu0 %2556  ;;  %v5819_v60 = vpop.permute.xlu1 %2744  ;;  %3744 = vmatprep.subr.bf16.mxu1 %v3743_v44 }
 0x526   :  { %v2569_v27 = vsel %vm498_vm6, %v5618_v23, %v2557_v6  ;;  %v2570_v17 = vsel %vm498_vm6, %v2557_v6, %v5804_v22  ;;  %v5827_v53 = vsel %vm599_vm7, %v2743_v24, %v5819_v60  ;;  %3746 = vmatpush1.bf16.msra.mxu1 %v3745_v39 }
 0x527   :  { %2592 = vst [vmem:[#allocation3 + $0x100] sm:$0xff] %v2569_v27  ;;  %2593 = vst [vmem:[#allocation3 + $0x108] sm:$0xff] %v2570_v17  ;;  %v3747_v52 = vpack.c.bf16 %v2570_v17, %v2565_v26  ;;  %v3749_v45 = vpack.c.bf16 %v2569_v27, %v5754_v56 }
 0x529   :  { %v2645_v50 = vpop.permute.xlu0 %2644  ;;  %v5830_v49 = vpop.permute.xlu1 %2826  ;;  %3748 = vmatprep.subr.bf16.mxu1 %v3747_v52 }
 0x52a   :  { %v2660_v23 = vsel %vm544_vm5, %v5674_v63, %v2645_v50  ;;  %v2661_v5 = vsel %vm544_vm5, %v2645_v50, %v5813_v12  ;;  %v5838_v8 = vsel %vm641_vm9, %v2825_v2, %v5830_v49  ;;  %3750 = vmatpush1.bf16.msra.mxu1 %v3749_v45  ;;  %v6039_v63 = vmax.f32 %v5348_v4, 0.0 }
 0x52b   :  { %2684 = vst [vmem:[#allocation3 + $0x160] sm:$0xff] %v2660_v23  ;;  %2685 = vst [vmem:[#allocation3 + $0x168] sm:$0xff] %v2661_v5  ;;  %v3751_v41 = vpack.c.bf16 %v2661_v5, %v2655_v13  ;;  %v3753_v56 = vpack.c.bf16 %v2660_v23, %v5766_v32  ;;  %v3916_v4 = vpack.c.bf16 %v6042_v28, %v5394_v19  ;;  %v3103_v28 = vld [vmem:[#allocation3 + $0x1d8] sm:$0xff] }
 0x52c   :  { %v3913_v9 = vpack.c.bf16 %v6040_v62, %v6039_v63 }
 0x52d   :  { %v2755_v26 = vpop.permute.xlu0 %2754  ;;  %v2637_v7 = vpop.permute.xlu1 %2636  ;;  %3752 = vmatprep.subr.bf16.mxu1 %v3751_v41 }
 0x52e   :  { %v5843_v59 = vsel %vm599_vm7, %v5730_v34, %v2755_v26  ;;  %3754 = vmatpush1.bf16.msra.mxu1 %v3753_v56 }
 0x52f   :  { %2790 = vst [vmem:[#allocation3 + $0x220] sm:$0xff] %v5843_v59  ;;  %3914 = vmatprep.subr.msk.bf16.mxu1 %vm3912_vm12, %v3913_v9  ;;  %v3761_v6 = vpack.c.bf16 %v5843_v59, %v5778_v46 }
 0x531   :  { %v2837_v32 = vpop.permute.xlu0 %2836  ;;  %v2397_v13 = vpop.permute.xlu1 %2396 }
 0x532   :  { %v5855_v54 = vsel %vm641_vm9, %v5740_v40, %v2837_v32  ;;  %v2407_v34 = vsel %vm414_vm4, %v5774_v29, %v2397_v13  ;;  %2431 = vst.msk [vmem:[#allocation3 + $0x58] sm:$0xff] %vm388_vm2, %v2397_v13  ;;  %3917 = vmatpush1.bf16.msk.msra.mxu1 %vm3915_vm15, %v3916_v4 }
 0x533   :  { %2872 = vst [vmem:[#allocation3 + $0x280] sm:$0xff] %v5855_v54  ;;  %2430 = vst [vmem:[#allocation3 + $0x50] sm:$0xff] %v2407_v34  ;;  %v3765_v5 = vpack.c.bf16 %v5855_v54, %v5795_v14 }
 0x535   :  { %v2385_v1 = vpop.permute.xlu0 %2384  ;;  %v2479_v40 = vpop.permute.xlu1 %2478 }
 0x536   :  { %v2402_v55 = vsel %vm414_vm4, %v5697_v58, %v2385_v1  ;;  %2425 = vst.msk [vmem:[#allocation3 + $0x28] sm:$0xff] %vm388_vm2, %v2385_v1  ;;  %v2489_v57 = vsel %vm456_vm3, %v5790_v42, %v2479_v40  ;;  %2513 = vst.msk [vmem:[#allocation3 + $0xb8] sm:$0xff] %vm388_vm2, %v2479_v40 }
 0x537   :  { %2512 = vst [vmem:[#allocation3 + $0xb0] sm:$0xff] %v2489_v57 }
 0x539   :  { %v2467_v21 = vpop.permute.xlu0 %2466  ;;  %v2561_v31 = vpop.permute.xlu1 %2560  ;;  %v3055_v42 = vld [vmem:[#allocation3 + $0x58] sm:$0xff] }
 0x53a   :  { %v2484_v19 = vsel %vm456_vm3, %v5704_v16, %v2467_v21  ;;  %2507 = vst.msk [vmem:[#allocation3 + $0x88] sm:$0xff] %vm388_vm2, %v2467_v21  ;;  %v2571_v24 = vsel %vm498_vm6, %v5804_v22, %v2561_v31  ;;  %2595 = vst.msk [vmem:[#allocation3 + $0x118] sm:$0xff] %vm388_vm2, %v2561_v31  ;;  %v3777_v16 = vpack.c.bf16 %v2407_v34, %v2402_v55  ;;  %v3097_v55 = vld [vmem:[#allocation3 + $0x1a8] sm:$0xff] }
 0x53b   :  { %2594 = vst [vmem:[#allocation3 + $0x110] sm:$0xff] %v2571_v24  ;;  %v3781_v44 = vpack.c.bf16 %v2489_v57, %v2484_v19  ;;  %v3791_v31 = vpack.c.bf16 %v3103_v28, %v3097_v55 }
 0x53d   :  { %v2549_v58 = vpop.permute.xlu0 %2548  ;;  %v5879_v29 = vpop.permute.xlu1 %2908  ;;  %v3049_v2 = vld [vmem:[#allocation3 + $0x28] sm:$0xff]  ;;  %v3067_v10 = vld [vmem:[#allocation3 + $0xb8] sm:$0xff] }
 0x53e   :  { %v2566_v3 = vsel %vm498_vm6, %v5715_v25, %v2549_v58  ;;  %2589 = vst.msk [vmem:[#allocation3 + $0xe8] sm:$0xff] %vm388_vm2, %v2549_v58  ;;  %v3775_v20 = vpack.c.bf16 %v3055_v42, %v3049_v2 }
 0x53f   :  { %v3785_v46 = vpack.c.bf16 %v2571_v24, %v2566_v3  ;;  %v6043_v3 = vpack.c.bf16 %v5449_v30, %v5439_v11 }
 0x540   :  { %3776 = vmatprep.subr.bf16.mxu0 %v3775_v20 }
 0x541   :  { %v2635_v38 = vpop.permute.xlu0 %2634  ;;  %v5884_v36 = vpop.permute.xlu1 %2756  ;;  %3778 = vmatpush1.bf16.msra.mxu0 %v3777_v16  ;;  %v3061_v22 = vld [vmem:[#allocation3 + $0x88] sm:$0xff]  ;;  %v3079_v52 = vld [vmem:[#allocation3 + $0x118] sm:$0xff] }
 0x542   :  { %v5888_v43 = vsel %vm544_vm5, %v5726_v48, %v2635_v38  ;;  %v2657_v0 = vsel %vm544_vm5, %v2635_v38, %v2637_v7  ;;  %v2768_v25 = vsel %vm599_vm7, %v2755_v26, %v5884_v36  ;;  %v3779_v18 = vpack.c.bf16 %v3067_v10, %v3061_v22 }
 0x543   :  { %2681 = vst.msk [vmem:[#allocation3 + $0x148] sm:$0xff] %vm388_vm2, %v2657_v0  ;;  %2791 = vst [vmem:[#allocation3 + $0x228] sm:$0xff] %v2768_v25  ;;  %v3759_v39 = vpack.c.bf16 %v2768_v25, %v5827_v53 }
 0x544   :  { %3780 = vmatprep.subr.bf16.mxu0 %v3779_v18 }
 0x545   :  { %v2747_v27 = vpop.permute.xlu0 %2746  ;;  %v5897_v17 = vpop.permute.xlu1 %2838  ;;  %3782 = vmatpush1.bf16.msra.mxu0 %v3781_v44  ;;  %v3073_v48 = vld [vmem:[#allocation3 + $0xe8] sm:$0xff]  ;;  %3760 = vmatprep.subr.bf16.mxu1 %v3759_v39 }
 0x546   :  { %v5901_v45 = vsel %vm599_vm7, %v5819_v60, %v2747_v27  ;;  %2787 = vst.msk [vmem:[#allocation3 + $0x208] sm:$0xff] %vm388_vm2, %v2747_v27  ;;  %v2850_v53 = vsel %vm641_vm9, %v2837_v32, %v5897_v17  ;;  %v3783_v50 = vpack.c.bf16 %v3079_v52, %v3073_v48  ;;  %3762 = vmatpush1.bf16.msra.mxu1 %v3761_v6 }
 0x547   :  { %2873 = vst [vmem:[#allocation3 + $0x288] sm:$0xff] %v2850_v53  ;;  %v3763_v23 = vpack.c.bf16 %v2850_v53, %v5838_v8 }
 0x548   :  { %3784 = vmatprep.subr.bf16.mxu0 %v3783_v50 }
 0x549   :  { %v2829_v41 = vpop.permute.xlu0 %2828  ;;  %v2921_v56 = vpop.permute.xlu1 %2920  ;;  %3786 = vmatpush1.bf16.msra.mxu0 %v3785_v46  ;;  %3764 = vmatprep.subr.bf16.mxu1 %v3763_v23 }
 0x54a   :  { %v5911_v60 = vsel %vm641_vm9, %v5830_v49, %v2829_v41  ;;  %2869 = vst.msk [vmem:[#allocation3 + $0x268] sm:$0xff] %vm388_vm2, %v2829_v41  ;;  %3766 = vmatpush1.bf16.msra.mxu1 %v3765_v5  ;;  %v3085_v54 = vld [vmem:[#allocation3 + $0x148] sm:$0xff] }
 0x54d   :  { %v2649_v26 = vpop.permute.xlu0 %2648  ;;  %v2651_v7 = vpop.permute.xlu1 %2650  ;;  %v3109_v38 = vld [vmem:[#allocation3 + $0x208] sm:$0xff] }
 0x54e   :  { %v2662_v8 = vsel %vm544_vm5, %v5813_v12, %v2649_v26  ;;  %v2663_v59 = vsel %vm544_vm5, %v2649_v26, %v2651_v7 }
 0x54f   :  { %2686 = vst [vmem:[#allocation3 + $0x170] sm:$0xff] %v2662_v8  ;;  %2687 = vst.msk [vmem:[#allocation3 + $0x178] sm:$0xff] %vm388_vm2, %v2663_v59 }
 0x551   :  { %v2907_v14 = vpop.permute.xlu0 %2906  ;;  %v2991_v63 = vpop.permute.xlu1 %2990  ;;  %v3121_v44 = vld [vmem:[#allocation3 + $0x268] sm:$0xff] }
 0x552   :  { %v2926_v62 = vsel %vm683_vm8, %v5659_v51, %v2907_v14  ;;  %v2927_v49 = vsel %vm683_vm8, %v2907_v14, %v5879_v29  ;;  %v3789_v51 = vpack.c.bf16 %v2662_v8, %v5888_v43 }
 0x555   :  { %v2919_v9 = vpop.permute.xlu0 %2918  ;;  %v3003_v32 = vpop.permute.xlu1 %3002 }
 0x556   :  { %v2931_v13 = vsel %vm683_vm8, %v5750_v35, %v2919_v9  ;;  %v2932_v12 = vsel %vm683_vm8, %v2919_v9, %v2921_v56  ;;  %v3091_v34 = vld [vmem:[#allocation3 + $0x178] sm:$0xff] }
 0x557   :  { %2954 = vst [vmem:[#allocation3 + $0x2e0] sm:$0xff] %v2931_v13  ;;  %2955 = vst [vmem:[#allocation3 + $0x2e8] sm:$0xff] %v2932_v12  ;;  %v3787_v4 = vpack.c.bf16 %v3091_v34, %v3085_v54  ;;  %v3767_v1 = vpack.c.bf16 %v2932_v12, %v2927_v49  ;;  %v3769_v40 = vpack.c.bf16 %v2931_v13, %v2926_v62 }
 0x559   :  { %v2911_v57 = vpop.permute.xlu0 %2910  ;;  %v2759_v21 = vpop.permute.xlu1 %2758  ;;  %3788 = vmatprep.subr.bf16.mxu0 %v3787_v4  ;;  %3768 = vmatprep.subr.bf16.mxu1 %v3767_v1 }
 0x55a   :  { %v2928_v35 = vsel %vm683_vm8, %v5879_v29, %v2911_v57  ;;  %2951 = vst.msk [vmem:[#allocation3 + $0x2c8] sm:$0xff] %vm388_vm2, %v2911_v57  ;;  %v2769_v19 = vsel %vm599_vm7, %v5884_v36, %v2759_v21  ;;  %2793 = vst.msk [vmem:[#allocation3 + $0x238] sm:$0xff] %vm388_vm2, %v2759_v21  ;;  %3790 = vmatpush1.bf16.msra.mxu0 %v3789_v51  ;;  %3770 = vmatpush1.bf16.msra.mxu1 %v3769_v40 }
 0x55b   :  { %3792 = vmatprep.subr.bf16.mxu0 %v3791_v31  ;;  %v3797_v0 = vpack.c.bf16 %v2769_v19, %v5901_v45 }
 0x55d   :  { %v2989_v24 = vpop.permute.xlu0 %2988  ;;  %v2841_v58 = vpop.permute.xlu1 %2840 }
 0x55e   :  { %v3008_v2 = vsel %vm725_vm10, %v5676_v33, %v2989_v24  ;;  %v3009_v42 = vsel %vm725_vm10, %v2989_v24, %v2991_v63  ;;  %v2851_v29 = vsel %vm641_vm9, %v5897_v17, %v2841_v58  ;;  %2875 = vst.msk [vmem:[#allocation3 + $0x298] sm:$0xff] %vm388_vm2, %v2841_v58  ;;  %3794 = vmatpush1.bf16.msra.mxu0 %v6043_v3 }
 0x55f   :  { %v3801_v17 = vpack.c.bf16 %v2851_v29, %v5911_v60 }
 0x561   :  { %v3001_v20 = vpop.permute.xlu0 %3000  ;;  %v2923_v16 = vpop.permute.xlu1 %2922  ;;  %v3115_v36 = vld [vmem:[#allocation3 + $0x238] sm:$0xff]  ;;  %v3133_v48 = vld [vmem:[#allocation3 + $0x2c8] sm:$0xff] }
 0x562   :  { %v3013_v22 = vsel %vm725_vm10, %v5762_v37, %v3001_v20  ;;  %v3014_v33 = vsel %vm725_vm10, %v3001_v20, %v3003_v32  ;;  %v2933_v10 = vsel %vm683_vm8, %v2921_v56, %v2923_v16  ;;  %2957 = vst.msk [vmem:[#allocation3 + $0x2f8] sm:$0xff] %vm388_vm2, %v2923_v16  ;;  %v3795_v43 = vpack.c.bf16 %v3115_v36, %v3109_v38 }
 0x563   :  { %v3771_v25 = vpack.c.bf16 %v3014_v33, %v3009_v42  ;;  %v3773_v18 = vpack.c.bf16 %v3013_v22, %v3008_v2  ;;  %v3805_v53 = vpack.c.bf16 %v2933_v10, %v2928_v35 }
 0x564   :  { %3796 = vmatprep.subr.bf16.mxu0 %v3795_v43 }
 0x565   :  { %v2993_v11 = vpop.permute.xlu0 %2992  ;;  %v3005_v30 = vpop.permute.xlu1 %3004  ;;  %3798 = vmatpush1.bf16.msra.mxu0 %v3797_v0  ;;  %v3127_v39 = vld [vmem:[#allocation3 + $0x298] sm:$0xff]  ;;  %3772 = vmatprep.subr.bf16.mxu1 %v3771_v25 }
 0x566   :  { %v3010_v37 = vsel %vm725_vm10, %v2991_v63, %v2993_v11  ;;  %3033 = vst.msk [vmem:[#allocation3 + $0x328] sm:$0xff] %vm388_vm2, %v2993_v11  ;;  %v3015_v6 = vsel %vm725_vm10, %v3003_v32, %v3005_v30  ;;  %3039 = vst.msk [vmem:[#allocation3 + $0x358] sm:$0xff] %vm388_vm2, %v3005_v30  ;;  %v3799_v27 = vpack.c.bf16 %v3127_v39, %v3121_v44  ;;  %3774 = vmatpush1.bf16.msra.mxu1 %v3773_v18 }
 0x567   :  { %v3809_v5 = vpack.c.bf16 %v3015_v6, %v3010_v37 }
 0x568   :  { %3800 = vmatprep.subr.bf16.mxu0 %v3799_v27 }
 0x569   :  { %3802 = vmatpush1.bf16.msra.mxu0 %v3801_v17  ;;  %v3139_v52 = vld [vmem:[#allocation3 + $0x2f8] sm:$0xff]  ;;  %3312 = vmatmul.mubr.f32.vlgmr.msra.gmra.mrb[18].mxu1 %v5783_v61 }
 0x56a   :  { %v3803_v45 = vpack.c.bf16 %v3139_v52, %v3133_v48  ;;  %3448 = vmatprep.mubr.msk.f32.mxu1 %vm2076_vm0, %v5788_v47 }
 0x56c   :  { %3804 = vmatprep.subr.bf16.mxu0 %v3803_v45 }
 0x56d   :  { %3806 = vmatpush1.bf16.msra.mxu0 %v3805_v53  ;;  %v3145_v50 = vld [vmem:[#allocation3 + $0x328] sm:$0xff]  ;;  %v3151_v46 = vld [vmem:[#allocation3 + $0x358] sm:$0xff]  ;;  %3318 = vmatmul.mubr.f32.gmra.mrb[20].mxu1 %v5802_v15 }
 0x56e   :  { %v3807_v23 = vpack.c.bf16 %v3151_v46, %v3145_v50 }
 0x570   :  { %3808 = vmatprep.subr.bf16.mxu0 %v3807_v23 }
 0x571   :  { %3810 = vmatpush1.bf16.msra.mxu0 %v3809_v5 }
 0x574   :  { %3389 = vmatmul.mubr.f32.vlgmr.msra.gmra.mrb[16].mxu0 %v5783_v61 }
 0x575   :  { %3450 = vmatprep.mubr.msk.f32.mxu0 %vm2076_vm0, %v5788_v47 }
 0x576   :  { %v3157_v41 = vpop.permute.xlu0 %3156  ;;  %v3162_v59 = vpop.permute.xlu1 %3161 }
 0x578   :  { %3395 = vmatmul.mubr.f32.gmra.mrb[18].mxu0 %v5802_v15 }
 0x5ec   :  { %v3236_v56 = vpop.f32.mrb[12].mxu0 }
 0x5ed   :  { %v3237_v60 = vadd.f32 %v3236_v56, %v3157_v41  ;;  %v3238_v26 = vpop.f32.mrb[13].mxu0 }
 0x5ee   :  { %v3239_v7 = vadd.f32 %v3238_v26, %v3157_v41 }
 0x5ef   :  { %v3401_v8 = vmax.f32 %v3237_v60, 0.0 }
 0x5f0   :  { %v3402_v14 = vmax.f32 %v3239_v7, 0.0  ;;  %v3242_v63 = vpop.f32.mrb[14].mxu0 }
 0x5f1   :  { %3413 = vst [vmem:[%s6010_s12] sm:$0xff] %v3401_v8  ;;  %v3243_v62 = vadd.f32 %v3242_v63, %v3162_v59  ;;  %v3244_v61 = vpop.f32.mrb[15].mxu0 }
 0x5f2   :  { %3414 = vst [vmem:[%s6010_s12 + $0x8] sm:$0xff] %v3402_v14  ;;  %v3245_v47 = vadd.f32 %v3244_v61, %v3162_v59 }
 0x5f3   :  { %v3407_v15 = vmax.f32 %v3243_v62, 0.0 }
 0x5f4   :  { %v3408_v49 = vmax.f32 %v3245_v47, 0.0 }
 0x5f5   :  { %3419 = vst [vmem:[%s6010_s12 + $0x30] sm:$0xff] %v3407_v15 }
 0x5f6   :  { %3420 = vst [vmem:[%s6010_s12 + $0x38] sm:$0xff] %v3408_v49 }
 0x63c   :  { %v3313_v9 = vpop.f32.mrb[18].mxu1 }
 0x63d   :  { %v3314_v32 = vadd.f32 %v3313_v9, %v3157_v41  ;;  %v3315_v13 = vpop.f32.mrb[19].mxu1 }
 0x63e   :  { %v3316_v12 = vadd.f32 %v3315_v13, %v3157_v41 }
 0x63f   :  { %v3403_v54 = vmax.f32 %v3314_v32, 0.0 }
 0x640   :  { %v3404_v34 = vmax.f32 %v3316_v12, 0.0  ;;  %v3319_v28 = vpop.f32.mrb[20].mxu1 }
 0x641   :  { %3415 = vst [vmem:[%s6010_s12 + $0x10] sm:$0xff] %v3403_v54  ;;  %v3320_v4 = vadd.f32 %v3319_v28, %v3162_v59  ;;  %v3321_v1 = vpop.f32.mrb[21].mxu1 }
 0x642   :  { %3416 = vst [vmem:[%s6010_s12 + $0x18] sm:$0xff] %v3404_v34  ;;  %v3322_v40 = vadd.f32 %v3321_v1, %v3162_v59 }
 0x643   :  { %v3409_v51 = vmax.f32 %v3320_v4, 0.0 }
 0x644   :  { %v3410_v55 = vmax.f32 %v3322_v40, 0.0 }
 0x645   :  { %3421 = vst [vmem:[%s6010_s12 + $0x40] sm:$0xff] %v3409_v51 }
 0x646   :  { %3422 = vst [vmem:[%s6010_s12 + $0x48] sm:$0xff] %v3410_v55 }
 0x647   :  { %v3390_v57 = vpop.f32.mrb[16].mxu0 }
 0x648   :  { %v3391_v21 = vadd.f32 %v3390_v57, %v3157_v41  ;;  %v3392_v31 = vpop.f32.mrb[17].mxu0 }
 0x649   :  { %v3393_v35 = vadd.f32 %v3392_v31, %v3157_v41 }
 0x64a   :  { %v3405_v19 = vmax.f32 %v3391_v21, 0.0 }
 0x64b   :  { %v3406_v24 = vmax.f32 %v3393_v35, 0.0  ;;  %v3396_v58 = vpop.f32.mrb[18].mxu0 }
 0x64c   :  { %3417 = vst [vmem:[%s6010_s12 + $0x20] sm:$0xff] %v3405_v19  ;;  %v3397_v2 = vadd.f32 %v3396_v58, %v3162_v59  ;;  %v3398_v42 = vpop.f32.mrb[19].mxu0 }
 0x64d   :  { %3418 = vst.msk [vmem:[%s6010_s12 + $0x28] sm:$0xff] %vm388_vm2, %v3406_v24  ;;  %v3399_v29 = vadd.f32 %v3398_v42, %v3162_v59 }
 0x64e   :  { %v3411_v3 = vmax.f32 %v3397_v2, 0.0 }
 0x64f   :  { %v3412_v20 = vmax.f32 %v3399_v29, 0.0 }
 0x650   :  { %3423 = vst [vmem:[%s6010_s12 + $0x50] sm:$0xff] %v3411_v3 }
 0x651   :  { %3424 = vst.msk [vmem:[%s6010_s12 + $0x58] sm:$0xff] %vm388_vm2, %v3412_v20 }
 0x652   :  { %3429 = vsyncpa [#allocation5], 1 }
 0x653   :  { %3430 = vsyncpa [#allocation7], 1 }

</bundles_post_ra>
